<compile_context>
chip_gen: v7x
topology: tpu7x:2x2x1
jax: 0.10.0
libtpu: 0.0.40
codegen_flags: <defaults>
</compile_context>

<pallas_src>
import functools

import jax
import jax.numpy as jnp
import numpy as np
from jax.experimental import pallas as pl
from jax.experimental.pallas import tpu as pltpu


# ---------------------------------------------------------------------------
# Fused per-block kernel: 2x (1x1 conv + ReLU) -> attention (plain softmax,
# accumulated across N-tiles) -> MaxPool2d((1, 5)) via the de-interleaved axis
# ---------------------------------------------------------------------------

def fused_block_kernel(x_ref, w1_ref, b1_ref, w2_ref, b2_ref, attw_ref,
                       attb_ref, pool_ref, att_ref, y_sc, l_sc, acc_sc):
    n = pl.program_id(1)

    # Reset softmax numerator/denominator at the first N-tile of every batch row.
    @pl.when(n == 0)
    def _():
        l_sc[...] = jnp.zeros_like(l_sc)
        acc_sc[...] = jnp.zeros_like(acc_sc)

    w1 = w1_ref[...]
    b1 = b1_ref[...]
    w2 = w2_ref[...]
    b2 = b2_ref[...]
    attw = attw_ref[...]                                        # (C2, 1)

    pooled = None
    e = None
    for j in range(5):                                          # interleave slot
        xj = x_ref[0, j]                                        # (tg, Cin)
        hj = jnp.maximum(
            jnp.dot(xj, w1, preferred_element_type=jnp.float32) + b1, 0.0)
        yj = jnp.maximum(
            jnp.dot(hj, w2, preferred_element_type=jnp.float32) + b2, 0.0)
        y_sc[j] = yj                                            # keep for weighted sum
        # MaxPool2d((1,5)): elementwise max over the 5 interleave slots.
        pooled = yj if pooled is None else jnp.maximum(pooled, yj)
        # Pack the attention logit of slot j into lane j of a (tg, 5) matrix
        # straight out of the MXU (mask the tiny weight), so tanh/exp below run
        # 5x denser than on a (tg, 1) column.
        oh_j = (jax.lax.broadcasted_iota(jnp.int32, (1, 5), 1) == j
                ).astype(jnp.float32)
        ej = jnp.dot(yj, attw * oh_j, preferred_element_type=jnp.float32)
        e = ej if e is None else e + ej

    pool_ref[0] = pooled

    # Logits are tanh-bounded to [-1, 1]: exp() is safe without a running max,
    # so no online-softmax rescaling is needed (per review).
    p = jnp.exp(jnp.tanh(e + attb_ref[0]))                       # (tg, 5)
    l_sc[...] += jnp.sum(jnp.sum(p, axis=1, keepdims=True), axis=0,
                         keepdims=True)

    wsum = None
    for j in range(5):
        contrib = jnp.sum(y_sc[j] * p[:, j:j + 1], axis=0, keepdims=True)
        wsum = contrib if wsum is None else wsum + contrib
    acc_sc[...] += wsum                                          # (1, C2)

    # Finalize the attention output on the last N-tile only (single HBM write).
    @pl.when(n == pl.num_programs(1) - 1)
    def _():
        att_ref[0] = acc_sc[...] / l_sc[...]


def _choose_group_tile(G, cap):
    """Largest multiple of 8 that divides G and is <= cap (fallback: G)."""
    best = None
    t = 8
    while t <= min(G, cap):
        if G % t == 0:
            best = t
        t += 8
    return best if best is not None else G


def fused_block_pallas(x, w1, b1, w2, b2, att_w, att_b, *, tile_cap):
    """x: (B, T, Cin) -> (pooled (B, T//5, C2) f32, attention (B, C2) f32)."""
    B, T, Cin = x.shape
    C1 = w1.shape[1]
    C2 = w2.shape[1]
    G = T // 5
    tg = _choose_group_tile(G, tile_cap)
    NT = G // tg

    # De-interleave the 5-wide pool groups onto a separate leading axis so the
    # MaxPool2d((1,5)) is a leading-axis max in-kernel (cheap XLA glue here).
    x_d = x.reshape(B, G, 5, Cin).transpose(0, 2, 1, 3)          # (B, 5, G, Cin)
    # Attention bias, lane-dense per tile: [n, i, j] = b[5*(n*tg + i) + j].
    b_d = att_b.reshape(NT, tg, 5)

    pooled, att3 = pl.pallas_call(
        fused_block_kernel,
        out_shape=(jax.ShapeDtypeStruct((B, G, C2), jnp.float32),
                   jax.ShapeDtypeStruct((B, 1, C2), jnp.float32)),
        grid=(B, NT),
        in_specs=[
            pl.BlockSpec((1, 5, tg, Cin), lambda b, n: (b, 0, n, 0)),
            pl.BlockSpec((Cin, C1), lambda b, n: (0, 0)),   # weights: constant
            pl.BlockSpec((1, C1), lambda b, n: (0, 0)),     # index maps -> stay
            pl.BlockSpec((C1, C2), lambda b, n: (0, 0)),    # resident in VMEM
            pl.BlockSpec((1, C2), lambda b, n: (0, 0)),
            pl.BlockSpec((C2, 1), lambda b, n: (0, 0)),
            pl.BlockSpec((1, tg, 5), lambda b, n: (n, 0, 0)),   # lane-dense bias
        ],
        out_specs=(
            pl.BlockSpec((1, tg, C2), lambda b, n: (b, n, 0)),
            pl.BlockSpec((1, 1, C2), lambda b, n: (b, 0, 0)),   # resident accum
        ),
        scratch_shapes=[
            pltpu.VMEM((5, tg, C2), jnp.float32),   # conv outputs for this tile
            pltpu.VMEM((1, 1), jnp.float32),        # softmax denominator
            pltpu.VMEM((1, C2), jnp.float32),       # softmax numerator
        ],
        compiler_params=pltpu.CompilerParams(
            dimension_semantics=("parallel", "arbitrary"),
            vmem_limit_bytes=32 * 1024 * 1024),
    )(x_d, w1, b1, w2, b2, att_w, b_d)
    return pooled, att3[:, 0, :]


# ---------------------------------------------------------------------------
# MLP head: fc1 (K-tiled reduction over D, bf16 weight fed straight to the MXU)
# + ReLU + the matching slice of fc2, split over fc1 output columns so v7x's
# two TensorCores each stream half of fc1_w.
# ---------------------------------------------------------------------------

def mlp_head_kernel(x_ref, w1_ref, b1_ref, w2_ref, o_ref, acc_ref):
    k = pl.program_id(1)

    @pl.when(k == 0)
    def _():
        acc_ref[...] = jnp.zeros_like(acc_ref)

    # bf16 x bf16 slab straight into the MXU; accumulate in f32.
    acc_ref[...] += jnp.dot(x_ref[...], w1_ref[...],
                            preferred_element_type=jnp.float32)

    @pl.when(k == pl.num_programs(1) - 1)
    def _():
        h1 = jnp.maximum(acc_ref[...] + b1_ref[...], 0.0)        # (B, nh_blk)
        o_ref[0] = jnp.dot(h1, w2_ref[...],
                           preferred_element_type=jnp.float32)   # partial fc2


def mlp_head_pallas(x_bf16, w1, b1, w2, *, tk, nc):
    """x_bf16: (B, Dpad) -> partial fc2 activations (nc, B, 1024) f32."""
    B, Dpad = x_bf16.shape
    Nh = w1.shape[1]
    assert Dpad % tk == 0, (Dpad, tk)
    assert Nh % nc == 0, (Nh, nc)
    KT = Dpad // tk
    nh_blk = Nh // nc
    return pl.pallas_call(
        mlp_head_kernel,
        out_shape=jax.ShapeDtypeStruct((nc, B, Nh), jnp.float32),
        grid=(nc, KT),
        in_specs=[
            pl.BlockSpec((B, tk), lambda j, k: (0, k)),
            pl.BlockSpec((tk, nh_blk), lambda j, k: (k, j)),
            pl.BlockSpec((1, nh_blk), lambda j, k: (0, j)),
            pl.BlockSpec((nh_blk, Nh), lambda j, k: (j, 0)),
        ],
        out_specs=pl.BlockSpec((1, B, Nh), lambda j, k: (j, 0, 0)),
        scratch_shapes=[pltpu.VMEM((B, nh_blk), jnp.float32)],
        compiler_params=pltpu.CompilerParams(
            dimension_semantics=("parallel", "arbitrary"),
            vmem_limit_bytes=32 * 1024 * 1024),
    )(x_bf16, w1, b1, w2)


# ---------------------------------------------------------------------------
# Full forward pass
# ---------------------------------------------------------------------------

def palnet_2blk_forward(x_nhwc, params, *, input_shape, output_shape,
                        blk_tile_cap=1000, head_tk=4096, head_nc=2):
    H, W, C = input_shape
    assert W % 25 == 0, "PALNET_2blk pooling requires W % 25 == 0"
    B = x_nhwc.shape[0]
    T1 = H * W
    x = x_nhwc.reshape(B, T1, C).astype(jnp.float32)             # (B, N, C)

    # Block 1: conv + attention + pool, fused.
    pool1, att1 = fused_block_pallas(
        x, params["c1a_w"], params["c1a_b"], params["c1b_w"], params["c1b_b"],
        params["att1_w"], params["att1_b"], tile_cap=blk_tile_cap)

    # Block 2.
    pool2, att2 = fused_block_pallas(
        pool1, params["c2a_w"], params["c2a_b"], params["c2b_w"], params["c2b_b"],
        params["att2_w"], params["att2_b"], tile_cap=blk_tile_cap)

    # PyTorch NCHW flatten is channel-major; pool2 is tiny so this is cheap glue.
    x_flat = jnp.transpose(pool2, (0, 2, 1)).reshape(B, -1)
    feat = jnp.concatenate([att1, att2, x_flat], axis=1)         # (B, D)
    Dpad = params["fc1_w"].shape[0]
    feat = jnp.pad(feat, ((0, 0), (0, Dpad - feat.shape[1])))
    feat = feat.astype(jnp.bfloat16)                             # bf16 x bf16 fc1

    partial = mlp_head_pallas(feat, params["fc1_w"], params["fc1_b"],
                              params["fc2_w"], tk=head_tk, nc=head_nc)
    h2 = jnp.sum(partial, axis=0) + params["fc2_b"]
    # nn.Dropout(0.1) -> identity at inference; fc3 is a tiny XLA matmul.
    out = jnp.dot(h2, params["fc3_w"]) + params["fc3_b"]
    return out.reshape(B, *output_shape)


# ---------------------------------------------------------------------------
# Deterministic parameter init (xavier-normal weights, small random biases so
# every bias path is exercised by the numerical check)
# ---------------------------------------------------------------------------

def init_params(key, input_shape, output_shape, *, head_tk=4096):
    H, W, C = input_shape
    T1 = H * W
    T2 = H * (W // 5)
    G2 = H * (W // 25)
    D = 32 + 64 + G2 * 64
    Dpad = pl.cdiv(D, head_tk) * head_tk
    O = output_shape[0] * output_shape[1]
    ks = jax.random.split(key, 20)

    def xavier(k, shape):
        fan_in, fan_out = shape
        std = (2.0 / (fan_in + fan_out)) ** 0.5
        return (std * jax.random.normal(k, shape)).astype(jnp.float32)

    def bias(k, shape):
        return (0.1 * jax.random.normal(k, shape)).astype(jnp.float32)

    # fc1_w is the big weight: store bf16, rows zero-padded up to Dpad.
    fc1_w = xavier(ks[6], (D, 1024))
    fc1_w = jnp.pad(fc1_w, ((0, Dpad - D), (0, 0))).astype(jnp.bfloat16)

    return {
        "c1a_w": xavier(ks[0], (C, 32)),      "c1a_b": bias(ks[9], (1, 32)),
        "c1b_w": xavier(ks[1], (32, 32)),     "c1b_b": bias(ks[10], (1, 32)),
        "att1_w": xavier(ks[2], (32, 1)),     "att1_b": bias(ks[11], (T1, 1)),
        "c2a_w": xavier(ks[3], (32, 64)),     "c2a_b": bias(ks[12], (1, 64)),
        "c2b_w": xavier(ks[4], (64, 64)),     "c2b_b": bias(ks[13], (1, 64)),
        "att2_w": xavier(ks[5], (64, 1)),     "att2_b": bias(ks[14], (T2, 1)),
        "fc1_w": fc1_w,                       "fc1_b": bias(ks[15], (1, 1024)),
        "fc2_w": xavier(ks[7], (1024, 1024)), "fc2_b": bias(ks[16], (1, 1024)),
        "fc3_w": xavier(ks[8], (1024, O)),    "fc3_b": bias(ks[17], (1, O)),
    }


# ---------------------------------------------------------------------------
# Pure-JAX reference (same math, no Pallas) for the sanity check
# ---------------------------------------------------------------------------

def reference_forward(x_nhwc, params, *, input_shape, output_shape):
    H, W, C = input_shape
    B = x_nhwc.shape[0]
    x = x_nhwc.reshape(B, H * W, C).astype(jnp.float32)

    def conv_block(z, w1, b1, w2, b2):
        h = jax.nn.relu(z @ w1 + b1)
        return jax.nn.relu(h @ w2 + b2)

    def attention(z, w, b):
        e = jnp.tanh(z @ w + b[None])                    # (B, T, 1)
        a = jax.nn.softmax(e, axis=1)
        return jnp.sum(z * a, axis=1)

    def pool5(z):
        B_, N, Cc = z.shape
        return jnp.max(z.reshape(B_, N // 5, 5, Cc), axis=2)

    x1 = conv_block(x, params["c1a_w"], params["c1a_b"],
                    params["c1b_w"], params["c1b_b"])
    att1 = attention(x1, params["att1_w"], params["att1_b"])
    x1p = pool5(x1)
    x2 = conv_block(x1p, params["c2a_w"], params["c2a_b"],
                    params["c2b_w"], params["c2b_b"])
    att2 = attention(x2, params["att2_w"], params["att2_b"])
    x2p = pool5(x2)
    x_flat = jnp.transpose(x2p, (0, 2, 1)).reshape(B, -1)
    feat = jnp.concatenate([att1, att2, x_flat], axis=1)
    Dpad = params["fc1_w"].shape[0]
    feat = jnp.pad(feat, ((0, 0), (0, Dpad - feat.shape[1]))).astype(jnp.bfloat16)
    h1 = jax.nn.relu(jnp.dot(feat, params["fc1_w"],
                             preferred_element_type=jnp.float32)
                     + params["fc1_b"])
    h2 = h1 @ params["fc2_w"] + params["fc2_b"]
    out = h2 @ params["fc3_w"] + params["fc3_b"]
    return out.reshape(B, *output_shape)


# ---------------------------------------------------------------------------

if __name__ == "__main__":
    # Small shapes consistent with the module: (H, W, C) with W % 25 == 0.
    input_shape = (4, 50, 3)        # scaled-down version of the original (50, 500, 3)
    output_shape = (2, 4)
    B = 2
    head_tk = 256                   # small K-tile so the reduction grid has >1 step
                                    # (real-size default is 4096)

    key = jax.random.PRNGKey(0)
    kx, kp = jax.random.split(key)
    x = jax.random.normal(kx, (B,) + input_shape, dtype=jnp.float32)  # (B, H, W, C)
    params = init_params(kp, input_shape, output_shape, head_tk=head_tk)

    # blk_tile_cap=8 forces several N-tiles at this small size so the attention
    # accumulator path is exercised (real-size default is 1000).
    fwd = jax.jit(functools.partial(palnet_2blk_forward,
                                    input_shape=input_shape,
                                    output_shape=output_shape,
                                    blk_tile_cap=8,
                                    head_tk=head_tk,
                                    head_nc=2))
    out = jax.block_until_ready(fwd(x, params))
    assert out.shape == (B,) + tuple(output_shape), out.shape

    ref = reference_forward(x, params, input_shape=input_shape,
                            output_shape=output_shape)
    np.testing.assert_allclose(np.asarray(out), np.asarray(ref),
                               rtol=2e-2, atol=2e-2)

    print("KERNEL_OK")
</pallas_src>

<mosaic_0001>
module attributes {stable_mosaic.version = 11 : i64} {
  func.func @fused_block_kernel(%arg0: i32, %arg1: i32, %arg2: memref<1x5x8x3xf32, #tpu.memory_space<vmem>>, %arg3: memref<3x32xf32, #tpu.memory_space<vmem>>, %arg4: memref<1x32xf32, #tpu.memory_space<vmem>>, %arg5: memref<32x32xf32, #tpu.memory_space<vmem>>, %arg6: memref<1x32xf32, #tpu.memory_space<vmem>>, %arg7: memref<32x1xf32, #tpu.memory_space<vmem>>, %arg8: memref<1x8x5xf32, #tpu.memory_space<vmem>>, %arg9: memref<1x8x32xf32, #tpu.memory_space<vmem>>, %arg10: memref<1x1x32xf32, #tpu.memory_space<vmem>>, %arg11: memref<5x8x32xf32, #tpu.memory_space<vmem>>, %arg12: memref<1x1xf32, #tpu.memory_space<vmem>>, %arg13: memref<1x32xf32, #tpu.memory_space<vmem>>) attributes {dimension_semantics = [#tpu.dimension_semantics<parallel>, #tpu.dimension_semantics<arbitrary>], iteration_bounds = array<i64: 2, 5>, scalar_prefetch = 0 : i64, scratch_operands = 3 : i64, tpu.core_type = #tpu.core_type<tc>, window_params = [{transform_indices = @transform_0, window_bounds = array<i64: 1, 5, 8, 3>}, {pipeline_mode = #tpu.pipeline_mode<synchronous>, transform_indices = @transform_1, window_bounds = array<i64: 3, 32>}, {pipeline_mode = #tpu.pipeline_mode<synchronous>, transform_indices = @transform_2, window_bounds = array<i64: 1, 32>}, {pipeline_mode = #tpu.pipeline_mode<synchronous>, transform_indices = @transform_3, window_bounds = array<i64: 32, 32>}, {pipeline_mode = #tpu.pipeline_mode<synchronous>, transform_indices = @transform_4, window_bounds = array<i64: 1, 32>}, {pipeline_mode = #tpu.pipeline_mode<synchronous>, transform_indices = @transform_5, window_bounds = array<i64: 32, 1>}, {transform_indices = @transform_6, window_bounds = array<i64: 1, 8, 5>}, {transform_indices = @transform_7, window_bounds = array<i64: 1, 8, 32>}, {transform_indices = @transform_8, window_bounds = array<i64: 1, 1, 32>}]} {
    %c0_i32 = arith.constant 0 : i32
    %0 = arith.cmpi eq, %arg1, %c0_i32 : i32
    %1 = arith.extui %0 : i1 to i32
    %c0_i32_0 = arith.constant 0 : i32
    %2 = arith.cmpi ne, %1, %c0_i32_0 : i32
    scf.if %2 {
      %cst_104 = arith.constant 0.000000e+00 : f32
      %196 = vector.broadcast %cst_104 : f32 to vector<1x1xf32>
      %c0_105 = arith.constant 0 : index
      %c0_106 = arith.constant 0 : index
      %197 = vector.load %arg12[%c0_105, %c0_106] : memref<1x1xf32, #tpu.memory_space<vmem>>, vector<1x1xf32>
      tpu.vector_store %arg12[%c0_105, %c0_106], %196 {strides = array<i32>} : memref<1x1xf32, #tpu.memory_space<vmem>>, vector<1x1xf32>,
      %cst_107 = arith.constant 0.000000e+00 : f32
      %198 = vector.broadcast %cst_107 : f32 to vector<1x32xf32>
      %c0_108 = arith.constant 0 : index
      %c0_109 = arith.constant 0 : index
      %199 = vector.load %arg13[%c0_108, %c0_109] : memref<1x32xf32, #tpu.memory_space<vmem>>, vector<1x32xf32>
      tpu.vector_store %arg13[%c0_108, %c0_109], %198 {strides = array<i32>} : memref<1x32xf32, #tpu.memory_space<vmem>>, vector<1x32xf32>,
    } else {
    }
    %c0 = arith.constant 0 : index
    %c0_1 = arith.constant 0 : index
    %3 = vector.load %arg3[%c0, %c0_1] : memref<3x32xf32, #tpu.memory_space<vmem>>, vector<3x32xf32>
    %c0_2 = arith.constant 0 : index
    %c0_3 = arith.constant 0 : index
    %4 = vector.load %arg4[%c0_2, %c0_3] : memref<1x32xf32, #tpu.memory_space<vmem>>, vector<1x32xf32>
    %c0_4 = arith.constant 0 : index
    %c0_5 = arith.constant 0 : index
    %5 = vector.load %arg5[%c0_4, %c0_5] : memref<32x32xf32, #tpu.memory_space<vmem>>, vector<32x32xf32>
    %c0_6 = arith.constant 0 : index
    %c0_7 = arith.constant 0 : index
    %6 = vector.load %arg6[%c0_6, %c0_7] : memref<1x32xf32, #tpu.memory_space<vmem>>, vector<1x32xf32>
    %c0_8 = arith.constant 0 : index
    %c0_9 = arith.constant 0 : index
    %7 = vector.load %arg7[%c0_8, %c0_9] : memref<32x1xf32, #tpu.memory_space<vmem>>, vector<32x1xf32>
    %c0_10 = arith.constant 0 : index
    %c0_11 = arith.constant 0 : index
    %c0_12 = arith.constant 0 : index
    %c0_13 = arith.constant 0 : index
    %8 = vector.load %arg2[%c0_10, %c0_11, %c0_12, %c0_13] : memref<1x5x8x3xf32, #tpu.memory_space<vmem>>, vector<1x1x8x3xf32>
    %9 = vector.shape_cast %8 : vector<1x1x8x3xf32> to vector<8x3xf32>
    %cst = arith.constant dense<0.000000e+00> : vector<8x32xf32>
    %10 = tpu.matmul %9, %3, %cst {dimension_numbers = #tpu.dot_dimension_numbers<[1], [0], [0], [1], [0, 0, 1, 1], [], []>} : vector<8x3xf32>, vector<3x32xf32>, vector<8x32xf32> -> vector<8x32xf32>
    %11 = vector.broadcast %4 : vector<1x32xf32> to vector<8x32xf32>
    %12 = arith.addf %10, %11 : vector<8x32xf32>
    %cst_14 = arith.constant 0.000000e+00 : f32
    %13 = vector.broadcast %cst_14 : f32 to vector<8x32xf32>
    %14 = arith.maximumf %12, %13 : vector<8x32xf32>
    %cst_15 = arith.constant dense<0.000000e+00> : vector<8x32xf32>
    %15 = tpu.matmul %14, %5, %cst_15 {dimension_numbers = #tpu.dot_dimension_numbers<[1], [0], [0], [1], [0, 0, 1, 1], [], []>} : vector<8x32xf32>, vector<32x32xf32>, vector<8x32xf32> -> vector<8x32xf32>
    %16 = vector.broadcast %6 : vector<1x32xf32> to vector<8x32xf32>
    %17 = arith.addf %15, %16 : vector<8x32xf32>
    %cst_16 = arith.constant 0.000000e+00 : f32
    %18 = vector.broadcast %cst_16 : f32 to vector<8x32xf32>
    %19 = arith.maximumf %17, %18 : vector<8x32xf32>
    %c0_17 = arith.constant 0 : index
    %c0_18 = arith.constant 0 : index
    %c0_19 = arith.constant 0 : index
    %20 = vector.load %arg11[%c0_17, %c0_18, %c0_19] : memref<5x8x32xf32, #tpu.memory_space<vmem>>, vector<1x8x32xf32>
    %21 = vector.shape_cast %20 : vector<1x8x32xf32> to vector<8x32xf32>
    %22 = vector.shape_cast %19 : vector<8x32xf32> to vector<1x8x32xf32>
    tpu.vector_store %arg11[%c0_17, %c0_18, %c0_19], %22 {strides = array<i32>} : memref<5x8x32xf32, #tpu.memory_space<vmem>>, vector<1x8x32xf32>,
    %23 = tpu.iota {dimensions = array<i32: 1>} : vector<1x5xi32>
    %c0_i32_20 = arith.constant 0 : i32
    %24 = vector.broadcast %c0_i32_20 : i32 to vector<1x5xi32>
    %25 = arith.cmpi eq, %23, %24 : vector<1x5xi32>
    %26 = arith.extui %25 : vector<1x5xi1> to vector<1x5xi32>
    %27 = arith.sitofp %26 : vector<1x5xi32> to vector<1x5xf32>
    %28 = vector.broadcast %7 : vector<32x1xf32> to vector<32x5xf32>
    %29 = vector.broadcast %27 : vector<1x5xf32> to vector<32x5xf32>
    %30 = arith.mulf %28, %29 : vector<32x5xf32>
    %cst_21 = arith.constant dense<0.000000e+00> : vector<8x5xf32>
    %31 = tpu.matmul %19, %30, %cst_21 {dimension_numbers = #tpu.dot_dimension_numbers<[1], [0], [0], [1], [0, 0, 1, 1], [], []>} : vector<8x32xf32>, vector<32x5xf32>, vector<8x5xf32> -> vector<8x5xf32>
    %c0_22 = arith.constant 0 : index
    %c1 = arith.constant 1 : index
    %c0_23 = arith.constant 0 : index
    %c0_24 = arith.constant 0 : index
    %32 = vector.load %arg2[%c0_22, %c1, %c0_23, %c0_24] : memref<1x5x8x3xf32, #tpu.memory_space<vmem>>, vector<1x1x8x3xf32>
    %33 = vector.shape_cast %32 : vector<1x1x8x3xf32> to vector<8x3xf32>
    %cst_25 = arith.constant dense<0.000000e+00> : vector<8x32xf32>
    %34 = tpu.matmul %33, %3, %cst_25 {dimension_numbers = #tpu.dot_dimension_numbers<[1], [0], [0], [1], [0, 0, 1, 1], [], []>} : vector<8x3xf32>, vector<3x32xf32>, vector<8x32xf32> -> vector<8x32xf32>
    %35 = vector.broadcast %4 : vector<1x32xf32> to vector<8x32xf32>
    %36 = arith.addf %34, %35 : vector<8x32xf32>
    %cst_26 = arith.constant 0.000000e+00 : f32
    %37 = vector.broadcast %cst_26 : f32 to vector<8x32xf32>
    %38 = arith.maximumf %36, %37 : vector<8x32xf32>
    %cst_27 = arith.constant dense<0.000000e+00> : vector<8x32xf32>
    %39 = tpu.matmul %38, %5, %cst_27 {dimension_numbers = #tpu.dot_dimension_numbers<[1], [0], [0], [1], [0, 0, 1, 1], [], []>} : vector<8x32xf32>, vector<32x32xf32>, vector<8x32xf32> -> vector<8x32xf32>
    %40 = vector.broadcast %6 : vector<1x32xf32> to vector<8x32xf32>
    %41 = arith.addf %39, %40 : vector<8x32xf32>
    %cst_28 = arith.constant 0.000000e+00 : f32
    %42 = vector.broadcast %cst_28 : f32 to vector<8x32xf32>
    %43 = arith.maximumf %41, %42 : vector<8x32xf32>
    %c1_29 = arith.constant 1 : index
    %c0_30 = arith.constant 0 : index
    %c0_31 = arith.constant 0 : index
    %44 = vector.load %arg11[%c1_29, %c0_30, %c0_31] : memref<5x8x32xf32, #tpu.memory_space<vmem>>, vector<1x8x32xf32>
    %45 = vector.shape_cast %44 : vector<1x8x32xf32> to vector<8x32xf32>
    %46 = vector.shape_cast %43 : vector<8x32xf32> to vector<1x8x32xf32>
    tpu.vector_store %arg11[%c1_29, %c0_30, %c0_31], %46 {strides = array<i32>} : memref<5x8x32xf32, #tpu.memory_space<vmem>>, vector<1x8x32xf32>,
    %47 = arith.maximumf %19, %43 : vector<8x32xf32>
    %48 = tpu.iota {dimensions = array<i32: 1>} : vector<1x5xi32>
    %c1_i32 = arith.constant 1 : i32
    %49 = vector.broadcast %c1_i32 : i32 to vector<1x5xi32>
    %50 = arith.cmpi eq, %48, %49 : vector<1x5xi32>
    %51 = arith.extui %50 : vector<1x5xi1> to vector<1x5xi32>
    %52 = arith.sitofp %51 : vector<1x5xi32> to vector<1x5xf32>
    %53 = vector.broadcast %7 : vector<32x1xf32> to vector<32x5xf32>
    %54 = vector.broadcast %52 : vector<1x5xf32> to vector<32x5xf32>
    %55 = arith.mulf %53, %54 : vector<32x5xf32>
    %cst_32 = arith.constant dense<0.000000e+00> : vector<8x5xf32>
    %56 = tpu.matmul %43, %55, %cst_32 {dimension_numbers = #tpu.dot_dimension_numbers<[1], [0], [0], [1], [0, 0, 1, 1], [], []>} : vector<8x32xf32>, vector<32x5xf32>, vector<8x5xf32> -> vector<8x5xf32>
    %57 = arith.addf %31, %56 : vector<8x5xf32>
    %c0_33 = arith.constant 0 : index
    %c2 = arith.constant 2 : index
    %c0_34 = arith.constant 0 : index
    %c0_35 = arith.constant 0 : index
    %58 = vector.load %arg2[%c0_33, %c2, %c0_34, %c0_35] : memref<1x5x8x3xf32, #tpu.memory_space<vmem>>, vector<1x1x8x3xf32>
    %59 = vector.shape_cast %58 : vector<1x1x8x3xf32> to vector<8x3xf32>
    %cst_36 = arith.constant dense<0.000000e+00> : vector<8x32xf32>
    %60 = tpu.matmul %59, %3, %cst_36 {dimension_numbers = #tpu.dot_dimension_numbers<[1], [0], [0], [1], [0, 0, 1, 1], [], []>} : vector<8x3xf32>, vector<3x32xf32>, vector<8x32xf32> -> vector<8x32xf32>
    %61 = vector.broadcast %4 : vector<1x32xf32> to vector<8x32xf32>
    %62 = arith.addf %60, %61 : vector<8x32xf32>
    %cst_37 = arith.constant 0.000000e+00 : f32
    %63 = vector.broadcast %cst_37 : f32 to vector<8x32xf32>
    %64 = arith.maximumf %62, %63 : vector<8x32xf32>
    %cst_38 = arith.constant dense<0.000000e+00> : vector<8x32xf32>
    %65 = tpu.matmul %64, %5, %cst_38 {dimension_numbers = #tpu.dot_dimension_numbers<[1], [0], [0], [1], [0, 0, 1, 1], [], []>} : vector<8x32xf32>, vector<32x32xf32>, vector<8x32xf32> -> vector<8x32xf32>
    %66 = vector.broadcast %6 : vector<1x32xf32> to vector<8x32xf32>
    %67 = arith.addf %65, %66 : vector<8x32xf32>
    %cst_39 = arith.constant 0.000000e+00 : f32
    %68 = vector.broadcast %cst_39 : f32 to vector<8x32xf32>
    %69 = arith.maximumf %67, %68 : vector<8x32xf32>
    %c2_40 = arith.constant 2 : index
    %c0_41 = arith.constant 0 : index
    %c0_42 = arith.constant 0 : index
    %70 = vector.load %arg11[%c2_40, %c0_41, %c0_42] : memref<5x8x32xf32, #tpu.memory_space<vmem>>, vector<1x8x32xf32>
    %71 = vector.shape_cast %70 : vector<1x8x32xf32> to vector<8x32xf32>
    %72 = vector.shape_cast %69 : vector<8x32xf32> to vector<1x8x32xf32>
    tpu.vector_store %arg11[%c2_40, %c0_41, %c0_42], %72 {strides = array<i32>} : memref<5x8x32xf32, #tpu.memory_space<vmem>>, vector<1x8x32xf32>,
    %73 = arith.maximumf %47, %69 : vector<8x32xf32>
    %74 = tpu.iota {dimensions = array<i32: 1>} : vector<1x5xi32>
    %c2_i32 = arith.constant 2 : i32
    %75 = vector.broadcast %c2_i32 : i32 to vector<1x5xi32>
    %76 = arith.cmpi eq, %74, %75 : vector<1x5xi32>
    %77 = arith.extui %76 : vector<1x5xi1> to vector<1x5xi32>
    %78 = arith.sitofp %77 : vector<1x5xi32> to vector<1x5xf32>
    %79 = vector.broadcast %7 : vector<32x1xf32> to vector<32x5xf32>
    %80 = vector.broadcast %78 : vector<1x5xf32> to vector<32x5xf32>
    %81 = arith.mulf %79, %80 : vector<32x5xf32>
    %cst_43 = arith.constant dense<0.000000e+00> : vector<8x5xf32>
    %82 = tpu.matmul %69, %81, %cst_43 {dimension_numbers = #tpu.dot_dimension_numbers<[1], [0], [0], [1], [0, 0, 1, 1], [], []>} : vector<8x32xf32>, vector<32x5xf32>, vector<8x5xf32> -> vector<8x5xf32>
    %83 = arith.addf %57, %82 : vector<8x5xf32>
    %c0_44 = arith.constant 0 : index
    %c3 = arith.constant 3 : index
    %c0_45 = arith.constant 0 : index
    %c0_46 = arith.constant 0 : index
    %84 = vector.load %arg2[%c0_44, %c3, %c0_45, %c0_46] : memref<1x5x8x3xf32, #tpu.memory_space<vmem>>, vector<1x1x8x3xf32>
    %85 = vector.shape_cast %84 : vector<1x1x8x3xf32> to vector<8x3xf32>
    %cst_47 = arith.constant dense<0.000000e+00> : vector<8x32xf32>
    %86 = tpu.matmul %85, %3, %cst_47 {dimension_numbers = #tpu.dot_dimension_numbers<[1], [0], [0], [1], [0, 0, 1, 1], [], []>} : vector<8x3xf32>, vector<3x32xf32>, vector<8x32xf32> -> vector<8x32xf32>
    %87 = vector.broadcast %4 : vector<1x32xf32> to vector<8x32xf32>
    %88 = arith.addf %86, %87 : vector<8x32xf32>
    %cst_48 = arith.constant 0.000000e+00 : f32
    %89 = vector.broadcast %cst_48 : f32 to vector<8x32xf32>
    %90 = arith.maximumf %88, %89 : vector<8x32xf32>
    %cst_49 = arith.constant dense<0.000000e+00> : vector<8x32xf32>
    %91 = tpu.matmul %90, %5, %cst_49 {dimension_numbers = #tpu.dot_dimension_numbers<[1], [0], [0], [1], [0, 0, 1, 1], [], []>} : vector<8x32xf32>, vector<32x32xf32>, vector<8x32xf32> -> vector<8x32xf32>
    %92 = vector.broadcast %6 : vector<1x32xf32> to vector<8x32xf32>
    %93 = arith.addf %91, %92 : vector<8x32xf32>
    %cst_50 = arith.constant 0.000000e+00 : f32
    %94 = vector.broadcast %cst_50 : f32 to vector<8x32xf32>
    %95 = arith.maximumf %93, %94 : vector<8x32xf32>
    %c3_51 = arith.constant 3 : index
    %c0_52 = arith.constant 0 : index
    %c0_53 = arith.constant 0 : index
    %96 = vector.load %arg11[%c3_51, %c0_52, %c0_53] : memref<5x8x32xf32, #tpu.memory_space<vmem>>, vector<1x8x32xf32>
    %97 = vector.shape_cast %96 : vector<1x8x32xf32> to vector<8x32xf32>
    %98 = vector.shape_cast %95 : vector<8x32xf32> to vector<1x8x32xf32>
    tpu.vector_store %arg11[%c3_51, %c0_52, %c0_53], %98 {strides = array<i32>} : memref<5x8x32xf32, #tpu.memory_space<vmem>>, vector<1x8x32xf32>,
    %99 = arith.maximumf %73, %95 : vector<8x32xf32>
    %100 = tpu.iota {dimensions = array<i32: 1>} : vector<1x5xi32>
    %c3_i32 = arith.constant 3 : i32
    %101 = vector.broadcast %c3_i32 : i32 to vector<1x5xi32>
    %102 = arith.cmpi eq, %100, %101 : vector<1x5xi32>
    %103 = arith.extui %102 : vector<1x5xi1> to vector<1x5xi32>
    %104 = arith.sitofp %103 : vector<1x5xi32> to vector<1x5xf32>
    %105 = vector.broadcast %7 : vector<32x1xf32> to vector<32x5xf32>
    %106 = vector.broadcast %104 : vector<1x5xf32> to vector<32x5xf32>
    %107 = arith.mulf %105, %106 : vector<32x5xf32>
    %cst_54 = arith.constant dense<0.000000e+00> : vector<8x5xf32>
    %108 = tpu.matmul %95, %107, %cst_54 {dimension_numbers = #tpu.dot_dimension_numbers<[1], [0], [0], [1], [0, 0, 1, 1], [], []>} : vector<8x32xf32>, vector<32x5xf32>, vector<8x5xf32> -> vector<8x5xf32>
    %109 = arith.addf %83, %108 : vector<8x5xf32>
    %c0_55 = arith.constant 0 : index
    %c4 = arith.constant 4 : index
    %c0_56 = arith.constant 0 : index
    %c0_57 = arith.constant 0 : index
    %110 = vector.load %arg2[%c0_55, %c4, %c0_56, %c0_57] : memref<1x5x8x3xf32, #tpu.memory_space<vmem>>, vector<1x1x8x3xf32>
    %111 = vector.shape_cast %110 : vector<1x1x8x3xf32> to vector<8x3xf32>
    %cst_58 = arith.constant dense<0.000000e+00> : vector<8x32xf32>
    %112 = tpu.matmul %111, %3, %cst_58 {dimension_numbers = #tpu.dot_dimension_numbers<[1], [0], [0], [1], [0, 0, 1, 1], [], []>} : vector<8x3xf32>, vector<3x32xf32>, vector<8x32xf32> -> vector<8x32xf32>
    %113 = vector.broadcast %4 : vector<1x32xf32> to vector<8x32xf32>
    %114 = arith.addf %112, %113 : vector<8x32xf32>
    %cst_59 = arith.constant 0.000000e+00 : f32
    %115 = vector.broadcast %cst_59 : f32 to vector<8x32xf32>
    %116 = arith.maximumf %114, %115 : vector<8x32xf32>
    %cst_60 = arith.constant dense<0.000000e+00> : vector<8x32xf32>
    %117 = tpu.matmul %116, %5, %cst_60 {dimension_numbers = #tpu.dot_dimension_numbers<[1], [0], [0], [1], [0, 0, 1, 1], [], []>} : vector<8x32xf32>, vector<32x32xf32>, vector<8x32xf32> -> vector<8x32xf32>
    %118 = vector.broadcast %6 : vector<1x32xf32> to vector<8x32xf32>
    %119 = arith.addf %117, %118 : vector<8x32xf32>
    %cst_61 = arith.constant 0.000000e+00 : f32
    %120 = vector.broadcast %cst_61 : f32 to vector<8x32xf32>
    %121 = arith.maximumf %119, %120 : vector<8x32xf32>
    %c4_62 = arith.constant 4 : index
    %c0_63 = arith.constant 0 : index
    %c0_64 = arith.constant 0 : index
    %122 = vector.load %arg11[%c4_62, %c0_63, %c0_64] : memref<5x8x32xf32, #tpu.memory_space<vmem>>, vector<1x8x32xf32>
    %123 = vector.shape_cast %122 : vector<1x8x32xf32> to vector<8x32xf32>
    %124 = vector.shape_cast %121 : vector<8x32xf32> to vector<1x8x32xf32>
    tpu.vector_store %arg11[%c4_62, %c0_63, %c0_64], %124 {strides = array<i32>} : memref<5x8x32xf32, #tpu.memory_space<vmem>>, vector<1x8x32xf32>,
    %125 = arith.maximumf %99, %121 : vector<8x32xf32>
    %126 = tpu.iota {dimensions = array<i32: 1>} : vector<1x5xi32>
    %c4_i32 = arith.constant 4 : i32
    %127 = vector.broadcast %c4_i32 : i32 to vector<1x5xi32>
    %128 = arith.cmpi eq, %126, %127 : vector<1x5xi32>
    %129 = arith.extui %128 : vector<1x5xi1> to vector<1x5xi32>
    %130 = arith.sitofp %129 : vector<1x5xi32> to vector<1x5xf32>
    %131 = vector.broadcast %7 : vector<32x1xf32> to vector<32x5xf32>
    %132 = vector.broadcast %130 : vector<1x5xf32> to vector<32x5xf32>
    %133 = arith.mulf %131, %132 : vector<32x5xf32>
    %cst_65 = arith.constant dense<0.000000e+00> : vector<8x5xf32>
    %134 = tpu.matmul %121, %133, %cst_65 {dimension_numbers = #tpu.dot_dimension_numbers<[1], [0], [0], [1], [0, 0, 1, 1], [], []>} : vector<8x32xf32>, vector<32x5xf32>, vector<8x5xf32> -> vector<8x5xf32>
    %135 = arith.addf %109, %134 : vector<8x5xf32>
    %c0_66 = arith.constant 0 : index
    %c0_67 = arith.constant 0 : index
    %c0_68 = arith.constant 0 : index
    %136 = vector.load %arg9[%c0_66, %c0_67, %c0_68] : memref<1x8x32xf32, #tpu.memory_space<vmem>>, vector<1x8x32xf32>
    %137 = vector.shape_cast %136 : vector<1x8x32xf32> to vector<8x32xf32>
    %138 = vector.shape_cast %125 : vector<8x32xf32> to vector<1x8x32xf32>
    tpu.vector_store %arg9[%c0_66, %c0_67, %c0_68], %138 {strides = array<i32>} : memref<1x8x32xf32, #tpu.memory_space<vmem>>, vector<1x8x32xf32>,
    %c0_69 = arith.constant 0 : index
    %c0_70 = arith.constant 0 : index
    %c0_71 = arith.constant 0 : index
    %139 = vector.load %arg8[%c0_69, %c0_70, %c0_71] : memref<1x8x5xf32, #tpu.memory_space<vmem>>, vector<1x8x5xf32>
    %140 = vector.shape_cast %139 : vector<1x8x5xf32> to vector<8x5xf32>
    %141 = arith.addf %135, %140 : vector<8x5xf32>
    %142 = math.tanh %141 : vector<8x5xf32>
    %143 = math.exp %142 : vector<8x5xf32>
    %c0_72 = arith.constant 0 : index
    %c0_73 = arith.constant 0 : index
    %144 = vector.load %arg12[%c0_72, %c0_73] : memref<1x1xf32, #tpu.memory_space<vmem>>, vector<1x1xf32>
    %cst_74 = arith.constant dense<0.000000e+00> : vector<8xf32>
    %145 = vector.multi_reduction <add>, %143, %cst_74 [1] : vector<8x5xf32> to vector<8xf32>
    %146 = vector.shape_cast %145 : vector<8xf32> to vector<8x1xf32>
    %cst_75 = arith.constant dense<0.000000e+00> : vector<1xf32>
    %147 = vector.multi_reduction <add>, %146, %cst_75 [0] : vector<8x1xf32> to vector<1xf32>
    %148 = vector.shape_cast %147 : vector<1xf32> to vector<1x1xf32>
    %149 = arith.addf %144, %148 : vector<1x1xf32>
    %c0_76 = arith.constant 0 : index
    %c0_77 = arith.constant 0 : index
    %150 = vector.load %arg12[%c0_76, %c0_77] : memref<1x1xf32, #tpu.memory_space<vmem>>, vector<1x1xf32>
    tpu.vector_store %arg12[%c0_76, %c0_77], %149 {strides = array<i32>} : memref<1x1xf32, #tpu.memory_space<vmem>>, vector<1x1xf32>,
    %c0_78 = arith.constant 0 : index
    %c0_79 = arith.constant 0 : index
    %c0_80 = arith.constant 0 : index
    %151 = vector.load %arg11[%c0_78, %c0_79, %c0_80] : memref<5x8x32xf32, #tpu.memory_space<vmem>>, vector<1x8x32xf32>
    %152 = vector.shape_cast %151 : vector<1x8x32xf32> to vector<8x32xf32>
    %153 = vector.extract_strided_slice %143 {offsets = [0, 0], sizes = [8, 1], strides = [1, 1]} : vector<8x5xf32> to vector<8x1xf32>
    %154 = vector.broadcast %153 : vector<8x1xf32> to vector<8x32xf32>
    %155 = arith.mulf %152, %154 : vector<8x32xf32>
    %cst_81 = arith.constant dense<0.000000e+00> : vector<32xf32>
    %156 = vector.multi_reduction <add>, %155, %cst_81 [0] : vector<8x32xf32> to vector<32xf32>
    %157 = vector.shape_cast %156 : vector<32xf32> to vector<1x32xf32>
    %c1_82 = arith.constant 1 : index
    %c0_83 = arith.constant 0 : index
    %c0_84 = arith.constant 0 : index
    %158 = vector.load %arg11[%c1_82, %c0_83, %c0_84] : memref<5x8x32xf32, #tpu.memory_space<vmem>>, vector<1x8x32xf32>
    %159 = vector.shape_cast %158 : vector<1x8x32xf32> to vector<8x32xf32>
    %160 = vector.extract_strided_slice %143 {offsets = [0, 1], sizes = [8, 1], strides = [1, 1]} : vector<8x5xf32> to vector<8x1xf32>
    %161 = vector.broadcast %160 : vector<8x1xf32> to vector<8x32xf32>
    %162 = arith.mulf %159, %161 : vector<8x32xf32>
    %cst_85 = arith.constant dense<0.000000e+00> : vector<32xf32>
    %163 = vector.multi_reduction <add>, %162, %cst_85 [0] : vector<8x32xf32> to vector<32xf32>
    %164 = vector.shape_cast %163 : vector<32xf32> to vector<1x32xf32>
    %165 = arith.addf %157, %164 : vector<1x32xf32>
    %c2_86 = arith.constant 2 : index
    %c0_87 = arith.constant 0 : index
    %c0_88 = arith.constant 0 : index
    %166 = vector.load %arg11[%c2_86, %c0_87, %c0_88] : memref<5x8x32xf32, #tpu.memory_space<vmem>>, vector<1x8x32xf32>
    %167 = vector.shape_cast %166 : vector<1x8x32xf32> to vector<8x32xf32>
    %168 = vector.extract_strided_slice %143 {offsets = [0, 2], sizes = [8, 1], strides = [1, 1]} : vector<8x5xf32> to vector<8x1xf32>
    %169 = vector.broadcast %168 : vector<8x1xf32> to vector<8x32xf32>
    %170 = arith.mulf %167, %169 : vector<8x32xf32>
    %cst_89 = arith.constant dense<0.000000e+00> : vector<32xf32>
    %171 = vector.multi_reduction <add>, %170, %cst_89 [0] : vector<8x32xf32> to vector<32xf32>
    %172 = vector.shape_cast %171 : vector<32xf32> to vector<1x32xf32>
    %173 = arith.addf %165, %172 : vector<1x32xf32>
    %c3_90 = arith.constant 3 : index
    %c0_91 = arith.constant 0 : index
    %c0_92 = arith.constant 0 : index
    %174 = vector.load %arg11[%c3_90, %c0_91, %c0_92] : memref<5x8x32xf32, #tpu.memory_space<vmem>>, vector<1x8x32xf32>
    %175 = vector.shape_cast %174 : vector<1x8x32xf32> to vector<8x32xf32>
    %176 = vector.extract_strided_slice %143 {offsets = [0, 3], sizes = [8, 1], strides = [1, 1]} : vector<8x5xf32> to vector<8x1xf32>
    %177 = vector.broadcast %176 : vector<8x1xf32> to vector<8x32xf32>
    %178 = arith.mulf %175, %177 : vector<8x32xf32>
    %cst_93 = arith.constant dense<0.000000e+00> : vector<32xf32>
    %179 = vector.multi_reduction <add>, %178, %cst_93 [0] : vector<8x32xf32> to vector<32xf32>
    %180 = vector.shape_cast %179 : vector<32xf32> to vector<1x32xf32>
    %181 = arith.addf %173, %180 : vector<1x32xf32>
    %c4_94 = arith.constant 4 : index
    %c0_95 = arith.constant 0 : index
    %c0_96 = arith.constant 0 : index
    %182 = vector.load %arg11[%c4_94, %c0_95, %c0_96] : memref<5x8x32xf32, #tpu.memory_space<vmem>>, vector<1x8x32xf32>
    %183 = vector.shape_cast %182 : vector<1x8x32xf32> to vector<8x32xf32>
    %184 = vector.extract_strided_slice %143 {offsets = [0, 4], sizes = [8, 1], strides = [1, 1]} : vector<8x5xf32> to vector<8x1xf32>
    %185 = vector.broadcast %184 : vector<8x1xf32> to vector<8x32xf32>
    %186 = arith.mulf %183, %185 : vector<8x32xf32>
    %cst_97 = arith.constant dense<0.000000e+00> : vector<32xf32>
    %187 = vector.multi_reduction <add>, %186, %cst_97 [0] : vector<8x32xf32> to vector<32xf32>
    %188 = vector.shape_cast %187 : vector<32xf32> to vector<1x32xf32>
    %189 = arith.addf %181, %188 : vector<1x32xf32>
    %c0_98 = arith.constant 0 : index
    %c0_99 = arith.constant 0 : index
    %190 = vector.load %arg13[%c0_98, %c0_99] : memref<1x32xf32, #tpu.memory_space<vmem>>, vector<1x32xf32>
    %191 = arith.addf %190, %189 : vector<1x32xf32>
    %c0_100 = arith.constant 0 : index
    %c0_101 = arith.constant 0 : index
    %192 = vector.load %arg13[%c0_100, %c0_101] : memref<1x32xf32, #tpu.memory_space<vmem>>, vector<1x32xf32>
    tpu.vector_store %arg13[%c0_100, %c0_101], %191 {strides = array<i32>} : memref<1x32xf32, #tpu.memory_space<vmem>>, vector<1x32xf32>,
    %c4_i32_102 = arith.constant 4 : i32
    %193 = arith.cmpi eq, %arg1, %c4_i32_102 : i32
    %194 = arith.extui %193 : i1 to i32
    %c0_i32_103 = arith.constant 0 : i32
    %195 = arith.cmpi ne, %194, %c0_i32_103 : i32
    scf.if %195 {
      %c0_104 = arith.constant 0 : index
      %c0_105 = arith.constant 0 : index
      %196 = vector.load %arg13[%c0_104, %c0_105] : memref<1x32xf32, #tpu.memory_space<vmem>>, vector<1x32xf32>
      %c0_106 = arith.constant 0 : index
      %c0_107 = arith.constant 0 : index
      %197 = vector.load %arg12[%c0_106, %c0_107] : memref<1x1xf32, #tpu.memory_space<vmem>>, vector<1x1xf32>
      %198 = vector.broadcast %197 : vector<1x1xf32> to vector<1x32xf32>
      %199 = arith.divf %196, %198 : vector<1x32xf32>
      %c0_108 = arith.constant 0 : index
      %c0_109 = arith.constant 0 : index
      %c0_110 = arith.constant 0 : index
      %200 = vector.load %arg10[%c0_108, %c0_109, %c0_110] : memref<1x1x32xf32, #tpu.memory_space<vmem>>, vector<1x1x32xf32>
      %201 = vector.shape_cast %200 : vector<1x1x32xf32> to vector<1x32xf32>
      %202 = vector.shape_cast %199 : vector<1x32xf32> to vector<1x1x32xf32>
      tpu.vector_store %arg10[%c0_108, %c0_109, %c0_110], %202 {strides = array<i32>} : memref<1x1x32xf32, #tpu.memory_space<vmem>>, vector<1x1x32xf32>,
    } else {
    }
    return
  }
  func.func @transform_0(%arg0: i32, %arg1: i32) -> (i32, i32, i32, i32) {
    %c0_i32 = arith.constant 0 : i32
    %c0_i32_0 = arith.constant 0 : i32
    %c0_i32_1 = arith.constant 0 : i32
    return %arg0, %c0_i32, %arg1, %c0_i32_0 : i32, i32, i32, i32
  }
  func.func @transform_1(%arg0: i32, %arg1: i32) -> (i32, i32) {
    %c0_i32 = arith.constant 0 : i32
    %c0_i32_0 = arith.constant 0 : i32
    %c0_i32_1 = arith.constant 0 : i32
    return %c0_i32, %c0_i32_0 : i32, i32
  }
  func.func @transform_2(%arg0: i32, %arg1: i32) -> (i32, i32) {
    %c0_i32 = arith.constant 0 : i32
    %c0_i32_0 = arith.constant 0 : i32
    %c0_i32_1 = arith.constant 0 : i32
    return %c0_i32, %c0_i32_0 : i32, i32
  }
  func.func @transform_3(%arg0: i32, %arg1: i32) -> (i32, i32) {
    %c0_i32 = arith.constant 0 : i32
    %c0_i32_0 = arith.constant 0 : i32
    %c0_i32_1 = arith.constant 0 : i32
    return %c0_i32, %c0_i32_0 : i32, i32
  }
  func.func @transform_4(%arg0: i32, %arg1: i32) -> (i32, i32) {
    %c0_i32 = arith.constant 0 : i32
    %c0_i32_0 = arith.constant 0 : i32
    %c0_i32_1 = arith.constant 0 : i32
    return %c0_i32, %c0_i32_0 : i32, i32
  }
  func.func @transform_5(%arg0: i32, %arg1: i32) -> (i32, i32) {
    %c0_i32 = arith.constant 0 : i32
    %c0_i32_0 = arith.constant 0 : i32
    %c0_i32_1 = arith.constant 0 : i32
    return %c0_i32, %c0_i32_0 : i32, i32
  }
  func.func @transform_6(%arg0: i32, %arg1: i32) -> (i32, i32, i32) {
    %c0_i32 = arith.constant 0 : i32
    %c0_i32_0 = arith.constant 0 : i32
    %c0_i32_1 = arith.constant 0 : i32
    return %arg1, %c0_i32, %c0_i32_0 : i32, i32, i32
  }
  func.func @transform_7(%arg0: i32, %arg1: i32) -> (i32, i32, i32) {
    %c0_i32 = arith.constant 0 : i32
    %c0_i32_0 = arith.constant 0 : i32
    return %arg0, %arg1, %c0_i32 : i32, i32, i32
  }
  func.func @transform_8(%arg0: i32, %arg1: i32) -> (i32, i32, i32) {
    %c0_i32 = arith.constant 0 : i32
    %c0_i32_0 = arith.constant 0 : i32
    %c0_i32_1 = arith.constant 0 : i32
    return %arg0, %c0_i32, %c0_i32_0 : i32, i32, i32
  }
}

module attributes {stable_mosaic.version = 11 : i64} {
  func.func @fused_block_kernel(%arg0: i32, %arg1: i32, %arg2: memref<1x5x8x32xf32, #tpu.memory_space<vmem>>, %arg3: memref<32x64xf32, #tpu.memory_space<vmem>>, %arg4: memref<1x64xf32, #tpu.memory_space<vmem>>, %arg5: memref<64x64xf32, #tpu.memory_space<vmem>>, %arg6: memref<1x64xf32, #tpu.memory_space<vmem>>, %arg7: memref<64x1xf32, #tpu.memory_space<vmem>>, %arg8: memref<1x8x5xf32, #tpu.memory_space<vmem>>, %arg9: memref<1x8x64xf32, #tpu.memory_space<vmem>>, %arg10: memref<1x1x64xf32, #tpu.memory_space<vmem>>, %arg11: memref<5x8x64xf32, #tpu.memory_space<vmem>>, %arg12: memref<1x1xf32, #tpu.memory_space<vmem>>, %arg13: memref<1x64xf32, #tpu.memory_space<vmem>>) attributes {dimension_semantics = [#tpu.dimension_semantics<parallel>, #tpu.dimension_semantics<arbitrary>], iteration_bounds = array<i64: 2, 1>, scalar_prefetch = 0 : i64, scratch_operands = 3 : i64, tpu.core_type = #tpu.core_type<tc>, window_params = [{transform_indices = @transform_0, window_bounds = array<i64: 1, 5, 8, 32>}, {pipeline_mode = #tpu.pipeline_mode<synchronous>, transform_indices = @transform_1, window_bounds = array<i64: 32, 64>}, {pipeline_mode = #tpu.pipeline_mode<synchronous>, transform_indices = @transform_2, window_bounds = array<i64: 1, 64>}, {pipeline_mode = #tpu.pipeline_mode<synchronous>, transform_indices = @transform_3, window_bounds = array<i64: 64, 64>}, {pipeline_mode = #tpu.pipeline_mode<synchronous>, transform_indices = @transform_4, window_bounds = array<i64: 1, 64>}, {pipeline_mode = #tpu.pipeline_mode<synchronous>, transform_indices = @transform_5, window_bounds = array<i64: 64, 1>}, {transform_indices = @transform_6, window_bounds = array<i64: 1, 8, 5>}, {transform_indices = @transform_7, window_bounds = array<i64: 1, 8, 64>}, {transform_indices = @transform_8, window_bounds = array<i64: 1, 1, 64>}]} {
    %c0_i32 = arith.constant 0 : i32
    %0 = arith.cmpi eq, %arg1, %c0_i32 : i32
    %1 = arith.extui %0 : i1 to i32
    %c0_i32_0 = arith.constant 0 : i32
    %2 = arith.cmpi ne, %1, %c0_i32_0 : i32
    scf.if %2 {
      %cst_104 = arith.constant 0.000000e+00 : f32
      %196 = vector.broadcast %cst_104 : f32 to vector<1x1xf32>
      %c0_105 = arith.constant 0 : index
      %c0_106 = arith.constant 0 : index
      %197 = vector.load %arg12[%c0_105, %c0_106] : memref<1x1xf32, #tpu.memory_space<vmem>>, vector<1x1xf32>
      tpu.vector_store %arg12[%c0_105, %c0_106], %196 {strides = array<i32>} : memref<1x1xf32, #tpu.memory_space<vmem>>, vector<1x1xf32>,
      %cst_107 = arith.constant 0.000000e+00 : f32
      %198 = vector.broadcast %cst_107 : f32 to vector<1x64xf32>
      %c0_108 = arith.constant 0 : index
      %c0_109 = arith.constant 0 : index
      %199 = vector.load %arg13[%c0_108, %c0_109] : memref<1x64xf32, #tpu.memory_space<vmem>>, vector<1x64xf32>
      tpu.vector_store %arg13[%c0_108, %c0_109], %198 {strides = array<i32>} : memref<1x64xf32, #tpu.memory_space<vmem>>, vector<1x64xf32>,
    } else {
    }
    %c0 = arith.constant 0 : index
    %c0_1 = arith.constant 0 : index
    %3 = vector.load %arg3[%c0, %c0_1] : memref<32x64xf32, #tpu.memory_space<vmem>>, vector<32x64xf32>
    %c0_2 = arith.constant 0 : index
    %c0_3 = arith.constant 0 : index
    %4 = vector.load %arg4[%c0_2, %c0_3] : memref<1x64xf32, #tpu.memory_space<vmem>>, vector<1x64xf32>
    %c0_4 = arith.constant 0 : index
    %c0_5 = arith.constant 0 : index
    %5 = vector.load %arg5[%c0_4, %c0_5] : memref<64x64xf32, #tpu.memory_space<vmem>>, vector<64x64xf32>
    %c0_6 = arith.constant 0 : index
    %c0_7 = arith.constant 0 : index
    %6 = vector.load %arg6[%c0_6, %c0_7] : memref<1x64xf32, #tpu.memory_space<vmem>>, vector<1x64xf32>
    %c0_8 = arith.constant 0 : index
    %c0_9 = arith.constant 0 : index
    %7 = vector.load %arg7[%c0_8, %c0_9] : memref<64x1xf32, #tpu.memory_space<vmem>>, vector<64x1xf32>
    %c0_10 = arith.constant 0 : index
    %c0_11 = arith.constant 0 : index
    %c0_12 = arith.constant 0 : index
    %c0_13 = arith.constant 0 : index
    %8 = vector.load %arg2[%c0_10, %c0_11, %c0_12, %c0_13] : memref<1x5x8x32xf32, #tpu.memory_space<vmem>>, vector<1x1x8x32xf32>
    %9 = vector.shape_cast %8 : vector<1x1x8x32xf32> to vector<8x32xf32>
    %cst = arith.constant dense<0.000000e+00> : vector<8x64xf32>
    %10 = tpu.matmul %9, %3, %cst {dimension_numbers = #tpu.dot_dimension_numbers<[1], [0], [0], [1], [0, 0, 1, 1], [], []>} : vector<8x32xf32>, vector<32x64xf32>, vector<8x64xf32> -> vector<8x64xf32>
    %11 = vector.broadcast %4 : vector<1x64xf32> to vector<8x64xf32>
    %12 = arith.addf %10, %11 : vector<8x64xf32>
    %cst_14 = arith.constant 0.000000e+00 : f32
    %13 = vector.broadcast %cst_14 : f32 to vector<8x64xf32>
    %14 = arith.maximumf %12, %13 : vector<8x64xf32>
    %cst_15 = arith.constant dense<0.000000e+00> : vector<8x64xf32>
    %15 = tpu.matmul %14, %5, %cst_15 {dimension_numbers = #tpu.dot_dimension_numbers<[1], [0], [0], [1], [0, 0, 1, 1], [], []>} : vector<8x64xf32>, vector<64x64xf32>, vector<8x64xf32> -> vector<8x64xf32>
    %16 = vector.broadcast %6 : vector<1x64xf32> to vector<8x64xf32>
    %17 = arith.addf %15, %16 : vector<8x64xf32>
    %cst_16 = arith.constant 0.000000e+00 : f32
    %18 = vector.broadcast %cst_16 : f32 to vector<8x64xf32>
    %19 = arith.maximumf %17, %18 : vector<8x64xf32>
    %c0_17 = arith.constant 0 : index
    %c0_18 = arith.constant 0 : index
    %c0_19 = arith.constant 0 : index
    %20 = vector.load %arg11[%c0_17, %c0_18, %c0_19] : memref<5x8x64xf32, #tpu.memory_space<vmem>>, vector<1x8x64xf32>
    %21 = vector.shape_cast %20 : vector<1x8x64xf32> to vector<8x64xf32>
    %22 = vector.shape_cast %19 : vector<8x64xf32> to vector<1x8x64xf32>
    tpu.vector_store %arg11[%c0_17, %c0_18, %c0_19], %22 {strides = array<i32>} : memref<5x8x64xf32, #tpu.memory_space<vmem>>, vector<1x8x64xf32>,
    %23 = tpu.iota {dimensions = array<i32: 1>} : vector<1x5xi32>
    %c0_i32_20 = arith.constant 0 : i32
    %24 = vector.broadcast %c0_i32_20 : i32 to vector<1x5xi32>
    %25 = arith.cmpi eq, %23, %24 : vector<1x5xi32>
    %26 = arith.extui %25 : vector<1x5xi1> to vector<1x5xi32>
    %27 = arith.sitofp %26 : vector<1x5xi32> to vector<1x5xf32>
    %28 = vector.broadcast %7 : vector<64x1xf32> to vector<64x5xf32>
    %29 = vector.broadcast %27 : vector<1x5xf32> to vector<64x5xf32>
    %30 = arith.mulf %28, %29 : vector<64x5xf32>
    %cst_21 = arith.constant dense<0.000000e+00> : vector<8x5xf32>
    %31 = tpu.matmul %19, %30, %cst_21 {dimension_numbers = #tpu.dot_dimension_numbers<[1], [0], [0], [1], [0, 0, 1, 1], [], []>} : vector<8x64xf32>, vector<64x5xf32>, vector<8x5xf32> -> vector<8x5xf32>
    %c0_22 = arith.constant 0 : index
    %c1 = arith.constant 1 : index
    %c0_23 = arith.constant 0 : index
    %c0_24 = arith.constant 0 : index
    %32 = vector.load %arg2[%c0_22, %c1, %c0_23, %c0_24] : memref<1x5x8x32xf32, #tpu.memory_space<vmem>>, vector<1x1x8x32xf32>
    %33 = vector.shape_cast %32 : vector<1x1x8x32xf32> to vector<8x32xf32>
    %cst_25 = arith.constant dense<0.000000e+00> : vector<8x64xf32>
    %34 = tpu.matmul %33, %3, %cst_25 {dimension_numbers = #tpu.dot_dimension_numbers<[1], [0], [0], [1], [0, 0, 1, 1], [], []>} : vector<8x32xf32>, vector<32x64xf32>, vector<8x64xf32> -> vector<8x64xf32>
    %35 = vector.broadcast %4 : vector<1x64xf32> to vector<8x64xf32>
    %36 = arith.addf %34, %35 : vector<8x64xf32>
    %cst_26 = arith.constant 0.000000e+00 : f32
    %37 = vector.broadcast %cst_26 : f32 to vector<8x64xf32>
    %38 = arith.maximumf %36, %37 : vector<8x64xf32>
    %cst_27 = arith.constant dense<0.000000e+00> : vector<8x64xf32>
    %39 = tpu.matmul %38, %5, %cst_27 {dimension_numbers = #tpu.dot_dimension_numbers<[1], [0], [0], [1], [0, 0, 1, 1], [], []>} : vector<8x64xf32>, vector<64x64xf32>, vector<8x64xf32> -> vector<8x64xf32>
    %40 = vector.broadcast %6 : vector<1x64xf32> to vector<8x64xf32>
    %41 = arith.addf %39, %40 : vector<8x64xf32>
    %cst_28 = arith.constant 0.000000e+00 : f32
    %42 = vector.broadcast %cst_28 : f32 to vector<8x64xf32>
    %43 = arith.maximumf %41, %42 : vector<8x64xf32>
    %c1_29 = arith.constant 1 : index
    %c0_30 = arith.constant 0 : index
    %c0_31 = arith.constant 0 : index
    %44 = vector.load %arg11[%c1_29, %c0_30, %c0_31] : memref<5x8x64xf32, #tpu.memory_space<vmem>>, vector<1x8x64xf32>
    %45 = vector.shape_cast %44 : vector<1x8x64xf32> to vector<8x64xf32>
    %46 = vector.shape_cast %43 : vector<8x64xf32> to vector<1x8x64xf32>
    tpu.vector_store %arg11[%c1_29, %c0_30, %c0_31], %46 {strides = array<i32>} : memref<5x8x64xf32, #tpu.memory_space<vmem>>, vector<1x8x64xf32>,
    %47 = arith.maximumf %19, %43 : vector<8x64xf32>
    %48 = tpu.iota {dimensions = array<i32: 1>} : vector<1x5xi32>
    %c1_i32 = arith.constant 1 : i32
    %49 = vector.broadcast %c1_i32 : i32 to vector<1x5xi32>
    %50 = arith.cmpi eq, %48, %49 : vector<1x5xi32>
    %51 = arith.extui %50 : vector<1x5xi1> to vector<1x5xi32>
    %52 = arith.sitofp %51 : vector<1x5xi32> to vector<1x5xf32>
    %53 = vector.broadcast %7 : vector<64x1xf32> to vector<64x5xf32>
    %54 = vector.broadcast %52 : vector<1x5xf32> to vector<64x5xf32>
    %55 = arith.mulf %53, %54 : vector<64x5xf32>
    %cst_32 = arith.constant dense<0.000000e+00> : vector<8x5xf32>
    %56 = tpu.matmul %43, %55, %cst_32 {dimension_numbers = #tpu.dot_dimension_numbers<[1], [0], [0], [1], [0, 0, 1, 1], [], []>} : vector<8x64xf32>, vector<64x5xf32>, vector<8x5xf32> -> vector<8x5xf32>
    %57 = arith.addf %31, %56 : vector<8x5xf32>
    %c0_33 = arith.constant 0 : index
    %c2 = arith.constant 2 : index
    %c0_34 = arith.constant 0 : index
    %c0_35 = arith.constant 0 : index
    %58 = vector.load %arg2[%c0_33, %c2, %c0_34, %c0_35] : memref<1x5x8x32xf32, #tpu.memory_space<vmem>>, vector<1x1x8x32xf32>
    %59 = vector.shape_cast %58 : vector<1x1x8x32xf32> to vector<8x32xf32>
    %cst_36 = arith.constant dense<0.000000e+00> : vector<8x64xf32>
    %60 = tpu.matmul %59, %3, %cst_36 {dimension_numbers = #tpu.dot_dimension_numbers<[1], [0], [0], [1], [0, 0, 1, 1], [], []>} : vector<8x32xf32>, vector<32x64xf32>, vector<8x64xf32> -> vector<8x64xf32>
    %61 = vector.broadcast %4 : vector<1x64xf32> to vector<8x64xf32>
    %62 = arith.addf %60, %61 : vector<8x64xf32>
    %cst_37 = arith.constant 0.000000e+00 : f32
    %63 = vector.broadcast %cst_37 : f32 to vector<8x64xf32>
    %64 = arith.maximumf %62, %63 : vector<8x64xf32>
    %cst_38 = arith.constant dense<0.000000e+00> : vector<8x64xf32>
    %65 = tpu.matmul %64, %5, %cst_38 {dimension_numbers = #tpu.dot_dimension_numbers<[1], [0], [0], [1], [0, 0, 1, 1], [], []>} : vector<8x64xf32>, vector<64x64xf32>, vector<8x64xf32> -> vector<8x64xf32>
    %66 = vector.broadcast %6 : vector<1x64xf32> to vector<8x64xf32>
    %67 = arith.addf %65, %66 : vector<8x64xf32>
    %cst_39 = arith.constant 0.000000e+00 : f32
    %68 = vector.broadcast %cst_39 : f32 to vector<8x64xf32>
    %69 = arith.maximumf %67, %68 : vector<8x64xf32>
    %c2_40 = arith.constant 2 : index
    %c0_41 = arith.constant 0 : index
    %c0_42 = arith.constant 0 : index
    %70 = vector.load %arg11[%c2_40, %c0_41, %c0_42] : memref<5x8x64xf32, #tpu.memory_space<vmem>>, vector<1x8x64xf32>
    %71 = vector.shape_cast %70 : vector<1x8x64xf32> to vector<8x64xf32>
    %72 = vector.shape_cast %69 : vector<8x64xf32> to vector<1x8x64xf32>
    tpu.vector_store %arg11[%c2_40, %c0_41, %c0_42], %72 {strides = array<i32>} : memref<5x8x64xf32, #tpu.memory_space<vmem>>, vector<1x8x64xf32>,
    %73 = arith.maximumf %47, %69 : vector<8x64xf32>
    %74 = tpu.iota {dimensions = array<i32: 1>} : vector<1x5xi32>
    %c2_i32 = arith.constant 2 : i32
    %75 = vector.broadcast %c2_i32 : i32 to vector<1x5xi32>
    %76 = arith.cmpi eq, %74, %75 : vector<1x5xi32>
    %77 = arith.extui %76 : vector<1x5xi1> to vector<1x5xi32>
    %78 = arith.sitofp %77 : vector<1x5xi32> to vector<1x5xf32>
    %79 = vector.broadcast %7 : vector<64x1xf32> to vector<64x5xf32>
    %80 = vector.broadcast %78 : vector<1x5xf32> to vector<64x5xf32>
    %81 = arith.mulf %79, %80 : vector<64x5xf32>
    %cst_43 = arith.constant dense<0.000000e+00> : vector<8x5xf32>
    %82 = tpu.matmul %69, %81, %cst_43 {dimension_numbers = #tpu.dot_dimension_numbers<[1], [0], [0], [1], [0, 0, 1, 1], [], []>} : vector<8x64xf32>, vector<64x5xf32>, vector<8x5xf32> -> vector<8x5xf32>
    %83 = arith.addf %57, %82 : vector<8x5xf32>
    %c0_44 = arith.constant 0 : index
    %c3 = arith.constant 3 : index
    %c0_45 = arith.constant 0 : index
    %c0_46 = arith.constant 0 : index
    %84 = vector.load %arg2[%c0_44, %c3, %c0_45, %c0_46] : memref<1x5x8x32xf32, #tpu.memory_space<vmem>>, vector<1x1x8x32xf32>
    %85 = vector.shape_cast %84 : vector<1x1x8x32xf32> to vector<8x32xf32>
    %cst_47 = arith.constant dense<0.000000e+00> : vector<8x64xf32>
    %86 = tpu.matmul %85, %3, %cst_47 {dimension_numbers = #tpu.dot_dimension_numbers<[1], [0], [0], [1], [0, 0, 1, 1], [], []>} : vector<8x32xf32>, vector<32x64xf32>, vector<8x64xf32> -> vector<8x64xf32>
    %87 = vector.broadcast %4 : vector<1x64xf32> to vector<8x64xf32>
    %88 = arith.addf %86, %87 : vector<8x64xf32>
    %cst_48 = arith.constant 0.000000e+00 : f32
    %89 = vector.broadcast %cst_48 : f32 to vector<8x64xf32>
    %90 = arith.maximumf %88, %89 : vector<8x64xf32>
    %cst_49 = arith.constant dense<0.000000e+00> : vector<8x64xf32>
    %91 = tpu.matmul %90, %5, %cst_49 {dimension_numbers = #tpu.dot_dimension_numbers<[1], [0], [0], [1], [0, 0, 1, 1], [], []>} : vector<8x64xf32>, vector<64x64xf32>, vector<8x64xf32> -> vector<8x64xf32>
    %92 = vector.broadcast %6 : vector<1x64xf32> to vector<8x64xf32>
    %93 = arith.addf %91, %92 : vector<8x64xf32>
    %cst_50 = arith.constant 0.000000e+00 : f32
    %94 = vector.broadcast %cst_50 : f32 to vector<8x64xf32>
    %95 = arith.maximumf %93, %94 : vector<8x64xf32>
    %c3_51 = arith.constant 3 : index
    %c0_52 = arith.constant 0 : index
    %c0_53 = arith.constant 0 : index
    %96 = vector.load %arg11[%c3_51, %c0_52, %c0_53] : memref<5x8x64xf32, #tpu.memory_space<vmem>>, vector<1x8x64xf32>
    %97 = vector.shape_cast %96 : vector<1x8x64xf32> to vector<8x64xf32>
    %98 = vector.shape_cast %95 : vector<8x64xf32> to vector<1x8x64xf32>
    tpu.vector_store %arg11[%c3_51, %c0_52, %c0_53], %98 {strides = array<i32>} : memref<5x8x64xf32, #tpu.memory_space<vmem>>, vector<1x8x64xf32>,
    %99 = arith.maximumf %73, %95 : vector<8x64xf32>
    %100 = tpu.iota {dimensions = array<i32: 1>} : vector<1x5xi32>
    %c3_i32 = arith.constant 3 : i32
    %101 = vector.broadcast %c3_i32 : i32 to vector<1x5xi32>
    %102 = arith.cmpi eq, %100, %101 : vector<1x5xi32>
    %103 = arith.extui %102 : vector<1x5xi1> to vector<1x5xi32>
    %104 = arith.sitofp %103 : vector<1x5xi32> to vector<1x5xf32>
    %105 = vector.broadcast %7 : vector<64x1xf32> to vector<64x5xf32>
    %106 = vector.broadcast %104 : vector<1x5xf32> to vector<64x5xf32>
    %107 = arith.mulf %105, %106 : vector<64x5xf32>
    %cst_54 = arith.constant dense<0.000000e+00> : vector<8x5xf32>
    %108 = tpu.matmul %95, %107, %cst_54 {dimension_numbers = #tpu.dot_dimension_numbers<[1], [0], [0], [1], [0, 0, 1, 1], [], []>} : vector<8x64xf32>, vector<64x5xf32>, vector<8x5xf32> -> vector<8x5xf32>
    %109 = arith.addf %83, %108 : vector<8x5xf32>
    %c0_55 = arith.constant 0 : index
    %c4 = arith.constant 4 : index
    %c0_56 = arith.constant 0 : index
    %c0_57 = arith.constant 0 : index
    %110 = vector.load %arg2[%c0_55, %c4, %c0_56, %c0_57] : memref<1x5x8x32xf32, #tpu.memory_space<vmem>>, vector<1x1x8x32xf32>
    %111 = vector.shape_cast %110 : vector<1x1x8x32xf32> to vector<8x32xf32>
    %cst_58 = arith.constant dense<0.000000e+00> : vector<8x64xf32>
    %112 = tpu.matmul %111, %3, %cst_58 {dimension_numbers = #tpu.dot_dimension_numbers<[1], [0], [0], [1], [0, 0, 1, 1], [], []>} : vector<8x32xf32>, vector<32x64xf32>, vector<8x64xf32> -> vector<8x64xf32>
    %113 = vector.broadcast %4 : vector<1x64xf32> to vector<8x64xf32>
    %114 = arith.addf %112, %113 : vector<8x64xf32>
    %cst_59 = arith.constant 0.000000e+00 : f32
    %115 = vector.broadcast %cst_59 : f32 to vector<8x64xf32>
    %116 = arith.maximumf %114, %115 : vector<8x64xf32>
    %cst_60 = arith.constant dense<0.000000e+00> : vector<8x64xf32>
    %117 = tpu.matmul %116, %5, %cst_60 {dimension_numbers = #tpu.dot_dimension_numbers<[1], [0], [0], [1], [0, 0, 1, 1], [], []>} : vector<8x64xf32>, vector<64x64xf32>, vector<8x64xf32> -> vector<8x64xf32>
    %118 = vector.broadcast %6 : vector<1x64xf32> to vector<8x64xf32>
    %119 = arith.addf %117, %118 : vector<8x64xf32>
    %cst_61 = arith.constant 0.000000e+00 : f32
    %120 = vector.broadcast %cst_61 : f32 to vector<8x64xf32>
    %121 = arith.maximumf %119, %120 : vector<8x64xf32>
    %c4_62 = arith.constant 4 : index
    %c0_63 = arith.constant 0 : index
    %c0_64 = arith.constant 0 : index
    %122 = vector.load %arg11[%c4_62, %c0_63, %c0_64] : memref<5x8x64xf32, #tpu.memory_space<vmem>>, vector<1x8x64xf32>
    %123 = vector.shape_cast %122 : vector<1x8x64xf32> to vector<8x64xf32>
    %124 = vector.shape_cast %121 : vector<8x64xf32> to vector<1x8x64xf32>
    tpu.vector_store %arg11[%c4_62, %c0_63, %c0_64], %124 {strides = array<i32>} : memref<5x8x64xf32, #tpu.memory_space<vmem>>, vector<1x8x64xf32>,
    %125 = arith.maximumf %99, %121 : vector<8x64xf32>
    %126 = tpu.iota {dimensions = array<i32: 1>} : vector<1x5xi32>
    %c4_i32 = arith.constant 4 : i32
    %127 = vector.broadcast %c4_i32 : i32 to vector<1x5xi32>
    %128 = arith.cmpi eq, %126, %127 : vector<1x5xi32>
    %129 = arith.extui %128 : vector<1x5xi1> to vector<1x5xi32>
    %130 = arith.sitofp %129 : vector<1x5xi32> to vector<1x5xf32>
    %131 = vector.broadcast %7 : vector<64x1xf32> to vector<64x5xf32>
    %132 = vector.broadcast %130 : vector<1x5xf32> to vector<64x5xf32>
    %133 = arith.mulf %131, %132 : vector<64x5xf32>
    %cst_65 = arith.constant dense<0.000000e+00> : vector<8x5xf32>
    %134 = tpu.matmul %121, %133, %cst_65 {dimension_numbers = #tpu.dot_dimension_numbers<[1], [0], [0], [1], [0, 0, 1, 1], [], []>} : vector<8x64xf32>, vector<64x5xf32>, vector<8x5xf32> -> vector<8x5xf32>
    %135 = arith.addf %109, %134 : vector<8x5xf32>
    %c0_66 = arith.constant 0 : index
    %c0_67 = arith.constant 0 : index
    %c0_68 = arith.constant 0 : index
    %136 = vector.load %arg9[%c0_66, %c0_67, %c0_68] : memref<1x8x64xf32, #tpu.memory_space<vmem>>, vector<1x8x64xf32>
    %137 = vector.shape_cast %136 : vector<1x8x64xf32> to vector<8x64xf32>
    %138 = vector.shape_cast %125 : vector<8x64xf32> to vector<1x8x64xf32>
    tpu.vector_store %arg9[%c0_66, %c0_67, %c0_68], %138 {strides = array<i32>} : memref<1x8x64xf32, #tpu.memory_space<vmem>>, vector<1x8x64xf32>,
    %c0_69 = arith.constant 0 : index
    %c0_70 = arith.constant 0 : index
    %c0_71 = arith.constant 0 : index
    %139 = vector.load %arg8[%c0_69, %c0_70, %c0_71] : memref<1x8x5xf32, #tpu.memory_space<vmem>>, vector<1x8x5xf32>
    %140 = vector.shape_cast %139 : vector<1x8x5xf32> to vector<8x5xf32>
    %141 = arith.addf %135, %140 : vector<8x5xf32>
    %142 = math.tanh %141 : vector<8x5xf32>
    %143 = math.exp %142 : vector<8x5xf32>
    %c0_72 = arith.constant 0 : index
    %c0_73 = arith.constant 0 : index
    %144 = vector.load %arg12[%c0_72, %c0_73] : memref<1x1xf32, #tpu.memory_space<vmem>>, vector<1x1xf32>
    %cst_74 = arith.constant dense<0.000000e+00> : vector<8xf32>
    %145 = vector.multi_reduction <add>, %143, %cst_74 [1] : vector<8x5xf32> to vector<8xf32>
    %146 = vector.shape_cast %145 : vector<8xf32> to vector<8x1xf32>
    %cst_75 = arith.constant dense<0.000000e+00> : vector<1xf32>
    %147 = vector.multi_reduction <add>, %146, %cst_75 [0] : vector<8x1xf32> to vector<1xf32>
    %148 = vector.shape_cast %147 : vector<1xf32> to vector<1x1xf32>
    %149 = arith.addf %144, %148 : vector<1x1xf32>
    %c0_76 = arith.constant 0 : index
    %c0_77 = arith.constant 0 : index
    %150 = vector.load %arg12[%c0_76, %c0_77] : memref<1x1xf32, #tpu.memory_space<vmem>>, vector<1x1xf32>
    tpu.vector_store %arg12[%c0_76, %c0_77], %149 {strides = array<i32>} : memref<1x1xf32, #tpu.memory_space<vmem>>, vector<1x1xf32>,
    %c0_78 = arith.constant 0 : index
    %c0_79 = arith.constant 0 : index
    %c0_80 = arith.constant 0 : index
    %151 = vector.load %arg11[%c0_78, %c0_79, %c0_80] : memref<5x8x64xf32, #tpu.memory_space<vmem>>, vector<1x8x64xf32>
    %152 = vector.shape_cast %151 : vector<1x8x64xf32> to vector<8x64xf32>
    %153 = vector.extract_strided_slice %143 {offsets = [0, 0], sizes = [8, 1], strides = [1, 1]} : vector<8x5xf32> to vector<8x1xf32>
    %154 = vector.broadcast %153 : vector<8x1xf32> to vector<8x64xf32>
    %155 = arith.mulf %152, %154 : vector<8x64xf32>
    %cst_81 = arith.constant dense<0.000000e+00> : vector<64xf32>
    %156 = vector.multi_reduction <add>, %155, %cst_81 [0] : vector<8x64xf32> to vector<64xf32>
    %157 = vector.shape_cast %156 : vector<64xf32> to vector<1x64xf32>
    %c1_82 = arith.constant 1 : index
    %c0_83 = arith.constant 0 : index
    %c0_84 = arith.constant 0 : index
    %158 = vector.load %arg11[%c1_82, %c0_83, %c0_84] : memref<5x8x64xf32, #tpu.memory_space<vmem>>, vector<1x8x64xf32>
    %159 = vector.shape_cast %158 : vector<1x8x64xf32> to vector<8x64xf32>
    %160 = vector.extract_strided_slice %143 {offsets = [0, 1], sizes = [8, 1], strides = [1, 1]} : vector<8x5xf32> to vector<8x1xf32>
    %161 = vector.broadcast %160 : vector<8x1xf32> to vector<8x64xf32>
    %162 = arith.mulf %159, %161 : vector<8x64xf32>
    %cst_85 = arith.constant dense<0.000000e+00> : vector<64xf32>
    %163 = vector.multi_reduction <add>, %162, %cst_85 [0] : vector<8x64xf32> to vector<64xf32>
    %164 = vector.shape_cast %163 : vector<64xf32> to vector<1x64xf32>
    %165 = arith.addf %157, %164 : vector<1x64xf32>
    %c2_86 = arith.constant 2 : index
    %c0_87 = arith.constant 0 : index
    %c0_88 = arith.constant 0 : index
    %166 = vector.load %arg11[%c2_86, %c0_87, %c0_88] : memref<5x8x64xf32, #tpu.memory_space<vmem>>, vector<1x8x64xf32>
    %167 = vector.shape_cast %166 : vector<1x8x64xf32> to vector<8x64xf32>
    %168 = vector.extract_strided_slice %143 {offsets = [0, 2], sizes = [8, 1], strides = [1, 1]} : vector<8x5xf32> to vector<8x1xf32>
    %169 = vector.broadcast %168 : vector<8x1xf32> to vector<8x64xf32>
    %170 = arith.mulf %167, %169 : vector<8x64xf32>
    %cst_89 = arith.constant dense<0.000000e+00> : vector<64xf32>
    %171 = vector.multi_reduction <add>, %170, %cst_89 [0] : vector<8x64xf32> to vector<64xf32>
    %172 = vector.shape_cast %171 : vector<64xf32> to vector<1x64xf32>
    %173 = arith.addf %165, %172 : vector<1x64xf32>
    %c3_90 = arith.constant 3 : index
    %c0_91 = arith.constant 0 : index
    %c0_92 = arith.constant 0 : index
    %174 = vector.load %arg11[%c3_90, %c0_91, %c0_92] : memref<5x8x64xf32, #tpu.memory_space<vmem>>, vector<1x8x64xf32>
    %175 = vector.shape_cast %174 : vector<1x8x64xf32> to vector<8x64xf32>
    %176 = vector.extract_strided_slice %143 {offsets = [0, 3], sizes = [8, 1], strides = [1, 1]} : vector<8x5xf32> to vector<8x1xf32>
    %177 = vector.broadcast %176 : vector<8x1xf32> to vector<8x64xf32>
    %178 = arith.mulf %175, %177 : vector<8x64xf32>
    %cst_93 = arith.constant dense<0.000000e+00> : vector<64xf32>
    %179 = vector.multi_reduction <add>, %178, %cst_93 [0] : vector<8x64xf32> to vector<64xf32>
    %180 = vector.shape_cast %179 : vector<64xf32> to vector<1x64xf32>
    %181 = arith.addf %173, %180 : vector<1x64xf32>
    %c4_94 = arith.constant 4 : index
    %c0_95 = arith.constant 0 : index
    %c0_96 = arith.constant 0 : index
    %182 = vector.load %arg11[%c4_94, %c0_95, %c0_96] : memref<5x8x64xf32, #tpu.memory_space<vmem>>, vector<1x8x64xf32>
    %183 = vector.shape_cast %182 : vector<1x8x64xf32> to vector<8x64xf32>
    %184 = vector.extract_strided_slice %143 {offsets = [0, 4], sizes = [8, 1], strides = [1, 1]} : vector<8x5xf32> to vector<8x1xf32>
    %185 = vector.broadcast %184 : vector<8x1xf32> to vector<8x64xf32>
    %186 = arith.mulf %183, %185 : vector<8x64xf32>
    %cst_97 = arith.constant dense<0.000000e+00> : vector<64xf32>
    %187 = vector.multi_reduction <add>, %186, %cst_97 [0] : vector<8x64xf32> to vector<64xf32>
    %188 = vector.shape_cast %187 : vector<64xf32> to vector<1x64xf32>
    %189 = arith.addf %181, %188 : vector<1x64xf32>
    %c0_98 = arith.constant 0 : index
    %c0_99 = arith.constant 0 : index
    %190 = vector.load %arg13[%c0_98, %c0_99] : memref<1x64xf32, #tpu.memory_space<vmem>>, vector<1x64xf32>
    %191 = arith.addf %190, %189 : vector<1x64xf32>
    %c0_100 = arith.constant 0 : index
    %c0_101 = arith.constant 0 : index
    %192 = vector.load %arg13[%c0_100, %c0_101] : memref<1x64xf32, #tpu.memory_space<vmem>>, vector<1x64xf32>
    tpu.vector_store %arg13[%c0_100, %c0_101], %191 {strides = array<i32>} : memref<1x64xf32, #tpu.memory_space<vmem>>, vector<1x64xf32>,
    %c0_i32_102 = arith.constant 0 : i32
    %193 = arith.cmpi eq, %arg1, %c0_i32_102 : i32
    %194 = arith.extui %193 : i1 to i32
    %c0_i32_103 = arith.constant 0 : i32
    %195 = arith.cmpi ne, %194, %c0_i32_103 : i32
    scf.if %195 {
      %c0_104 = arith.constant 0 : index
      %c0_105 = arith.constant 0 : index
      %196 = vector.load %arg13[%c0_104, %c0_105] : memref<1x64xf32, #tpu.memory_space<vmem>>, vector<1x64xf32>
      %c0_106 = arith.constant 0 : index
      %c0_107 = arith.constant 0 : index
      %197 = vector.load %arg12[%c0_106, %c0_107] : memref<1x1xf32, #tpu.memory_space<vmem>>, vector<1x1xf32>
      %198 = vector.broadcast %197 : vector<1x1xf32> to vector<1x64xf32>
      %199 = arith.divf %196, %198 : vector<1x64xf32>
      %c0_108 = arith.constant 0 : index
      %c0_109 = arith.constant 0 : index
      %c0_110 = arith.constant 0 : index
      %200 = vector.load %arg10[%c0_108, %c0_109, %c0_110] : memref<1x1x64xf32, #tpu.memory_space<vmem>>, vector<1x1x64xf32>
      %201 = vector.shape_cast %200 : vector<1x1x64xf32> to vector<1x64xf32>
      %202 = vector.shape_cast %199 : vector<1x64xf32> to vector<1x1x64xf32>
      tpu.vector_store %arg10[%c0_108, %c0_109, %c0_110], %202 {strides = array<i32>} : memref<1x1x64xf32, #tpu.memory_space<vmem>>, vector<1x1x64xf32>,
    } else {
    }
    return
  }
  func.func @transform_0(%arg0: i32, %arg1: i32) -> (i32, i32, i32, i32) {
    %c0_i32 = arith.constant 0 : i32
    %c0_i32_0 = arith.constant 0 : i32
    %c0_i32_1 = arith.constant 0 : i32
    return %arg0, %c0_i32, %arg1, %c0_i32_0 : i32, i32, i32, i32
  }
  func.func @transform_1(%arg0: i32, %arg1: i32) -> (i32, i32) {
    %c0_i32 = arith.constant 0 : i32
    %c0_i32_0 = arith.constant 0 : i32
    %c0_i32_1 = arith.constant 0 : i32
    return %c0_i32, %c0_i32_0 : i32, i32
  }
  func.func @transform_2(%arg0: i32, %arg1: i32) -> (i32, i32) {
    %c0_i32 = arith.constant 0 : i32
    %c0_i32_0 = arith.constant 0 : i32
    %c0_i32_1 = arith.constant 0 : i32
    return %c0_i32, %c0_i32_0 : i32, i32
  }
  func.func @transform_3(%arg0: i32, %arg1: i32) -> (i32, i32) {
    %c0_i32 = arith.constant 0 : i32
    %c0_i32_0 = arith.constant 0 : i32
    %c0_i32_1 = arith.constant 0 : i32
    return %c0_i32, %c0_i32_0 : i32, i32
  }
  func.func @transform_4(%arg0: i32, %arg1: i32) -> (i32, i32) {
    %c0_i32 = arith.constant 0 : i32
    %c0_i32_0 = arith.constant 0 : i32
    %c0_i32_1 = arith.constant 0 : i32
    return %c0_i32, %c0_i32_0 : i32, i32
  }
  func.func @transform_5(%arg0: i32, %arg1: i32) -> (i32, i32) {
    %c0_i32 = arith.constant 0 : i32
    %c0_i32_0 = arith.constant 0 : i32
    %c0_i32_1 = arith.constant 0 : i32
    return %c0_i32, %c0_i32_0 : i32, i32
  }
  func.func @transform_6(%arg0: i32, %arg1: i32) -> (i32, i32, i32) {
    %c0_i32 = arith.constant 0 : i32
    %c0_i32_0 = arith.constant 0 : i32
    %c0_i32_1 = arith.constant 0 : i32
    return %arg1, %c0_i32, %c0_i32_0 : i32, i32, i32
  }
  func.func @transform_7(%arg0: i32, %arg1: i32) -> (i32, i32, i32) {
    %c0_i32 = arith.constant 0 : i32
    %c0_i32_0 = arith.constant 0 : i32
    return %arg0, %arg1, %c0_i32 : i32, i32, i32
  }
  func.func @transform_8(%arg0: i32, %arg1: i32) -> (i32, i32, i32) {
    %c0_i32 = arith.constant 0 : i32
    %c0_i32_0 = arith.constant 0 : i32
    %c0_i32_1 = arith.constant 0 : i32
    return %arg0, %c0_i32, %c0_i32_0 : i32, i32, i32
  }
}

module attributes {stable_mosaic.version = 11 : i64} {
  func.func @mlp_head_kernel(%arg0: i32, %arg1: i32, %arg2: memref<2x256xbf16, #tpu.memory_space<vmem>>, %arg3: memref<256x512xbf16, #tpu.memory_space<vmem>>, %arg4: memref<1x512xf32, #tpu.memory_space<vmem>>, %arg5: memref<512x1024xf32, #tpu.memory_space<vmem>>, %arg6: memref<1x2x1024xf32, #tpu.memory_space<vmem>>, %arg7: memref<2x512xf32, #tpu.memory_space<vmem>>) attributes {dimension_semantics = [#tpu.dimension_semantics<parallel>, #tpu.dimension_semantics<arbitrary>], iteration_bounds = array<i64: 2, 3>, scalar_prefetch = 0 : i64, scratch_operands = 1 : i64, tpu.core_type = #tpu.core_type<tc>, window_params = [{transform_indices = @transform_0, window_bounds = array<i64: 2, 256>}, {transform_indices = @transform_1, window_bounds = array<i64: 256, 512>}, {transform_indices = @transform_2, window_bounds = array<i64: 1, 512>}, {transform_indices = @transform_3, window_bounds = array<i64: 512, 1024>}, {transform_indices = @transform_4, window_bounds = array<i64: 1, 2, 1024>}]} {
    %c0_i32 = arith.constant 0 : i32
    %0 = arith.cmpi eq, %arg1, %c0_i32 : i32
    %1 = arith.extui %0 : i1 to i32
    %c0_i32_0 = arith.constant 0 : i32
    %2 = arith.cmpi ne, %1, %c0_i32_0 : i32
    scf.if %2 {
      %cst_9 = arith.constant 0.000000e+00 : f32
      %12 = vector.broadcast %cst_9 : f32 to vector<2x512xf32>
      %c0_10 = arith.constant 0 : index
      %c0_11 = arith.constant 0 : index
      %13 = vector.load %arg7[%c0_10, %c0_11] : memref<2x512xf32, #tpu.memory_space<vmem>>, vector<2x512xf32>
      tpu.vector_store %arg7[%c0_10, %c0_11], %12 {strides = array<i32>} : memref<2x512xf32, #tpu.memory_space<vmem>>, vector<2x512xf32>,
    } else {
    }
    %c0 = arith.constant 0 : index
    %c0_1 = arith.constant 0 : index
    %3 = vector.load %arg7[%c0, %c0_1] : memref<2x512xf32, #tpu.memory_space<vmem>>, vector<2x512xf32>
    %c0_2 = arith.constant 0 : index
    %c0_3 = arith.constant 0 : index
    %4 = vector.load %arg2[%c0_2, %c0_3] : memref<2x256xbf16, #tpu.memory_space<vmem>>, vector<2x256xbf16>
    %c0_4 = arith.constant 0 : index
    %c0_5 = arith.constant 0 : index
    %5 = vector.load %arg3[%c0_4, %c0_5] : memref<256x512xbf16, #tpu.memory_space<vmem>>, vector<256x512xbf16>
    %cst = arith.constant dense<0.000000e+00> : vector<2x512xf32>
    %6 = tpu.matmul %4, %5, %cst {dimension_numbers = #tpu.dot_dimension_numbers<[1], [0], [0], [1], [0, 0, 1, 1], [], []>} : vector<2x256xbf16>, vector<256x512xbf16>, vector<2x512xf32> -> vector<2x512xf32>
    %7 = arith.addf %3, %6 : vector<2x512xf32>
    %c0_6 = arith.constant 0 : index
    %c0_7 = arith.constant 0 : index
    %8 = vector.load %arg7[%c0_6, %c0_7] : memref<2x512xf32, #tpu.memory_space<vmem>>, vector<2x512xf32>
    tpu.vector_store %arg7[%c0_6, %c0_7], %7 {strides = array<i32>} : memref<2x512xf32, #tpu.memory_space<vmem>>, vector<2x512xf32>,
    %c2_i32 = arith.constant 2 : i32
    %9 = arith.cmpi eq, %arg1, %c2_i32 : i32
    %10 = arith.extui %9 : i1 to i32
    %c0_i32_8 = arith.constant 0 : i32
    %11 = arith.cmpi ne, %10, %c0_i32_8 : i32
    scf.if %11 {
      %c0_9 = arith.constant 0 : index
      %c0_10 = arith.constant 0 : index
      %12 = vector.load %arg7[%c0_9, %c0_10] : memref<2x512xf32, #tpu.memory_space<vmem>>, vector<2x512xf32>
      %c0_11 = arith.constant 0 : index
      %c0_12 = arith.constant 0 : index
      %13 = vector.load %arg4[%c0_11, %c0_12] : memref<1x512xf32, #tpu.memory_space<vmem>>, vector<1x512xf32>
      %14 = vector.broadcast %13 : vector<1x512xf32> to vector<2x512xf32>
      %15 = arith.addf %12, %14 : vector<2x512xf32>
      %cst_13 = arith.constant 0.000000e+00 : f32
      %16 = vector.broadcast %cst_13 : f32 to vector<2x512xf32>
      %17 = arith.maximumf %15, %16 : vector<2x512xf32>
      %c0_14 = arith.constant 0 : index
      %c0_15 = arith.constant 0 : index
      %18 = vector.load %arg5[%c0_14, %c0_15] : memref<512x1024xf32, #tpu.memory_space<vmem>>, vector<512x1024xf32>
      %cst_16 = arith.constant dense<0.000000e+00> : vector<2x1024xf32>
      %19 = tpu.matmul %17, %18, %cst_16 {dimension_numbers = #tpu.dot_dimension_numbers<[1], [0], [0], [1], [0, 0, 1, 1], [], []>} : vector<2x512xf32>, vector<512x1024xf32>, vector<2x1024xf32> -> vector<2x1024xf32>
      %c0_17 = arith.constant 0 : index
      %c0_18 = arith.constant 0 : index
      %c0_19 = arith.constant 0 : index
      %20 = vector.load %arg6[%c0_17, %c0_18, %c0_19] : memref<1x2x1024xf32, #tpu.memory_space<vmem>>, vector<1x2x1024xf32>
      %21 = vector.shape_cast %20 : vector<1x2x1024xf32> to vector<2x1024xf32>
      %22 = vector.shape_cast %19 : vector<2x1024xf32> to vector<1x2x1024xf32>
      tpu.vector_store %arg6[%c0_17, %c0_18, %c0_19], %22 {strides = array<i32>} : memref<1x2x1024xf32, #tpu.memory_space<vmem>>, vector<1x2x1024xf32>,
    } else {
    }
    return
  }
  func.func @transform_0(%arg0: i32, %arg1: i32) -> (i32, i32) {
    %c0_i32 = arith.constant 0 : i32
    %c0_i32_0 = arith.constant 0 : i32
    return %c0_i32, %arg1 : i32, i32
  }
  func.func @transform_1(%arg0: i32, %arg1: i32) -> (i32, i32) {
    %c0_i32 = arith.constant 0 : i32
    return %arg1, %arg0 : i32, i32
  }
  func.func @transform_2(%arg0: i32, %arg1: i32) -> (i32, i32) {
    %c0_i32 = arith.constant 0 : i32
    %c0_i32_0 = arith.constant 0 : i32
    return %c0_i32, %arg0 : i32, i32
  }
  func.func @transform_3(%arg0: i32, %arg1: i32) -> (i32, i32) {
    %c0_i32 = arith.constant 0 : i32
    %c0_i32_0 = arith.constant 0 : i32
    return %arg0, %c0_i32 : i32, i32
  }
  func.func @transform_4(%arg0: i32, %arg1: i32) -> (i32, i32, i32) {
    %c0_i32 = arith.constant 0 : i32
    %c0_i32_0 = arith.constant 0 : i32
    %c0_i32_1 = arith.constant 0 : i32
    return %arg0, %c0_i32, %c0_i32_0 : i32, i32, i32
  }
}

</mosaic_0001>

<bundles_post_ra>
// kernel: palnet_2blk_forward.4
= control target key start
LH: loop header
LB: loop body
LE: loop exit
PB: predicated region body
PF: predicated region fallthrough
CT: control target
= control target key end

     0   :  { %s3316_s0 = inlined_call_operand.vmem [shape: f32[2,5,8,32], index: 0, kind: input, shape index: {}]   ;;  %s3317_s1 = inlined_call_operand.hbm [shape: f32[32,64], index: 1, kind: input, shape index: {}]   ;;  %s3318_s2 = inlined_call_operand.hbm [shape: f32[1,64], index: 2, kind: input, shape index: {}]   ;;  %s3319_s3 = inlined_call_operand.hbm [shape: f32[64,64], index: 3, kind: input, shape index: {}]   ;;  %s3320_s4 = inlined_call_operand.hbm [shape: f32[1,64], index: 4, kind: input, shape index: {}]   ;;  %s3321_s5 = inlined_call_operand.vmem [shape: f32[64,1], index: 5, kind: input, shape index: {}]   ;;  %s3322_s6 = inlined_call_operand.vmem [shape: f32[1,8,5], index: 6, kind: input, shape index: {}]   ;;  %s3323_s7 = inlined_call_operand.vmem [shape: f32[2,8,64], index: 7, kind: output, shape index: {0}]   ;;  %s3324_s8 = inlined_call_operand.vmem [shape: f32[2,1,64], index: 8, kind: output, shape index: {1}]  }
   0x1   :  { %3328 = sst [smem:[#allocation16_spill]] %s3318_s2 }
   0x2   :  { %14 = vsyncpa [#allocation6], 0 }
   0x3   :  { %15 = vsyncpa [#allocation8], 0 }
   0x4   :  { %16 = vsyncpa [#allocation11], 0  ;;  %s2807_s27 = smov 0   ;;  %s2809_s28 = smov 0  }
   0x5   :  { %s2811_s29 = smov 0  }
   0x6 LB: > { %s2748_s30 = smov [#allocation7]   ;;  %s1957_s10 = sadd.s32 4294967295, %s2746_s29   ;;  %s2746_s29 = sphi %s2811_s29, %s22_s29   ;;  %s2742_s28 = sphi %s2809_s28, %s3341_s28   ;;  %s2738_s27 = sphi %s2807_s27, %s3340_s27  }
   0x7   : > { %s278_s9 = sshll.u32 %s2748_s30, 4  ;;  %p1959_p0 = scmp.ge.s32.totalorder %s2746_s29, 1  ;;  %s279_s9 = int_to_ptr.vmem [resolvable:$true] %s278_s9 }
   0x8   : > { %p252_p1 = scmp.lt.s32.totalorder %s2746_s29, 3  ;;  %p2825_p2 = scmp.eq.s32.totalorder %s1957_s10, 0 }
   0x9   : > { %s34_s13 = sadd.s32 1, %s2742_s28  ;;  %s2749_s16 = smov [#allocation5]  }
   0xa   : > { %s3329_s11 = scalar_select %p2825_p2, 1, 0 }
   0xb   : > { %p2829_p3 = pnand %p1959_p0, %p252_p1  ;;  %p2842_p6 = scmp.ge.s32.totalorder %s34_s13, 2 }
   0xc   : > { %s264_s17 = sshll.u32 %s2749_s16, 4  ;;  %s3333_s2 = sld [smem:[#allocation16_spill]]  ;;  %s2846_s17 = int_to_ptr.vmem [resolvable:$true] %s264_s17 }
   0xd   : > { %s3330_s12 = scalar_select %p2829_p3, 1, 0 }
   0xe   : > { %p2528_p4 = pneg %p2829_p3 }
   0xf   : > { %s3332_s15 = scalar_select %p2842_p6, 1, 0 }
  0x10   : > { %p2838_p5 = pnand %p2825_p2, %p2528_p4 }
  0x12   : > { %s2600_s20 = scalar_lea.hbm %s3333_s2, 16  ;;  %p2856_p8 = pneg %p2838_p5 }
  0x13   : > { %p2601_p7 = scmp.ne.s32.totalorder %s3333_s2, %s2600_s20  ;;  %p2607_p11 = scmp.lt.u32.totalorder %s2600_s20, %s3333_s2 }
  0x15   : > { %p2603_p9 = pnand %p2856_p8, %p2601_p7 }
  0x17   : > { %p2604_p10 = pneg %p2603_p9 }
  0x19   : > { %p2609_p12 = pnand %p2607_p11, %p2604_p10 }
  0x1b   : > { %2612 = shalt.err (!%p2609_p12)
}
  0x1c   : > { %s2613_s26 = scalar_lea.vmem %s279_s9, 16  ;;  %s2620_s30 = scalar_lea.vmem %s279_s9, 32 }
  0x1d   : > { %p2614_p13 = scmp.ne.s32.totalorder %s279_s9, %s2613_s26  ;;  %p2621_p4 = scmp.lt.s32.totalorder %s279_s9, %s279_s9 }
  0x1e   : > { %p2622_p2 = scmp.lt.s32.totalorder %s2620_s30, %s2613_s26 }
  0x1f   : > { %p2616_p0 = pnand %p2614_p13, %p2856_p8 }
  0x20   : > { %p2623_p3 = por %p2622_p2, %p2621_p4 }
  0x21   : > { %p2617_p1 = pneg %p2616_p0 }
  0x23   : > { %p2624_p6 = pnand %p2623_p3, %p2617_p1 }
  0x25   : > { %2627 = shalt.err (!%p2624_p6)
}
  0x26   : > { %2534 = dma.hbm_to_vmem [thread:$0]  (!%p2838_p5), %s3333_s2, 16, %s279_s9, [#allocation8]  }
  0x27   : > { %p3335_p7 = scmp.ne.s32.totalorder %s3332_s15, 0  ;;  %s2628_s20 = scalar_lea.hbm %s3317_s1, 512 }
  0x28   : > { %p2629_p2 = scmp.ne.s32.totalorder %s3317_s1, %s2628_s20  ;;  %p2635_p9 = scmp.lt.u32.totalorder %s2628_s20, %s3317_s1 }
  0x29   : > { %s3343_s13 = smov (%p3335_p7, %s34_s13), 0 }
  0x2a   : > { %3336 = sst [smem:[#allocation15_spill]] %s3343_s13  ;;  %p2631_p3 = pnand %p2629_p2, %p2856_p8 }
  0x2c   : > { %p2632_p6 = pneg %p2631_p3 }
  0x2e   : > { %p2637_p10 = pnand %p2635_p9, %p2632_p6 }
  0x30   : > { %2640 = shalt.err (!%p2637_p10)
}
  0x31   : > { %s2641_s9 = scalar_lea.vmem %s2846_s17, 512  ;;  %p2649_p0 = scmp.lt.s32.totalorder %s2846_s17, %s2846_s17 }
  0x32   : > { %p2642_p11 = scmp.ne.s32.totalorder %s2846_s17, %s2641_s9  ;;  %p2650_p1 = scmp.lt.s32.totalorder %s2641_s9, %s2641_s9 }
  0x34   : > { %p2644_p12 = pnand %p2642_p11, %p2856_p8  ;;  %p2651_p4 = por %p2650_p1, %p2649_p0 }
  0x36   : > { %p2645_p13 = pneg %p2644_p12 }
  0x38   : > { %p2652_p7 = pnand %p2651_p4, %p2645_p13 }
  0x3a   : > { %2655 = shalt.err (!%p2652_p7)
}
  0x3b   : > { %s2750_s15 = smov 128   ;;  %s2751_s26 = smov 8  }
  0x3c   : > { %2531 = dma.hbm_to_vmem [thread:$0]  (!%p2838_p5), %s3317_s1, 512, %s2846_s17, [#allocation6], %s2750_s15, %s2750_s15, %s2751_s26  }
  0x3d   : > { %s2752_s16 = smov [#allocation9]   ;;  %s2753_s19 = smov [#allocation10]  }
  0x3e   : > { %s288_s18 = sshll.u32 %s2752_s16, 4  ;;  %s302_s20 = sshll.u32 %s2753_s19, 4  ;;  %s289_s18 = int_to_ptr.vmem [resolvable:$true] %s288_s18  ;;  %s303_s20 = int_to_ptr.vmem [resolvable:$true] %s302_s20 }
  0x3f   : > { %s2656_s24 = scalar_lea.hbm %s3319_s3, 1024 }
  0x40   : > { %p2657_p2 = scmp.ne.s32.totalorder %s3319_s3, %s2656_s24  ;;  %p2663_p9 = scmp.lt.u32.totalorder %s2656_s24, %s3319_s3 }
  0x42   : > { %p2659_p3 = pnand %p2657_p2, %p2856_p8 }
  0x44   : > { %p2660_p6 = pneg %p2659_p3 }
  0x46   : > { %p2665_p10 = pnand %p2663_p9, %p2660_p6 }
  0x48   : > { %2668 = shalt.err (!%p2665_p10)
}
  0x49   : > { %s2669_s17 = scalar_lea.vmem %s289_s18, 1024  ;;  %p2677_p0 = scmp.lt.s32.totalorder %s289_s18, %s289_s18 }
  0x4a   : > { %p2670_p11 = scmp.ne.s32.totalorder %s289_s18, %s2669_s17  ;;  %p2678_p1 = scmp.lt.s32.totalorder %s2669_s17, %s2669_s17 }
  0x4c   : > { %p2672_p12 = pnand %p2670_p11, %p2856_p8  ;;  %p2679_p4 = por %p2678_p1, %p2677_p0 }
  0x4e   : > { %p2673_p13 = pneg %p2672_p12 }
  0x50   : > { %p2680_p7 = pnand %p2679_p4, %p2673_p13 }
  0x52   : > { %2683 = shalt.err (!%p2680_p7)
}
  0x53   : > { %2537 = dma.hbm_to_vmem [thread:$0]  (!%p2838_p5), %s3319_s3, 1024, %s289_s18, [#allocation8], %s2750_s15, %s2750_s15, %s2751_s26  }
  0x54   : > { %s2684_s16 = scalar_lea.hbm %s3320_s4, 16 }
  0x55   : > { %p2685_p2 = scmp.ne.s32.totalorder %s3320_s4, %s2684_s16  ;;  %p2691_p9 = scmp.lt.u32.totalorder %s2684_s16, %s3320_s4 }
  0x57   : > { %p2687_p3 = pnand %p2685_p2, %p2856_p8 }
  0x59   : > { %p2688_p6 = pneg %p2687_p3 }
  0x5b   : > { %p2693_p10 = pnand %p2691_p9, %p2688_p6 }
  0x5d   : > { %2696 = shalt.err (!%p2693_p10)
}
  0x5e   : > { %s2697_s25 = scalar_lea.vmem %s303_s20, 16  ;;  %s2704_s15 = scalar_lea.vmem %s303_s20, 32 }
  0x5f   : > { %p2698_p11 = scmp.ne.s32.totalorder %s303_s20, %s2697_s25  ;;  %p2705_p0 = scmp.lt.s32.totalorder %s303_s20, %s303_s20 }
  0x60   : > { %p2706_p1 = scmp.lt.s32.totalorder %s2704_s15, %s2697_s25 }
  0x61   : > { %p2700_p12 = pnand %p2698_p11, %p2856_p8 }
  0x62   : > { %p2707_p4 = por %p2706_p1, %p2705_p0 }
  0x63   : > { %p2701_p13 = pneg %p2700_p12 }
  0x65   : > { %p2708_p7 = pnand %p2707_p4, %p2701_p13 }
  0x67   : > { %2711 = shalt.err (!%p2708_p7)
}
  0x68   : > { %2540 = dma.hbm_to_vmem [thread:$0]  (!%p2838_p5), %s3320_s4, 16, %s303_s20, [#allocation11]  }
  0x69   : > { %p3337_p2 = scmp.ne.s32.totalorder %s3330_s12, 0 }
  0x6a   : > { %p3338_p3 = scmp.ne.s32.totalorder (!%p3337_p2), %s3329_s11, 0 }
  0x6b   : > { %336 = sbr.rel (%p3337_p2) target bundleno = 2023 (0x7e7), region = 48 }
  0x72   : > { %2725 = dma.done.wait (%p3338_p3), [#allocation6], 512  }
  0x73   : > { %2727 = vsyncadd (%p3338_p3), [#allocation6], 4294966784 }
  0x74   : > { %2729 = dma.done.wait (%p3338_p3), [#allocation8], 1040  }
  0x75   : > { %2731 = vsyncadd (%p3338_p3), [#allocation8], 4294966256 }
  0x76   : > { %2733 = dma.done.wait (%p3338_p3), [#allocation11], 16  }
  0x77   : > { %2735 = vsyncadd (%p3338_p3), [#allocation11], 4294967280  ;;  %p394_p5 = scmp.lt.s32.totalorder %s2738_s27, 1  ;;  %v2754_v0 = vmov 0.0|0.0   ;;  %vm2755_vm0 = vmmov 0   ;;  %v2756_v1 = vmov 0.0   ;;  %v610_v36 = vlaneseq }
  0x78   : > { %2361 = vmatprep.subr.bf16.mxu0 %v2754_v0  ;;  %2124 = vmatprep.mubr.msk.f32.mxu0 %vm2755_vm0, %v2756_v1  ;;  %v424_v2 = vld [vmem:[#allocation5] sm:$0xff]  ;;  %v425_v3 = vld [vmem:[#allocation5 + $0x8] sm:$0xff]  ;;  %v426_v4 = vld [vmem:[#allocation5 + $0x10] sm:$0xff]  ;;  %vm453_vm1 = vcmask 261120   ;;  %v2757_v24 = vmov 0   ;;  %vm534_vm2 = vcmask 523264  }
  0x79   : > { %2367 = vmatprep.subr.bf16.mxu1 %v2754_v0  ;;  %2143 = vmatprep.mubr.msk.f32.mxu1 %vm2755_vm0, %v2756_v1  ;;  %s3345_s27 = smov (!%p394_p5, %s2738_s27), 1  ;;  %v2960_v5 = vpack.c.bf16 %v425_v3, %v424_v2  ;;  %v427_v6 = vld [vmem:[#allocation5 + $0x18] sm:$0xff]  ;;  %v429_v7 = vld [vmem:[#allocation9] sm:$0xff]  ;;  %v430_v8 = vld [vmem:[#allocation9 + $0x8] sm:$0xff]  ;;  %v611_v37 = vand.u32 127, %v610_v36  ;;  %vm1694_vm8 = vcmask 39936  }
  0x7a   : > { %s2511_s11 = smul.u32 40, %s3345_s27  ;;  %v431_v9 = vld [vmem:[#allocation9 + $0x10] sm:$0xff]  ;;  %v2963_v10 = vpack.c.bf16 %v427_v6, %v426_v4  ;;  %v2965_v11 = vpack.c.bf16 %v430_v8, %v429_v7  ;;  %v432_v12 = vld [vmem:[#allocation9 + $0x18] sm:$0xff]  ;;  %v433_v14 = vld [vmem:[#allocation9 + $0x20] sm:$0xff]  ;;  %2587 = vset.pattern.permute.xlu0 %v2757_v24  ;;  %2588 = vset.pattern.permute.xlu1 %v2757_v24  ;;  %vm420_vm9 = vcmask 0   ;;  %vm422_vm10 = vcmask 516096   ;;  %s415_s10 = scalar_lea.vmem %s3324_s8, %s3345_s27 }
  0x7b   : > { %2363 = vmatpush3.bf16.msra.mxu0 %v2960_v5  ;;  %v2974_v13 = vpack.c.bf16 %v432_v12, %v431_v9  ;;  %v434_v15 = vld [vmem:[#allocation9 + $0x28] sm:$0xff]  ;;  %v435_v19 = vld [vmem:[#allocation9 + $0x30] sm:$0xff]  ;;  %v436_v20 = vld [vmem:[#allocation9 + $0x38] sm:$0xff]  ;;  %vm1126_vm3 = vcmp.eq.s32.totalorder %v611_v37, 2  ;;  %vm1364_vm4 = vcmp.eq.s32.totalorder %v611_v37, 3  ;;  %vm1602_vm5 = vcmp.eq.s32.totalorder %v611_v37, 4 }
  0x7c   : > { %2364 = vmatprep.subr.bf16.mxu0 %v2754_v0  ;;  %s2971_s23 = scalar_lea.vmem %s3316_s0, %s2511_s11  ;;  %2369 = vmatpush3.bf16.msra.mxu1 %v2965_v11  ;;  %v2981_v17 = vpack.c.bf16 %v434_v15, %v433_v14  ;;  %v3003_v21 = vpack.c.bf16 %v436_v20, %v435_v19  ;;  %v438_v22 = vld [vmem:[%s3321_s5] sm:$0xff]  ;;  %v440_v23 = vld [vmem:[%s3321_s5 + $0x10] sm:$0xff]  ;;  %v439_v25 = vld [vmem:[%s3321_s5 + $0x8] sm:$0xff]  ;;  %vm612_vm6 = vcmp.eq.s32.totalorder %v611_v37, 0  ;;  %vm816_vm7 = vcmp.eq.s32.totalorder %v611_v37, 1  ;;  %s1972_s11 = sshll.u32 %s3345_s27, 3 }
  0x7d   : > { %2370 = vmatprep.subr.bf16.mxu1 %v2754_v0  ;;  %v446_v16 = vld [vmem:[%s2971_s23] sm:$0xff]  ;;  %v1978_v18 = vld [vmem:[%s2971_s23 + $0x8] sm:$0xff]  ;;  %617 = vperm.xlu0 %2587, %v438_v22   ;;  %v441_v26 = vld [vmem:[%s3321_s5 + $0x18] sm:$0xff]  ;;  %v3044_v42 = vsel %vm1126_vm3, 1.0, %v2756_v1  ;;  %v3047_v43 = vsel %vm1364_vm4, 1.0, %v2756_v1  ;;  %v3051_v44 = vsel %vm1602_vm5, 1.0, %v2756_v1 }
  0x7e   : > { %627 = vperm.xlu1 %2588, %v440_v23   ;;  %v443_v27 = vld [vmem:[%s3321_s5 + $0x28] sm:$0xff]  ;;  %v442_v28 = vld [vmem:[%s3321_s5 + $0x20] sm:$0xff]  ;;  %v445_v29 = vld [vmem:[%s3321_s5 + $0x38] sm:$0xff]  ;;  %v1977_v45 = vsel %vm612_vm6, 1.0, %v2756_v1  ;;  %v1981_v46 = vsel %vm816_vm7, 1.0, %v2756_v1 }
  0x7f   : > { %2366 = vmatpush3.bf16.msra.mxu0 %v2963_v10  ;;  %v444_v30 = vld [vmem:[%s3321_s5 + $0x30] sm:$0xff]  ;;  %v3035_v31 = vld [vmem:[#allocation7] ss:$0 sm:$0xff]  ;;  %421 = vst.msk [vmem:[#allocation3] sm:$0x1] %vm420_vm9, %v2756_v1 }
  0x80   : > { %2379 = vmatprep.subr.bf16.mxu0 %v2754_v0  ;;  %2372 = vmatpush3.bf16.msra.mxu1 %v2974_v13  ;;  %423 = vst.msk [vmem:[#allocation4] sm:$0x1] %vm422_vm10, %v2756_v1 }
  0x81   : > { %2373 = vmatprep.subr.bf16.mxu1 %v2754_v0  ;;  %622 = vperm.xlu0 %2587, %v439_v25  }
  0x82   : > { %2125 = vmatmul.mubr.msk.f32.vlgmr.msra.gmra.mrb[0].mxu0 %vm453_vm1, %v446_v16  ;;  %632 = vperm.xlu1 %2588, %v441_v26  }
  0x83   : > { %2381 = vmatpush3.bf16.msra.mxu0 %v2960_v5  ;;  %2154 = vmatprep.mubr.msk.f32.mxu0 %vm2755_vm0, %v2756_v1 }
  0x84   : > { %2382 = vmatprep.subr.bf16.mxu0 %v2754_v0  ;;  %2375 = vmatpush3.bf16.msra.mxu1 %v2981_v17 }
  0x85   : > { %2376 = vmatprep.subr.bf16.mxu1 %v2754_v0  ;;  %637 = vperm.xlu0 %2587, %v442_v28  }
  0x86   : > { %642 = vperm.xlu1 %2588, %v443_v27  }
  0x87   : > { %2384 = vmatpush3.bf16.msra.mxu0 %v2963_v10 }
  0x88   : > { %2385 = vmatprep.subr.bf16.mxu0 %v2754_v0  ;;  %2378 = vmatpush3.bf16.msra.mxu1 %v3003_v21 }
  0x89   : > { %2397 = vmatprep.subr.bf16.mxu1 %v2754_v0  ;;  %647 = vperm.xlu0 %2587, %v444_v30  }
  0x8a   : > { %2155 = vmatmul.mubr.msk.f32.vlgmr.msra.gmra.mrb[2].mxu0 %vm453_vm1, %v1978_v18  ;;  %652 = vperm.xlu1 %2588, %v445_v29  }
  0x8b   : > { %2387 = vmatpush3.bf16.msra.mxu0 %v2965_v11  ;;  %2173 = vmatprep.mubr.msk.f32.mxu0 %vm2755_vm0, %v2756_v1 }
  0x8c   : > { %2388 = vmatprep.subr.bf16.mxu0 %v2754_v0 }
  0x8f   : > { %2390 = vmatpush3.bf16.msra.mxu0 %v2974_v13 }
  0x90   : > { %2391 = vmatprep.subr.bf16.mxu0 %v2754_v0 }
  0x93   : > { %2393 = vmatpush3.bf16.msra.mxu0 %v2981_v17 }
  0x94   : > { %2394 = vmatprep.subr.bf16.mxu0 %v2754_v0 }
  0x97   : > { %2396 = vmatpush3.bf16.msra.mxu0 %v3003_v21 }
  0x98   : > { %2409 = vmatprep.subr.bf16.mxu0 %v2754_v0 }
  0xfc   : > { %v618_v47 = vpop.permute.xlu0 %617 }
  0xfd   : > { %v628_v48 = vpop.permute.xlu1 %627  ;;  %v3058_v49 = vmul.f32 %v3044_v42, %v618_v47  ;;  %v3061_v50 = vmul.f32 %v3047_v43, %v618_v47  ;;  %v3064_v51 = vmul.f32 %v3051_v44, %v618_v47  ;;  %v655_v53 = vmul.f32 %v1977_v45, %v618_v47 }
  0xfe   : > { %v3067_v52 = vmul.f32 %v3044_v42, %v628_v48  ;;  %v819_v54 = vmul.f32 %v1981_v46, %v618_v47  ;;  %v3070_v55 = vmul.f32 %v3047_v43, %v628_v48  ;;  %v3073_v56 = vmul.f32 %v3051_v44, %v628_v48 }
  0xff   : > { %v657_v57 = vmul.f32 %v1977_v45, %v628_v48  ;;  %v821_v58 = vmul.f32 %v1981_v46, %v628_v48 }
 0x100   : > { %v623_v59 = vpop.permute.xlu0 %622 }
 0x101   : > { %v633_v60 = vpop.permute.xlu1 %632  ;;  %v656_v61 = vmul.f32 %v1977_v45, %v623_v59  ;;  %v820_v62 = vmul.f32 %v1981_v46, %v623_v59  ;;  %v3076_v63 = vmul.f32 %v3044_v42, %v623_v59  ;;  %v3079_v2 = vmul.f32 %v3047_v43, %v623_v59 }
 0x102   : > { %v3082_v3 = vmul.f32 %v3051_v44, %v623_v59  ;;  %v658_v4 = vmul.f32 %v1977_v45, %v633_v60  ;;  %v822_v6 = vmul.f32 %v1981_v46, %v633_v60  ;;  %v3085_v7 = vmul.f32 %v3044_v42, %v633_v60 }
 0x103   : > { %v3088_v8 = vmul.f32 %v3047_v43, %v633_v60  ;;  %v3091_v9 = vmul.f32 %v3051_v44, %v633_v60  ;;  %v2398_v12 = vpack.c.bf16 %v820_v62, %v819_v54  ;;  %v2410_v14 = vpack.c.bf16 %v656_v61, %v655_v53  ;;  %v3142_v61 = vld [vmem:[#allocation10] ss:$0 sm:$0xff] }
 0x104   : > { %v638_v16 = vpop.permute.xlu0 %637  ;;  %v2401_v18 = vpack.c.bf16 %v822_v6, %v821_v58  ;;  %v2413_v19 = vpack.c.bf16 %v658_v4, %v657_v57  ;;  %v2470_v53 = vpack.c.bf16 %v3079_v2, %v3061_v50  ;;  %v2500_v57 = vpack.c.bf16 %v3082_v3, %v3064_v51 }
 0x105   : > { %v643_v15 = vpop.permute.xlu1 %642  ;;  %v659_v27 = vmul.f32 %v1977_v45, %v638_v16  ;;  %v823_v28 = vmul.f32 %v1981_v46, %v638_v16  ;;  %v1133_v29 = vmul.f32 %v3044_v42, %v638_v16  ;;  %v3105_v30 = vmul.f32 %v3047_v43, %v638_v16 }
 0x106   : > { %v660_v20 = vmul.f32 %v1977_v45, %v643_v15  ;;  %v824_v22 = vmul.f32 %v1981_v46, %v643_v15  ;;  %v3094_v23 = vmul.f32 %v3044_v42, %v643_v15  ;;  %v3097_v25 = vmul.f32 %v3047_v43, %v643_v15 }
 0x107   : > { %v3100_v26 = vmul.f32 %v3051_v44, %v643_v15  ;;  %v2443_v59 = vpack.c.bf16 %v3085_v7, %v3067_v52  ;;  %v2503_v60 = vpack.c.bf16 %v3091_v9, %v3073_v56 }
 0x108   : > { %v2476_v54 = vpack.c.bf16 %v3097_v25, %v3105_v30 }
 0x155   : > { %v523_v32 = vpop.f32.mrb[0].mxu0 }
 0x156   : > { %v524_v33 = vadd.f32 %v3035_v31, %v523_v32  ;;  %v2126_v34 = vpop.f32.mrb[1].mxu0  ;;  %v3108_v32 = vmul.f32 %v3051_v44, %v638_v16 }
 0x157   : > { %v3113_v34 = vpop.permute.xlu0 %647 }
 0x158   : > { %v527_v35 = vmax.f32 %v524_v33, 0.0  ;;  %v3111_v33 = vpop.permute.xlu1 %652  ;;  %v2506_v58 = vpack.c.bf16 %v3100_v26, %v3108_v32  ;;  %v1135_v16 = vmul.f32 %v3044_v42, %v3113_v34 }
 0x159   : > { %v662_v37 = vmul.f32 %v1977_v45, %v3111_v33  ;;  %v1136_v15 = vmul.f32 %v3044_v42, %v3111_v33  ;;  %v1984_v42 = vld [vmem:[%s2971_s23 + $0x10] sm:$0xff] }
 0x15a   : > { %2144 = vmatmul.mubr.msk.f32.vlgmr.msra.gmra.mrb[0].mxu1 %vm534_vm2, %v527_v35  ;;  %v2404_v35 = vpack.c.bf16 %v824_v22, %v823_v28 }
 0x15b   : > { %2192 = vmatprep.mubr.msk.f32.mxu1 %vm2755_vm0, %v2756_v1  ;;  %2399 = vmatpush3.bf16.msra.mxu1 %v2398_v12 }
 0x15c   : > { %2400 = vmatprep.subr.bf16.mxu1 %v2754_v0 }
 0x15d   : > { %v734_v38 = vpop.f32.mrb[2].mxu0 }
 0x15e   : > { %v735_v39 = vadd.f32 %v3035_v31, %v734_v38  ;;  %v2156_v40 = vpop.f32.mrb[3].mxu0  ;;  %v826_v38 = vmul.f32 %v1981_v46, %v3111_v33 }
 0x15f   : > { %2402 = vmatpush3.bf16.msra.mxu1 %v2401_v18  ;;  %v661_v40 = vmul.f32 %v1977_v45, %v3113_v34  ;;  %v2440_v45 = vpack.c.bf16 %v3076_v63, %v3058_v49  ;;  %v2473_v49 = vpack.c.bf16 %v3088_v8, %v3070_v55 }
 0x160   : > { %v738_v41 = vmax.f32 %v735_v39, 0.0  ;;  %v2416_v39 = vpack.c.bf16 %v660_v20, %v659_v27  ;;  %2403 = vmatprep.subr.bf16.mxu1 %v2754_v0 }
 0x161   : > { %v2419_v48 = vpack.c.bf16 %v662_v37, %v661_v40  ;;  %v1374_v40 = vmul.f32 %v3047_v43, %v3111_v33 }
 0x162   : > { %2174 = vmatmul.mubr.msk.f32.vlgmr.msra.gmra.mrb[4].mxu0 %vm534_vm2, %v738_v41  ;;  %v825_v41 = vmul.f32 %v1981_v46, %v3113_v34  ;;  %v2446_v46 = vpack.c.bf16 %v3094_v23, %v1133_v29 }
 0x163   : > { %2211 = vmatprep.mubr.msk.f32.mxu0 %vm2755_vm0, %v2756_v1  ;;  %2411 = vmatpush3.bf16.msra.mxu0 %v2410_v14 }
 0x164   : > { %2412 = vmatprep.subr.bf16.mxu0 %v2754_v0  ;;  %2405 = vmatpush3.bf16.msra.mxu1 %v2404_v35  ;;  %v2407_v47 = vpack.c.bf16 %v826_v38, %v825_v41  ;;  %v1373_v41 = vmul.f32 %v3047_v43, %v3113_v34 }
 0x165   : > { %2406 = vmatprep.subr.bf16.mxu1 %v2754_v0 }
 0x166   : > { %v2479_v50 = vpack.c.bf16 %v1374_v40, %v1373_v41 }
 0x167   : > { %2414 = vmatpush3.bf16.msra.mxu0 %v2413_v19  ;;  %v2449_v19 = vpack.c.bf16 %v1136_v15, %v1135_v16  ;;  %v2759_v15 = vmov 2   ;;  %v2760_v16 = vmov 3  }
 0x168   : > { %2415 = vmatprep.subr.bf16.mxu0 %v2754_v0  ;;  %2408 = vmatpush3.bf16.msra.mxu1 %v2407_v47 }
 0x169   : > { %2421 = vmatprep.subr.bf16.mxu1 %v2754_v0 }
 0x16b   : > { %2417 = vmatpush3.bf16.msra.mxu0 %v2416_v39  ;;  %v1989_v39 = vld [vmem:[%s2971_s23 + $0x18] sm:$0xff] }
 0x16c   : > { %2418 = vmatprep.subr.bf16.mxu0 %v2754_v0 }
 0x16f   : > { %2420 = vmatpush3.bf16.msra.mxu0 %v2419_v48 }
 0x170   : > { %2439 = vmatprep.subr.bf16.mxu0 %v2754_v0 }
 0x22d   : > { %v604_v62 = vpop.f32.mrb[0].mxu1 }
 0x22e   : > { %v605_v63 = vadd.f32 %v3142_v61, %v604_v62  ;;  %v2145_v4 = vpop.f32.mrb[1].mxu1 }
 0x230   : > { %v3145_v6 = vmax.f32 %v605_v63, 0.0 }
 0x232   : > { %609 = vst.msk [vmem:[#allocation2] sm:$0xff] %vm534_vm2, %v3145_v6  ;;  %2212 = vmatmul.mubr.msk.f32.vlgmr.msra.gmra.mrb[6].mxu0 %vm534_vm2, %v3145_v6 }
 0x233   : > { %2441 = vmatpush3.bf16.msra.mxu0 %v2440_v45  ;;  %2260 = vmatprep.mubr.msk.f32.mxu0 %vm2755_vm0, %v2756_v1 }
 0x234   : > { %2442 = vmatprep.subr.bf16.mxu0 %v2754_v0 }
 0x235   : > { %v808_v52 = vpop.f32.mrb[4].mxu0 }
 0x236   : > { %v809_v7 = vadd.f32 %v3142_v61, %v808_v52  ;;  %v2175_v12 = vpop.f32.mrb[5].mxu0 }
 0x237   : > { %2444 = vmatpush3.bf16.msra.mxu0 %v2443_v59 }
 0x238   : > { %v3155_v14 = vmax.f32 %v809_v7, 0.0  ;;  %2445 = vmatprep.subr.bf16.mxu0 %v2754_v0 }
 0x23a   : > { %814 = vst.msk [vmem:[#allocation2 + $0x8] sm:$0xff] %vm534_vm2, %v3155_v14  ;;  %v815_v18 = vmax.f32 %v3145_v6, %v3155_v14  ;;  %2193 = vmatmul.mubr.msk.f32.vlgmr.msra.gmra.mrb[2].mxu1 %vm534_vm2, %v3155_v14  ;;  %v2758_v14 = vmov 1  }
 0x23b   : > { %2423 = vmatpush3.bf16.msra.mxu1 %v2960_v5  ;;  %2447 = vmatpush3.bf16.msra.mxu0 %v2446_v46  ;;  %v1994_v46 = vld [vmem:[%s2971_s23 + $0x20] sm:$0xff]  ;;  %s412_s23 = scalar_lea.vmem %s3323_s7, %s1972_s11 }
 0x23c   : > { %2424 = vmatprep.subr.bf16.mxu1 %v2754_v0  ;;  %2448 = vmatprep.subr.bf16.mxu0 %v2754_v0 }
 0x23d   : > { %2222 = vmatprep.mubr.msk.f32.mxu1 %vm2755_vm0, %v2756_v1 }
 0x23f   : > { %2426 = vmatpush3.bf16.msra.mxu1 %v2963_v10  ;;  %2450 = vmatpush3.bf16.msra.mxu0 %v2449_v19  ;;  %v1707_v19 = vld [vmem:[#allocation2] sm:$0xff] }
 0x240   : > { %2427 = vmatprep.subr.bf16.mxu1 %v2754_v0  ;;  %2457 = vmatprep.subr.bf16.mxu0 %v2754_v0 }
 0x242   : > { %2223 = vmatmul.mubr.msk.f32.vlgmr.msra.gmra.mrb[4].mxu1 %vm453_vm1, %v1984_v42 }
 0x243   : > { %2429 = vmatpush3.bf16.msra.mxu1 %v2965_v11  ;;  %2241 = vmatprep.mubr.msk.f32.mxu1 %vm2755_vm0, %v2756_v1 }
 0x244   : > { %2430 = vmatprep.subr.bf16.mxu1 %v2754_v0 }
 0x247   : > { %2432 = vmatpush3.bf16.msra.mxu1 %v2974_v13 }
 0x248   : > { %2433 = vmatprep.subr.bf16.mxu1 %v2754_v0 }
 0x24b   : > { %2435 = vmatpush3.bf16.msra.mxu1 %v2981_v17 }
 0x24c   : > { %2436 = vmatprep.subr.bf16.mxu1 %v2754_v0 }
 0x24f   : > { %2438 = vmatpush3.bf16.msra.mxu1 %v3003_v21 }
 0x250   : > { %2451 = vmatprep.subr.bf16.mxu1 %v2754_v0 }
 0x305   : > { %v969_v20 = vpop.f32.mrb[6].mxu0 }
 0x306   : > { %v2213_v22 = vpop.f32.mrb[7].mxu0 }
 0x30d   : > { %v896_v23 = vpop.f32.mrb[2].mxu1 }
 0x30e   : > { %v3188_v27 = vadd.f32 %v969_v20, %v896_v23  ;;  %v2194_v28 = vpop.f32.mrb[3].mxu1  ;;  %v1721_v23 = vld [vmem:[#allocation2 + $0x8] sm:$0xff] }
 0x315   : > { %v1044_v29 = vpop.f32.mrb[4].mxu1 }
 0x316   : > { %v1045_v35 = vadd.f32 %v3035_v31, %v1044_v29  ;;  %v2224_v37 = vpop.f32.mrb[5].mxu1 }
 0x318   : > { %v1048_v38 = vmax.f32 %v1045_v35, 0.0 }
 0x31a   : > { %2242 = vmatmul.mubr.msk.f32.vlgmr.msra.gmra.mrb[6].mxu1 %vm534_vm2, %v1048_v38 }
 0x31b   : > { %2453 = vmatpush3.bf16.msra.mxu1 %v2960_v5  ;;  %2271 = vmatprep.mubr.msk.f32.mxu1 %vm2755_vm0, %v2756_v1 }
 0x31c   : > { %2454 = vmatprep.subr.bf16.mxu1 %v2754_v0 }
 0x31f   : > { %2456 = vmatpush3.bf16.msra.mxu1 %v2963_v10 }
 0x320   : > { %2469 = vmatprep.subr.bf16.mxu1 %v2754_v0 }
 0x322   : > { %2272 = vmatmul.mubr.msk.f32.vlgmr.msra.gmra.mrb[8].mxu1 %vm453_vm1, %v1989_v39 }
 0x323   : > { %2471 = vmatpush3.bf16.msra.mxu1 %v2470_v53  ;;  %2309 = vmatprep.mubr.msk.f32.mxu1 %vm2755_vm0, %v2756_v1 }
 0x324   : > { %2472 = vmatprep.subr.bf16.mxu1 %v2754_v0 }
 0x327   : > { %2474 = vmatpush3.bf16.msra.mxu1 %v2473_v49 }
 0x328   : > { %2475 = vmatprep.subr.bf16.mxu1 %v2754_v0 }
 0x32b   : > { %2477 = vmatpush3.bf16.msra.mxu1 %v2476_v54 }
 0x32c   : > { %2478 = vmatprep.subr.bf16.mxu1 %v2754_v0 }
 0x32f   : > { %2480 = vmatpush3.bf16.msra.mxu1 %v2479_v50 }
 0x330   : > { %2487 = vmatprep.subr.bf16.mxu1 %v2754_v0 }
 0x3ed   : > { %v1118_v55 = vpop.f32.mrb[6].mxu1 }
 0x3ee   : > { %v1119_v2 = vadd.f32 %v3142_v61, %v1118_v55  ;;  %v2243_v8 = vpop.f32.mrb[7].mxu1 }
 0x3f0   : > { %v1122_v47 = vmax.f32 %v1119_v2, 0.0 }
 0x3f2   : > { %1124 = vst.msk [vmem:[#allocation2 + $0x10] sm:$0xff] %vm534_vm2, %v1122_v47  ;;  %v3221_v48 = vmax.f32 %v815_v18, %v1122_v47  ;;  %2261 = vmatmul.mubr.msk.f32.vlgmr.msra.gmra.mrb[8].mxu0 %vm534_vm2, %v1122_v47  ;;  %v2761_v18 = vmov 4  }
 0x3f3   : > { %2459 = vmatpush3.bf16.msra.mxu0 %v2965_v11  ;;  %2290 = vmatprep.mubr.msk.f32.mxu0 %vm2755_vm0, %v2756_v1 }
 0x3f4   : > { %2460 = vmatprep.subr.bf16.mxu0 %v2754_v0 }
 0x3f5   : > { %v1282_v43 = vpop.f32.mrb[8].mxu1 }
 0x3f6   : > { %v2273_v25 = vpop.f32.mrb[9].mxu1  ;;  %v1283_v30 = vadd.f32 %v3035_v31, %v1282_v43 }
 0x3f7   : > { %2462 = vmatpush3.bf16.msra.mxu0 %v2974_v13 }
 0x3f8   : > { %2463 = vmatprep.subr.bf16.mxu0 %v2754_v0  ;;  %v1286_v45 = vmax.f32 %v1283_v30, 0.0 }
 0x3f9   : > { %v1735_v38 = vld [vmem:[#allocation2 + $0x10] sm:$0xff] }
 0x3fb   : > { %2465 = vmatpush3.bf16.msra.mxu0 %v2981_v17 }
 0x3fc   : > { %2466 = vmatprep.subr.bf16.mxu0 %v2754_v0 }
 0x3ff   : > { %2468 = vmatpush3.bf16.msra.mxu0 %v3003_v21 }
 0x400   : > { %2481 = vmatprep.subr.bf16.mxu0 %v2754_v0 }
 0x402   : > { %2291 = vmatmul.mubr.msk.f32.vlgmr.msra.gmra.mrb[10].mxu0 %vm534_vm2, %v1286_v45 }
 0x403   : > { %2483 = vmatpush3.bf16.msra.mxu0 %v2960_v5  ;;  %2320 = vmatprep.mubr.msk.f32.mxu0 %vm2755_vm0, %v2756_v1  ;;  %v1612_v5 = vmul.f32 %v3051_v44, %v3111_v33 }
 0x404   : > { %2484 = vmatprep.subr.bf16.mxu0 %v2754_v0 }
 0x407   : > { %2486 = vmatpush3.bf16.msra.mxu0 %v2963_v10  ;;  %v1611_v10 = vmul.f32 %v3051_v44, %v3113_v34 }
 0x408   : > { %2499 = vmatprep.subr.bf16.mxu0 %v2754_v0 }
 0x409   : > { %v2509_v51 = vpack.c.bf16 %v1612_v5, %v1611_v10 }
 0x40a   : > { %2321 = vmatmul.mubr.msk.f32.vlgmr.msra.gmra.mrb[12].mxu0 %vm453_vm1, %v1994_v46 }
 0x40b   : > { %2501 = vmatpush3.bf16.msra.mxu0 %v2500_v57  ;;  %2358 = vmatprep.mubr.msk.f32.mxu0 %vm2755_vm0, %v2756_v1 }
 0x40c   : > { %2502 = vmatprep.subr.bf16.mxu0 %v2754_v0 }
 0x40f   : > { %2504 = vmatpush3.bf16.msra.mxu0 %v2503_v60 }
 0x410   : > { %2505 = vmatprep.subr.bf16.mxu0 %v2754_v0 }
 0x413   : > { %2507 = vmatpush3.bf16.msra.mxu0 %v2506_v58 }
 0x414   : > { %2508 = vmatprep.subr.bf16.mxu0 %v2754_v0 }
 0x417   : > { %2510 = vmatpush3.bf16.msra.mxu0 %v2509_v51 }
 0x4c5   : > { %v1206_v3 = vpop.f32.mrb[8].mxu0 }
 0x4c6   : > { %v1210_v56 = vadd.f32 %v1206_v3, %v3188_v27  ;;  %v2262_v9 = vpop.f32.mrb[9].mxu0 }
 0x4d5   : > { %v1356_v53 = vpop.f32.mrb[10].mxu0 }
 0x4d6   : > { %v1357_v54 = vadd.f32 %v3142_v61, %v1356_v53  ;;  %v2292_v57 = vpop.f32.mrb[11].mxu0 }
 0x4d8   : > { %v1360_v33 = vmax.f32 %v1357_v54, 0.0 }
 0x4da   : > { %1362 = vst.msk [vmem:[#allocation2 + $0x18] sm:$0xff] %vm534_vm2, %v1360_v33  ;;  %v1363_v44 = vmax.f32 %v3221_v48, %v1360_v33  ;;  %2310 = vmatmul.mubr.msk.f32.vlgmr.msra.gmra.mrb[10].mxu1 %vm534_vm2, %v1360_v33 }
 0x4db   : > { %2489 = vmatpush3.bf16.msra.mxu1 %v2965_v11  ;;  %2339 = vmatprep.mubr.msk.f32.mxu1 %vm2755_vm0, %v2756_v1 }
 0x4dc   : > { %2490 = vmatprep.subr.bf16.mxu1 %v2754_v0 }
 0x4dd   : > { %v1520_v26 = vpop.f32.mrb[12].mxu0 }
 0x4de   : > { %v2322_v32 = vpop.f32.mrb[13].mxu0  ;;  %v1521_v34 = vadd.f32 %v3035_v31, %v1520_v26 }
 0x4df   : > { %2492 = vmatpush3.bf16.msra.mxu1 %v2974_v13 }
 0x4e0   : > { %2493 = vmatprep.subr.bf16.mxu1 %v2754_v0  ;;  %v1524_v58 = vmax.f32 %v1521_v34, 0.0 }
 0x4e1   : > { %v1749_v2 = vld [vmem:[#allocation2 + $0x18] sm:$0xff] }
 0x4e3   : > { %2495 = vmatpush3.bf16.msra.mxu1 %v2981_v17 }
 0x4e4   : > { %2496 = vmatprep.subr.bf16.mxu1 %v2754_v0 }
 0x4e7   : > { %2498 = vmatpush3.bf16.msra.mxu1 %v3003_v21  ;;  %v1688_v21 = vld [vmem:[%s3322_s6] sm:$0xff] }
 0x4ea   : > { %2340 = vmatmul.mubr.msk.f32.vlgmr.msra.gmra.mrb[12].mxu1 %vm534_vm2, %v1524_v58 }
 0x5ad   : > { %v1444_v11 = vpop.f32.mrb[10].mxu1 }
 0x5ae   : > { %v1448_v59 = vadd.f32 %v1444_v11, %v1210_v56  ;;  %v2311_v49 = vpop.f32.mrb[11].mxu1 }
 0x5bd   : > { %v1594_v60 = vpop.f32.mrb[12].mxu1 }
 0x5be   : > { %v1595_v13 = vadd.f32 %v3142_v61, %v1594_v60  ;;  %v2341_v62 = vpop.f32.mrb[13].mxu1 }
 0x5c0   : > { %v1598_v63 = vmax.f32 %v1595_v13, 0.0  ;;  %v1693_v13 = vld [vmem:[#allocation3] sm:$0x1] }
 0x5c2   : > { %1600 = vst.msk [vmem:[#allocation2 + $0x20] sm:$0xff] %vm534_vm2, %v1598_v63  ;;  %v1601_v0 = vmax.f32 %v1363_v44, %v1598_v63  ;;  %2359 = vmatmul.mubr.msk.f32.vlgmr.msra.gmra.mrb[14].mxu0 %vm534_vm2, %v1598_v63 }
 0x5c4   : > { %1687 = vst.msk [vmem:[%s412_s23] sm:$0xff] %vm534_vm2, %v1601_v0 }
 0x5c9   : > { %v1763_v53 = vld [vmem:[#allocation2 + $0x20] sm:$0xff] }
 0x695   : > { %v1682_v17 = vpop.f32.mrb[14].mxu0 }
 0x696   : > { %v1686_v31 = vadd.f32 %v1682_v17, %v1448_v59  ;;  %v2360_v61 = vpop.f32.mrb[15].mxu0 }
 0x698   : > { %v1689_v4 = vadd.f32 %v1688_v21, %v1686_v31 }
 0x69a   : > { %2594 = vtanh.f32 %v1689_v4 }
 0x6a4   : > { %v2595_v6 = vpop.eup %2594 }
 0x6a5   : > { %v1691_v52 = vmul.f32 1.442695, %v2595_v6 }
 0x6a7   : > { %2596 = vpow2.f32 %v1691_v52 }
 0x6b1   : > { %v2597_v7 = vpop.eup %2596 }
 0x6b2   : > { %1710 = vperm.xlu1 %2588, %v2597_v7   ;;  %v1695_v12 = vsel %vm1694_vm8, %v2597_v7, 0.0 }
 0x6b3   : > { %1696 = vadd.xlane.f32.xlu0 %v1695_v12 }
 0x6b6   : > { %2589 = vset.pattern.permute.xlu1 %v2758_v14 }
 0x6b7   : > { %1723 = vperm.xlu1 %2589, %v2597_v7  }
 0x6bb   : > { %2590 = vset.pattern.permute.xlu1 %v2759_v15 }
 0x6bc   : > { %1737 = vperm.xlu1 %2590, %v2597_v7  }
 0x6c0   : > { %2591 = vset.pattern.permute.xlu1 %v2760_v16 }
 0x6c1   : > { %1751 = vperm.xlu1 %2591, %v2597_v7  }
 0x6c5   : > { %2592 = vset.pattern.permute.xlu1 %v2761_v18  ;;  %v1777_v18 = vld [vmem:[#allocation4] sm:$0x1] }
 0x6c6   : > { %1765 = vperm.xlu1 %2592, %v2597_v7  }
 0x6ca   : > { %2593 = vset.pattern.permute.xlu1 %v2757_v24 }
 0x731   : > { %v1711_v42 = vpop.permute.xlu1 %1710 }
 0x732   : > { %v1713_v20 = vmul.f32 %v1711_v42, %v1707_v19 }
 0x734   : > { %v1714_v22 = vsel %vm534_vm2, %v1713_v20, 0.0 }
 0x735   : > { %v1715_v29 = vrot.slane %v1714_v22, 4 }
 0x736   : > { %v1724_v27 = vpop.permute.xlu1 %1723 }
 0x737   : > { %v1726_v28 = vmul.f32 %v1724_v27, %v1721_v23  ;;  %v1716_v41 = vadd.f32 %v1715_v29, %v1714_v22  ;;  %v1792_v22 = vshrl.u32 %v610_v36, 7 }
 0x739   : > { %v1727_v35 = vsel %vm534_vm2, %v1726_v28, 0.0  ;;  %v1717_v48 = vrot.slane %v1716_v41, 2  ;;  %v1793_v23 = vsub.s32 0, %v1792_v22 }
 0x73a   : > { %v1728_v37 = vrot.slane %v1727_v35, 4 }
 0x73b   : > { %v1738_v39 = vpop.permute.xlu1 %1737  ;;  %v1718_v3 = vadd.f32 %v1717_v48, %v1716_v41 }
 0x73c   : > { %v1729_v40 = vadd.f32 %v1728_v37, %v1727_v35  ;;  %v1740_v24 = vmul.f32 %v1738_v39, %v1735_v38 }
 0x73d   : > { %v1719_v58 = vrot.slane %v1718_v3, 1 }
 0x73e   : > { %v1741_v50 = vsel %vm534_vm2, %v1740_v24, 0.0  ;;  %v1730_v1 = vrot.slane %v1729_v40, 2 }
 0x73f   : > { %v1742_v55 = vrot.slane %v1741_v50, 4  ;;  %v1720_v21 = vadd.f32 %v1719_v58, %v1718_v3 }
 0x740   : > { %v1752_v8 = vpop.permute.xlu1 %1751  ;;  %v1697_v47 = vpop.xlane.xlu0 %1696  ;;  %v1731_v45 = vadd.f32 %v1730_v1, %v1729_v40 }
 0x741   : > { %v1743_v43 = vadd.f32 %v1742_v55, %v1741_v50  ;;  %v1754_v25 = vmul.f32 %v1752_v8, %v1749_v2  ;;  %v1698_v30 = vrot.slane %v1697_v47, 4 }
 0x742   : > { %v1732_v44 = vrot.slane %v1731_v45, 1 }
 0x743   : > { %v1744_v46 = vrot.slane %v1743_v43, 2  ;;  %v1755_v5 = vsel %vm534_vm2, %v1754_v25, 0.0  ;;  %v1699_v10 = vadd.f32 %v1698_v30, %v1697_v47 }
 0x744   : > { %v1756_v51 = vrot.slane %v1755_v5, 4  ;;  %v1733_v62 = vadd.f32 %v1732_v44, %v1731_v45 }
 0x745   : > { %v1745_v56 = vadd.f32 %v1744_v46, %v1743_v43  ;;  %v1700_v9 = vrot.slane %v1699_v10, 2  ;;  %v1766_v54 = vpop.permute.xlu1 %1765 }
 0x746   : > { %v1757_v57 = vadd.f32 %v1756_v51, %v1755_v5  ;;  %v1768_v33 = vmul.f32 %v1766_v54, %v1763_v53  ;;  %v1734_v6 = vadd.f32 %v1733_v62, %v1720_v21 }
 0x747   : > { %v1701_v26 = vadd.f32 %v1700_v9, %v1699_v10  ;;  %v1746_v11 = vrot.slane %v1745_v56, 1 }
 0x748   : > { %v1758_v32 = vrot.slane %v1757_v57, 2  ;;  %v1769_v34 = vsel %vm534_vm2, %v1768_v33, 0.0 }
 0x749   : > { %v1702_v59 = vrot.slane %v1701_v26, 1  ;;  %v1770_v49 = vrot.slane %v1769_v34, 4  ;;  %v1747_v31 = vadd.f32 %v1746_v11, %v1745_v56 }
 0x74a   : > { %v1759_v60 = vadd.f32 %v1758_v32, %v1757_v57 }
 0x74b   : > { %v1703_v63 = vadd.f32 %v1702_v59, %v1701_v26  ;;  %v1771_v0 = vadd.f32 %v1770_v49, %v1769_v34  ;;  %v1748_v12 = vadd.f32 %v1747_v31, %v1734_v6 }
 0x74c   : > { %v1760_v17 = vrot.slane %v1759_v60, 1 }
 0x74d   : > { %v1704_v61 = vadd.f32 %v1703_v63, %v1693_v13  ;;  %v1772_v4 = vrot.slane %v1771_v0, 2 }
 0x74e   : > { %v1761_v52 = vadd.f32 %v1760_v17, %v1759_v60 }
 0x74f   : > { %1706 = vst.msk [vmem:[#allocation3] sm:$0x1] %vm420_vm9, %v1704_v61  ;;  %v1773_v7 = vadd.f32 %v1772_v4, %v1771_v0 }
 0x750   : > { %v1762_v15 = vadd.f32 %v1761_v52, %v1748_v12 }
 0x751   : > { %v1774_v14 = vrot.slane %v1773_v7, 1 }
 0x753   : > { %v1775_v16 = vadd.f32 %v1774_v14, %v1773_v7 }
 0x755   : > { %v1776_v19 = vadd.f32 %v1775_v16, %v1762_v15 }
 0x756   : > { %v1785_v42 = vld [vmem:[#allocation3] sm:$0x1] }
 0x757   : > { %v1778_v20 = vadd.f32 %v1777_v18, %v1776_v19  ;;  %1788 = vperm.xlu1 %2593, %v1785_v42  }
 0x759   : > { %1780 = vst.msk [vmem:[#allocation4] sm:$0x1] %vm422_vm10, %v1778_v20 }
 0x760   : > { %v1784_v35 = vld [vmem:[#allocation4] sm:$0x1] }
 0x7d6   : > { %v1789_v27 = vpop.permute.xlu1 %1788 }
 0x7d7   : > { %v1794_v28 = vrot.slane %v1789_v27, %v1793_v23 }
 0x7d9   : > { %2598 = vrcp.f32 %v1794_v28 }
 0x7e3   : > { %v2599_v29 = vpop.eup %2598 }
 0x7e4   : > { %v1796_v37 = vmul.f32 %v2599_v29, %v1784_v35 }
 0x7e6   : > { %1797 = vst.msk [vmem:[%s415_s10] sm:$0x1] %vm422_vm10, %v1796_v37 }
 0x7e7 PF: > { %s22_s29 = sadd.s32 1, %s2746_s29   ;;  %s3339_s2 = sld [smem:[#allocation15_spill]] }
 0x7e8   : > { %p19_p8 = scmp.ge.s32.totalorder %s22_s29, 4   ;;  %s3340_s27 = smov %s2742_s28 }
 0x7ea   :  { %21 = sbr.rel (!%p19_p8) target bundleno = 6 (0x6), region = 126 }
 0x7ed   : > { %s3341_s28 = smov %s3339_s2 }
 0x7f1   :  { %1835 = vsyncpa [#allocation6], 1 }
 0x7f2   :  { %1837 = vsyncpa [#allocation6 + $0x1], 1 }
 0x7f3   :  { %1838 = vsyncpa [#allocation8], 1 }
 0x7f4   :  { %1839 = vsyncpa [#allocation11], 1 }

// kernel: palnet_2blk_forward.3
= control target key start
LH: loop header
LB: loop body
LE: loop exit
PB: predicated region body
PF: predicated region fallthrough
CT: control target
= control target key end

     0   :  { %s3047_s0 = inlined_call_operand.vmem [shape: f32[2,5,40,3], index: 0, kind: input, shape index: {}]   ;;  %s3048_s1 = inlined_call_operand.hbm [shape: f32[3,32], index: 1, kind: input, shape index: {}]   ;;  %s3049_s2 = inlined_call_operand.hbm [shape: f32[1,32], index: 2, kind: input, shape index: {}]   ;;  %s3050_s3 = inlined_call_operand.hbm [shape: f32[32,32], index: 3, kind: input, shape index: {}]   ;;  %s3051_s4 = inlined_call_operand.hbm [shape: f32[1,32], index: 4, kind: input, shape index: {}]   ;;  %s3052_s5 = inlined_call_operand.vmem [shape: f32[32,1], index: 5, kind: input, shape index: {}]   ;;  %s3053_s6 = inlined_call_operand.vmem [shape: f32[5,8,5], index: 6, kind: input, shape index: {}]   ;;  %s3054_s7 = inlined_call_operand.vmem [shape: f32[2,40,32], index: 7, kind: output, shape index: {0}]   ;;  %s3055_s8 = inlined_call_operand.vmem [shape: f32[2,1,32], index: 8, kind: output, shape index: {1}]  }
   0x1   :  { %3062 = sst [smem:[#allocation19_spill]] %s3048_s1 }
   0x2   :  { %3063 = sst [smem:[#allocation20_spill]] %s3049_s2 }
   0x3   :  { %3064 = sst [smem:[#allocation21_spill]] %s3052_s5 }
   0x4   :  { %3065 = sst [smem:[#allocation22_spill]] %s3054_s7 }
   0x5   :  { %14 = vsyncpa [#allocation7], 0 }
   0x6   :  { %15 = vsyncpa [#allocation9], 0 }
   0x7   :  { %16 = vsyncpa [#allocation12], 0  ;;  %s2635_s27 = smov 0   ;;  %s2637_s28 = smov 0  }
   0x8   :  { %s2639_s29 = smov 0   ;;  %s2641_s30 = smov 0  }
   0x9   :  { %s2643_s9 = smov 0   ;;  %s2645_s10 = smov 0  }
   0xa   :  { %s2647_s11 = smov 0  }
   0xb LB: > { %s1962_s12 = sadd.s32 4294967295, %s2572_s11   ;;  %s31_s13 = sadd.s32 1, %s2564_s9  ;;  %s2572_s11 = sphi %s2647_s11, %s22_s11   ;;  %s2568_s10 = sphi %s2645_s10, %s3089_s10   ;;  %s2564_s9 = sphi %s2643_s9, %s3088_s9   ;;  %s2560_s30 = sphi %s2641_s30, %s3087_s30   ;;  %s2556_s29 = sphi %s2639_s29, %s3086_s29   ;;  %s2552_s28 = sphi %s2637_s28, %s3085_s28   ;;  %s2548_s27 = sphi %s2635_s27, %s3084_s27  }
   0xc   : > { %p32_p0 = scmp.ge.s32.totalorder %s31_s13, 5  ;;  %s34_s14 = sadd.s32 1, %s2568_s10 }
   0xd   : > { %s43_s15 = sadd.s32 1, %s2552_s28  ;;  %p50_p1 = scmp.ne.s32.totalorder %s2552_s28, %s2548_s27 }
   0xe   : > { %s3091_s13 = smov (%p32_p0, %s31_s13), 0  ;;  %s3093_s14 = smov (!%p32_p0, %s34_s14), %s2568_s10 }
   0xf   : > { %3066 = sst [smem:[#allocation16_spill]] %s3091_s13  ;;  %s39_s16 = ssub.s32 %s2564_s9, %s3091_s13 }
  0x10   : > { %p51_p2 = scmp.eq.s32.totalorder %s2572_s11, 0  ;;  %p36_p3 = scmp.ge.s32.totalorder %s3093_s14, 2 }
  0x11   : > { %p1964_p4 = scmp.ge.s32.totalorder %s2572_s11, 1  ;;  %p252_p6 = scmp.lt.s32.totalorder %s2572_s11, 11 }
  0x12   : > { %p2683_p5 = por %p51_p2, %p50_p1  ;;  %s3095_s14 = smov (%p36_p3, %s3093_s14), 0 }
  0x13   : > { %3068 = sst [smem:[#allocation17_spill]] %s3095_s14  ;;  %p2690_p7 = pnand %p1964_p4, %p252_p6 }
  0x14   : > { %s3067_s17 = scalar_select %p2683_p5, 1, 0 }
  0x15   : > { %s3069_s18 = scalar_select %p2690_p7, 1, 0 }
  0x16   : > { %s38_s19 = ssub.s32 %s2568_s10, %s3095_s14  ;;  %p2696_p8 = scmp.eq.s32.totalorder %s1962_s12, 0 }
  0x17   : > { %s40_s21 = sor.u32 %s39_s16, %s38_s19  ;;  %p2288_p9 = pneg %p2690_p7 }
  0x18   : > { %s3070_s20 = scalar_select %p2696_p8, 1, 0 }
  0x19   : > { %p41_p10 = scmp.eq.s32.totalorder %s40_s21, 0  ;;  %p2704_p11 = pnand %p2696_p8, %p2288_p9 }
  0x1a   : > { %s2574_s23 = smov [#allocation8]   ;;  %s3073_s2 = sld [smem:[#allocation20_spill]] }
  0x1b   : > { %s276_s24 = sshll.u32 %s2574_s23, 4  ;;  %p2719_p13 = pneg %p2704_p11  ;;  %s277_s24 = int_to_ptr.vmem [resolvable:$true] %s276_s24 }
  0x1c   : > { %s2709_s25 = scalar_select %p41_p10, %s2552_s28, %s43_s15  }
  0x1e   : > { %3072 = sst [smem:[#allocation18_spill]] %s2709_s25 }
  0x20   : > { %s2394_s14 = scalar_lea.hbm %s3073_s2, 16 }
  0x21   : > { %p2395_p12 = scmp.ne.s32.totalorder %s3073_s2, %s2394_s14  ;;  %p2401_p2 = scmp.lt.u32.totalorder %s2394_s14, %s3073_s2 }
  0x23   : > { %p2397_p0 = pnand %p2719_p13, %p2395_p12 }
  0x25   : > { %p2398_p1 = pneg %p2397_p0 }
  0x27   : > { %p2403_p3 = pnand %p2401_p2, %p2398_p1 }
  0x29   : > { %2406 = shalt.err (!%p2403_p3)
}
  0x2a   : > { %s2407_s23 = scalar_lea.vmem %s277_s24, 16  ;;  %s2414_s13 = scalar_lea.vmem %s277_s24, 32 }
  0x2b   : > { %p2408_p4 = scmp.ne.s32.totalorder %s277_s24, %s2407_s23  ;;  %p2415_p10 = scmp.lt.s32.totalorder %s277_s24, %s277_s24 }
  0x2c   : > { %p2416_p8 = scmp.lt.s32.totalorder %s2414_s13, %s2407_s23 }
  0x2d   : > { %p2410_p6 = pnand %p2408_p4, %p2719_p13 }
  0x2e   : > { %p2417_p7 = por %p2416_p8, %p2415_p10 }
  0x2f   : > { %p2411_p9 = pneg %p2410_p6 }
  0x31   : > { %p2418_p5 = pnand %p2417_p7, %p2411_p9 }
  0x33   : > { %2421 = shalt.err (!%p2418_p5)
}
  0x34   : > { %2294 = dma.hbm_to_vmem [thread:$0]  (!%p2704_p11), %s3073_s2, 16, %s277_s24, [#allocation9]  }
  0x35   : > { %s2575_s14 = smov [#allocation6]   ;;  %s2576_s15 = smov [#allocation10]  }
  0x36   : > { %s265_s16 = sshll.u32 %s2575_s14, 4  ;;  %s286_s21 = sshll.u32 %s2576_s15, 4  ;;  %s266_s16 = int_to_ptr.vmem [resolvable:$true] %s265_s16  ;;  %s2735_s21 = int_to_ptr.vmem [resolvable:$true] %s286_s21 }
  0x37   : > { %s3075_s1 = sld [smem:[#allocation19_spill]] }
  0x3d   : > { %s2422_s23 = scalar_lea.hbm %s3075_s1, 64 }
  0x3e   : > { %p2423_p5 = scmp.ne.s32.totalorder %s3075_s1, %s2422_s23  ;;  %p2429_p12 = scmp.lt.u32.totalorder %s2422_s23, %s3075_s1 }
  0x40   : > { %p2425_p7 = pnand %p2423_p5, %p2719_p13 }
  0x42   : > { %p2426_p8 = pneg %p2425_p7 }
  0x44   : > { %p2431_p0 = pnand %p2429_p12, %p2426_p8 }
  0x46   : > { %2434 = shalt.err (!%p2431_p0)
}
  0x47   : > { %s2435_s12 = scalar_lea.vmem %s266_s16, 64  ;;  %p2443_p4 = scmp.lt.s32.totalorder %s266_s16, %s266_s16 }
  0x48   : > { %p2436_p1 = scmp.ne.s32.totalorder %s266_s16, %s2435_s12  ;;  %p2444_p6 = scmp.lt.s32.totalorder %s2435_s12, %s2435_s12 }
  0x4a   : > { %p2438_p2 = pnand %p2436_p1, %p2719_p13  ;;  %p2445_p9 = por %p2444_p6, %p2443_p4 }
  0x4c   : > { %p2439_p3 = pneg %p2438_p2 }
  0x4e   : > { %p2446_p10 = pnand %p2445_p9, %p2439_p3 }
  0x50   : > { %2449 = shalt.err (!%p2446_p10)
}
  0x51   : > { %2291 = dma.hbm_to_vmem [thread:$0]  (!%p2704_p11), %s3075_s1, 64, %s266_s16, [#allocation7]  }
  0x52   : > { %s2450_s15 = scalar_lea.hbm %s3050_s3, 512 }
  0x53   : > { %p2451_p5 = scmp.ne.s32.totalorder %s3050_s3, %s2450_s15  ;;  %p2457_p12 = scmp.lt.u32.totalorder %s2450_s15, %s3050_s3 }
  0x55   : > { %p2453_p7 = pnand %p2451_p5, %p2719_p13 }
  0x57   : > { %p2454_p8 = pneg %p2453_p7 }
  0x59   : > { %p2459_p0 = pnand %p2457_p12, %p2454_p8 }
  0x5b   : > { %2462 = shalt.err (!%p2459_p0)
}
  0x5c   : > { %s2463_s16 = scalar_lea.vmem %s2735_s21, 512  ;;  %p2471_p4 = scmp.lt.s32.totalorder %s2735_s21, %s2735_s21 }
  0x5d   : > { %p2464_p1 = scmp.ne.s32.totalorder %s2735_s21, %s2463_s16  ;;  %p2472_p6 = scmp.lt.s32.totalorder %s2463_s16, %s2463_s16 }
  0x5f   : > { %p2466_p2 = pnand %p2464_p1, %p2719_p13  ;;  %p2473_p9 = por %p2472_p6, %p2471_p4 }
  0x61   : > { %p2467_p3 = pneg %p2466_p2 }
  0x63   : > { %p2474_p10 = pnand %p2473_p9, %p2467_p3 }
  0x65   : > { %2477 = shalt.err (!%p2474_p10)
}
  0x66   : > { %s2577_s12 = smov 128   ;;  %s2578_s5 = smov 8  }
  0x67   : > { %2297 = dma.hbm_to_vmem [thread:$0]  (!%p2704_p11), %s3050_s3, 512, %s2735_s21, [#allocation9], %s2577_s12, %s2577_s12, %s2578_s5  }
  0x68   : > { %s2579_s14 = smov [#allocation11]   ;;  %s2478_s26 = scalar_lea.hbm %s3051_s4, 16 }
  0x69   : > { %s300_s15 = sshll.u32 %s2579_s14, 4  ;;  %p2479_p5 = scmp.ne.s32.totalorder %s3051_s4, %s2478_s26  ;;  %s301_s15 = int_to_ptr.vmem [resolvable:$true] %s300_s15 }
  0x6a   : > { %p2485_p12 = scmp.lt.u32.totalorder %s2478_s26, %s3051_s4 }
  0x6b   : > { %p2481_p7 = pnand %p2479_p5, %p2719_p13 }
  0x6d   : > { %p2482_p8 = pneg %p2481_p7 }
  0x6f   : > { %p2487_p0 = pnand %p2485_p12, %p2482_p8 }
  0x71   : > { %2490 = shalt.err (!%p2487_p0)
}
  0x72   : > { %s2491_s21 = scalar_lea.vmem %s301_s15, 16  ;;  %s2498_s12 = scalar_lea.vmem %s301_s15, 32 }
  0x73   : > { %p2492_p1 = scmp.ne.s32.totalorder %s301_s15, %s2491_s21  ;;  %p2499_p4 = scmp.lt.s32.totalorder %s301_s15, %s301_s15 }
  0x74   : > { %p2500_p6 = scmp.lt.s32.totalorder %s2498_s12, %s2491_s21 }
  0x75   : > { %p2494_p2 = pnand %p2492_p1, %p2719_p13 }
  0x76   : > { %p2501_p9 = por %p2500_p6, %p2499_p4 }
  0x77   : > { %p2495_p3 = pneg %p2494_p2 }
  0x79   : > { %p2502_p10 = pnand %p2501_p9, %p2495_p3 }
  0x7b   : > { %2505 = shalt.err (!%p2502_p10)
}
  0x7c   : > { %2300 = dma.hbm_to_vmem [thread:$0]  (!%p2704_p11), %s3051_s4, 16, %s301_s15, [#allocation12]  }
  0x7d   : > { %p1969_p5 = scmp.ge.s32.totalorder %s2572_s11, 10 }
  0x7e   : > { %p3076_p7 = scmp.ne.s32.totalorder (!%p1969_p5), %s3067_s17, 0 }
  0x7f   : > { %310 = sbr.rel (%p1969_p5) target bundleno = 144 (0x90), region = 36 }
  0x86   : > { %313 = sbr.rel (!%p3076_p7) target bundleno = 144 (0x90), region = 40  ;;  %s315_s1 = sand.u32 (%p3076_p7), 1, %s2552_s28  }
  0x87   : > { %s2269_s2 = smul.u32 (%p3076_p7), 25, %s2568_s10 }
  0x88   : > { %s2268_s19 = smul.u32 (%p3076_p7), 40, %s315_s1 }
  0x89   : > { %s319_s25 = sadd.s32 (%p3076_p7), %s2564_s9, %s2269_s2 }
  0x8a   : > { %s1970_s14 = sshll.u32 (%p3076_p7), %s319_s25, 3  ;;  %s317_s15 = scalar_lea.vmem (%p3076_p7), [#allocation5], %s2268_s19 }
  0x8b   : > { %s321_s13 = scalar_lea.vmem (%p3076_p7), %s3047_s0, %s1970_s14 }
  0x8c   : > { %v357_v0 = vld [vmem:[%s321_s13] sm:$0xff] (%p3076_p7)  ;;  %v359_v1 = vld [vmem:[%s321_s13 + $0x28] sm:$0xff] (%p3076_p7)  ;;  %v361_v2 = vld [vmem:[%s321_s13 + $0x50] sm:$0xff] (%p3076_p7) }
  0x8d   : > { %358 = vst [vmem:[%s317_s15] sm:$0xff] %v357_v0  ;;  %360 = vst [vmem:[%s317_s15 + $0x8] sm:$0xff] %v359_v1  ;;  %v363_v3 = vld [vmem:[%s321_s13 + $0x78] sm:$0xff]  ;;  %v365_v4 = vld [vmem:[%s321_s13 + $0xa0] sm:$0xff] }
  0x8e   : > { %362 = vst [vmem:[%s317_s15 + $0x10] sm:$0xff] %v361_v2  ;;  %364 = vst [vmem:[%s317_s15 + $0x18] sm:$0xff] %v363_v3 }
  0x8f   : > { %366 = vst [vmem:[%s317_s15 + $0x20] sm:$0xff] %v365_v4 }
  0x90 PF: > { %p3077_p11 = scmp.ne.s32.totalorder %s3069_s18, 0 }
  0x91   : > { %s385_s17 = sand.u32 (!%p3077_p11), 1, %s2548_s27   ;;  %p3078_p13 = scmp.ne.s32.totalorder (!%p3077_p11), %s3070_s20, 0 }
  0x92   : > { %382 = sbr.rel (%p3077_p11) target bundleno = 2075 (0x81b), region = 82 }
  0x93   : > { %s2270_s26 = smul.u32 (!%p3077_p11), 40, %s385_s17 }
  0x95   : > { %s2808_s24 = scalar_lea.vmem (!%p3077_p11), [#allocation5], %s2270_s26 }
  0x99   : > { %2535 = dma.done.wait (%p3078_p13), [#allocation7], 64  }
  0x9a   : > { %2537 = vsyncadd (%p3078_p13), [#allocation7], 4294967232 }
  0x9b   : > { %2539 = dma.done.wait (%p3078_p13), [#allocation9], 528  }
  0x9c   : > { %2541 = vsyncadd (%p3078_p13), [#allocation9], 4294966768 }
  0x9d   : > { %2543 = dma.done.wait (%p3078_p13), [#allocation12], 16  }
  0x9e   : > { %2545 = vsyncadd (%p3078_p13), [#allocation12], 4294967280  ;;  %p444_p8 = scmp.lt.s32.totalorder %s2556_s29, 4  ;;  %p448_p12 = scmp.lt.s32.totalorder %s2560_s30, 1 }
  0x9f   : > { %s3079_s23 = sld [smem:[#allocation22_spill]]  ;;  %p1978_p0 = scmp.ne.s32.totalorder %s2556_s29, 0 }
  0xa0   : > { %s445_s27 = scalar_select %p444_p8, %s2556_s29, 4 }
  0xa1   : > { %s3097_s30 = smov (!%p448_p12, %s2560_s30), 1  ;;  %462 = sbr.rel (%p1978_p0) target bundleno = 168 (0xa8), region = 106 }
  0xa2   : > { %s1976_s18 = sshll.u32 %s445_s27, 3  ;;  %s2271_s5 = smul.u32 5, %s3097_s30  ;;  %vm463_vm0 = vcmask (!%p1978_p0), 0   ;;  %vm465_vm1 = vcmask (!%p1978_p0), 253952   ;;  %v2580_v5 = vmov (!%p1978_p0), 0.0  }
  0xa3   : > { %s2831_s12 = scalar_lea.vmem %s3053_s6, %s1976_s18  ;;  %s458_s1 = scalar_lea.vmem %s3055_s8, %s3097_s30  ;;  %464 = vst.msk [vmem:[#allocation3] sm:$0x1] (!%p1978_p0), %vm463_vm0, %v2580_v5 }
  0xa4   : > { %s453_s2 = sadd.s32 %s2271_s5, %s445_s27  ;;  %466 = vst.msk [vmem:[#allocation4] sm:$0x1] (!%p1978_p0), %vm465_vm1, %v2580_v5 }
  0xa5   : > { %s1977_s19 = sshll.u32 %s453_s2, 3 }
  0xa6   : > { %s2841_s22 = scalar_lea.vmem %s3079_s23, %s1977_s19 }
  0xa8 PF: > { %v2844_v6 = vld [vmem:[#allocation6] sm:$0x7]  ;;  %vm489_vm2 = vcmask 1042432   ;;  %v478_v7 = vld [vmem:[%s2808_s24] sm:$0xff]  ;;  %v2581_v8 = vmov 0.0   ;;  %vm2582_vm3 = vmmov 0   ;;  %v646_v22 = vlaneseq }
  0xa9   : > { %2073 = vmatprep.subr.mxu0 %v2581_v8  ;;  %2075 = vmatprep.mubr.msk.f32.mxu0 %vm2582_vm3, %v2581_v8  ;;  %vm485_vm4 = vcmask 23552   ;;  %v469_v9 = vld [vmem:[#allocation10] sm:$0xff]  ;;  %v470_v10 = vld [vmem:[#allocation10 + $0x8] sm:$0xff]  ;;  %v2583_v11 = vmov 0.0|0.0   ;;  %v471_v14 = vld [vmem:[#allocation10 + $0x10] sm:$0xff]  ;;  %s3080_s17 = sld [smem:[#allocation21_spill]] }
  0xaa   : > { %2074 = vmatpush3.msk.msra.mxu0 %vm489_vm2, %v2844_v6  ;;  %2208 = vmatprep.subr.bf16.mxu1 %v2583_v11  ;;  %v2853_v12 = vpack.c.bf16 %v470_v10, %v469_v9  ;;  %v1985_v13 = vld [vmem:[%s2808_s24 + $0x8] sm:$0xff]  ;;  %v2584_v19 = vmov 0   ;;  %v647_v27 = vand.u32 127, %v646_v22  ;;  %vm570_vm5 = vcmask 261120   ;;  %p2010_p1 = scmp.ne.s32.totalorder %s2556_s29, 4 }
  0xab   : > { %2076 = vmatmul.mubr.msk.f32.vlgmr.msra.gmra.mrb[0].mxu0 %vm485_vm4, %v478_v7  ;;  %2089 = vmatprep.subr.mxu0 %v2581_v8  ;;  %v472_v15 = vld [vmem:[#allocation10 + $0x18] sm:$0xff]  ;;  %v2931_v10 = vld [vmem:[#allocation11] ss:$0 sm:$0xff]  ;;  %vm1690_vm11 = vcmask 39936   ;;  %vm1775_vm12 = vcmask 253952   ;;  %vm1701_vm13 = vcmask 0  }
  0xac   : > { %2090 = vmatpush3.msk.msra.mxu0 %vm489_vm2, %v2844_v6  ;;  %2091 = vmatprep.mubr.msk.f32.mxu0 %vm2582_vm3, %v2581_v8  ;;  %v2872_v16 = vpack.c.bf16 %v472_v15, %v471_v14  ;;  %v2890_v23 = vld [vmem:[#allocation8] ss:$0 sm:$0xff]  ;;  %vm1134_vm6 = vcmp.eq.s32.totalorder %v647_v27, 2  ;;  %vm1368_vm7 = vcmp.eq.s32.totalorder %v647_v27, 3  ;;  %vm1602_vm8 = vcmp.eq.s32.totalorder %v647_v27, 4 }
  0xad   : > { %2210 = vmatpush3.bf16.msra.mxu1 %v2853_v12  ;;  %2214 = vmatprep.subr.bf16.mxu0 %v2583_v11  ;;  %vm648_vm9 = vcmp.eq.s32.totalorder %v647_v27, 0  ;;  %vm828_vm10 = vcmp.eq.s32.totalorder %v647_v27, 1  ;;  %v1996_v33 = vsel %vm1134_vm6, 1.0, %v2581_v8  ;;  %v2002_v34 = vsel %vm1368_vm7, 1.0, %v2581_v8 }
  0xae   : > { %2211 = vmatprep.subr.bf16.mxu1 %v2583_v11  ;;  %2086 = vmatprep.mubr.msk.f32.mxu1 %vm2582_vm3, %v2581_v8  ;;  %v2008_v35 = vsel %vm1602_vm8, 1.0, %v2581_v8  ;;  %v1984_v36 = vsel %vm648_vm9, 1.0, %v2581_v8  ;;  %v1989_v37 = vsel %vm828_vm10, 1.0, %v2581_v8 }
  0xaf   : > { %2092 = vmatmul.mubr.msk.f32.vlgmr.msra.gmra.mrb[2].mxu0 %vm485_vm4, %v1985_v13  ;;  %v474_v17 = vld [vmem:[%s3080_s17] sm:$0xff]  ;;  %v476_v18 = vld [vmem:[%s3080_s17 + $0x10] sm:$0xff]  ;;  %2381 = vset.pattern.permute.xlu0 %v2584_v19  ;;  %v475_v20 = vld [vmem:[%s3080_s17 + $0x8] sm:$0xff] }
  0xb0   : > { %2216 = vmatpush3.bf16.msra.mxu0 %v2853_v12  ;;  %2102 = vmatprep.mubr.msk.f32.mxu0 %vm2582_vm3, %v2581_v8  ;;  %v477_v21 = vld [vmem:[%s3080_s17 + $0x18] sm:$0xff] }
  0xb1   : > { %2217 = vmatprep.subr.bf16.mxu0 %v2583_v11  ;;  %2213 = vmatpush3.bf16.msra.mxu1 %v2872_v16 }
  0xb2   : > { %2220 = vmatprep.subr.bf16.mxu1 %v2583_v11  ;;  %2382 = vset.pattern.permute.xlu1 %v2584_v19 }
  0xb3   : > { %653 = vperm.xlu0 %2381, %v474_v17   ;;  %663 = vperm.xlu1 %2382, %v476_v18  }
  0xb4   : > { %2219 = vmatpush3.bf16.msra.mxu0 %v2872_v16 }
  0xb5   : > { %2226 = vmatprep.subr.bf16.mxu0 %v2583_v11 }
  0xb7   : > { %658 = vperm.xlu0 %2381, %v475_v20   ;;  %668 = vperm.xlu1 %2382, %v477_v21  }
 0x132   : > { %v654_v38 = vpop.permute.xlu0 %653  ;;  %v664_v41 = vpop.permute.xlu1 %663 }
 0x133   : > { %v1137_v39 = vmul.f32 %v1996_v33, %v654_v38  ;;  %v2906_v40 = vmul.f32 %v2002_v34, %v654_v38  ;;  %v2908_v42 = vmul.f32 %v2008_v35, %v654_v38  ;;  %v1139_v43 = vmul.f32 %v1996_v33, %v664_v41 }
 0x134   : > { %v671_v44 = vmul.f32 %v1984_v36, %v654_v38  ;;  %v831_v45 = vmul.f32 %v1989_v37, %v654_v38  ;;  %v2910_v46 = vmul.f32 %v2002_v34, %v664_v41  ;;  %v2912_v47 = vmul.f32 %v2008_v35, %v664_v41 }
 0x135   : > { %v673_v57 = vmul.f32 %v1984_v36, %v664_v41  ;;  %v833_v59 = vmul.f32 %v1989_v37, %v664_v41 }
 0x136   : > { %v659_v48 = vpop.permute.xlu0 %658  ;;  %v669_v54 = vpop.permute.xlu1 %668 }
 0x137   : > { %v672_v49 = vmul.f32 %v1984_v36, %v659_v48  ;;  %v832_v50 = vmul.f32 %v1989_v37, %v659_v48  ;;  %v1138_v53 = vmul.f32 %v1996_v33, %v659_v48  ;;  %v2916_v55 = vmul.f32 %v2002_v34, %v659_v48 }
 0x138   : > { %v2918_v56 = vmul.f32 %v2008_v35, %v659_v48  ;;  %v674_v58 = vmul.f32 %v1984_v36, %v669_v54  ;;  %v834_v60 = vmul.f32 %v1989_v37, %v669_v54  ;;  %v1140_v62 = vmul.f32 %v1996_v33, %v669_v54 }
 0x139   : > { %v2227_v51 = vpack.c.bf16 %v672_v49, %v671_v44  ;;  %v2221_v52 = vpack.c.bf16 %v832_v50, %v831_v45  ;;  %v2239_v61 = vpack.c.bf16 %v1138_v53, %v1137_v39  ;;  %v1374_v63 = vmul.f32 %v2002_v34, %v669_v54 }
 0x13a   : > { %v2251_v0 = vpack.c.bf16 %v2916_v55, %v2906_v40  ;;  %v2263_v1 = vpack.c.bf16 %v2918_v56, %v2908_v42  ;;  %v2924_v2 = vmul.f32 %v2008_v35, %v669_v54  ;;  %v2230_v3 = vpack.c.bf16 %v674_v58, %v673_v57  ;;  %v1998_v35 = vld [vmem:[%s2808_s24 + $0x18] sm:$0xff] }
 0x13b   : > { %v2224_v4 = vpack.c.bf16 %v834_v60, %v833_v59  ;;  %v2242_v5 = vpack.c.bf16 %v1140_v62, %v1139_v43  ;;  %v2254_v7 = vpack.c.bf16 %v1374_v63, %v2910_v46  ;;  %v2004_v46 = vld [vmem:[%s2808_s24 + $0x20] sm:$0xff] }
 0x13c   : > { %v2266_v9 = vpack.c.bf16 %v2924_v2, %v2912_v47 }
 0x17e   : > { %v559_v24 = vpop.f32.mrb[0].mxu0 }
 0x17f   : > { %v560_v25 = vadd.f32 %v2890_v23, %v559_v24  ;;  %v2077_v26 = vpop.f32.mrb[1].mxu0 }
 0x181   : > { %v563_v28 = vmax.f32 %v560_v25, 0.0  ;;  %v1992_v25 = vld [vmem:[%s2808_s24 + $0x10] sm:$0xff] }
 0x182   : > { %v746_v29 = vpop.f32.mrb[2].mxu0 }
 0x183   : > { %v747_v30 = vadd.f32 %v2890_v23, %v746_v29  ;;  %2087 = vmatmul.mubr.msk.f32.vlgmr.msra.gmra.mrb[0].mxu1 %vm570_vm5, %v563_v28  ;;  %v2093_v31 = vpop.f32.mrb[3].mxu0 }
 0x184   : > { %2113 = vmatprep.mubr.msk.f32.mxu1 %vm2582_vm3, %v2581_v8  ;;  %2222 = vmatpush3.bf16.msra.mxu1 %v2221_v52 }
 0x185   : > { %v750_v32 = vmax.f32 %v747_v30, 0.0  ;;  %2223 = vmatprep.subr.bf16.mxu1 %v2583_v11 }
 0x187   : > { %2103 = vmatmul.mubr.msk.f32.vlgmr.msra.gmra.mrb[4].mxu0 %vm570_vm5, %v750_v32 }
 0x188   : > { %2124 = vmatprep.mubr.msk.f32.mxu0 %vm2582_vm3, %v2581_v8  ;;  %2228 = vmatpush3.bf16.msra.mxu0 %v2227_v51 }
 0x189   : > { %2229 = vmatprep.subr.bf16.mxu0 %v2583_v11  ;;  %2225 = vmatpush3.bf16.msra.mxu1 %v2224_v4 }
 0x18a   : > { %2127 = vmatprep.subr.mxu1 %v2581_v8 }
 0x18c   : > { %2231 = vmatpush3.bf16.msra.mxu0 %v2230_v3 }
 0x18d   : > { %2238 = vmatprep.subr.bf16.mxu0 %v2583_v11 }
 0x256   : > { %v640_v13 = vpop.f32.mrb[0].mxu1 }
 0x257   : > { %v641_v14 = vadd.f32 %v2931_v10, %v640_v13  ;;  %v2088_v15 = vpop.f32.mrb[1].mxu1 }
 0x259   : > { %v644_v17 = vmax.f32 %v641_v14, 0.0 }
 0x25a   : > { %v820_v18 = vpop.f32.mrb[4].mxu0 }
 0x25b   : > { %645 = vst.msk [vmem:[#allocation2] sm:$0xff] %vm570_vm5, %v644_v17  ;;  %v821_v19 = vadd.f32 %v2931_v10, %v820_v18  ;;  %v2104_v20 = vpop.f32.mrb[5].mxu0  ;;  %2125 = vmatmul.mubr.msk.f32.vlgmr.msra.gmra.mrb[6].mxu0 %vm570_vm5, %v644_v17 }
 0x25c   : > { %2240 = vmatpush3.bf16.msra.mxu0 %v2239_v61  ;;  %2151 = vmatprep.mubr.msk.f32.mxu0 %vm2582_vm3, %v2581_v8 }
 0x25d   : > { %v824_v21 = vmax.f32 %v821_v19, 0.0  ;;  %2241 = vmatprep.subr.bf16.mxu0 %v2583_v11 }
 0x25f   : > { %826 = vst.msk [vmem:[#allocation2 + $0x8] sm:$0xff] %vm570_vm5, %v824_v21  ;;  %v827_v24 = vmax.f32 %v644_v17, %v824_v21  ;;  %2114 = vmatmul.mubr.msk.f32.vlgmr.msra.gmra.mrb[2].mxu1 %vm570_vm5, %v824_v21 }
 0x260   : > { %2243 = vmatpush3.bf16.msra.mxu0 %v2242_v5  ;;  %2128 = vmatpush3.msk.msra.mxu1 %vm489_vm2, %v2844_v6  ;;  %v2586_v5 = vmov 2  }
 0x261   : > { %2129 = vmatprep.mubr.msk.f32.mxu1 %vm2582_vm3, %v2581_v8  ;;  %2232 = vmatprep.subr.bf16.mxu1 %v2583_v11 }
 0x262   : > { %2244 = vmatprep.subr.bf16.mxu0 %v2583_v11  ;;  %v1703_v15 = vld [vmem:[#allocation2] sm:$0xff] }
 0x263   : > { %2130 = vmatmul.mubr.msk.f32.vlgmr.msra.gmra.mrb[4].mxu1 %vm485_vm4, %v1992_v25 }
 0x264   : > { %2234 = vmatpush3.bf16.msra.mxu1 %v2853_v12  ;;  %2140 = vmatprep.mubr.msk.f32.mxu1 %vm2582_vm3, %v2581_v8 }
 0x265   : > { %2235 = vmatprep.subr.bf16.mxu1 %v2583_v11 }
 0x266   : > { %v1717_v13 = vld [vmem:[#allocation2 + $0x8] sm:$0xff] }
 0x268   : > { %2237 = vmatpush3.bf16.msra.mxu1 %v2872_v16 }
 0x269   : > { %2154 = vmatprep.subr.mxu1 %v2581_v8 }
 0x32e   : > { %v977_v26 = vpop.f32.mrb[6].mxu0 }
 0x32f   : > { %v2126_v27 = vpop.f32.mrb[7].mxu0 }
 0x332   : > { %v904_v28 = vpop.f32.mrb[2].mxu1 }
 0x333   : > { %v978_v29 = vadd.f32 %v977_v26, %v904_v28  ;;  %v2115_v30 = vpop.f32.mrb[3].mxu1 }
 0x336   : > { %v1052_v31 = vpop.f32.mrb[4].mxu1 }
 0x337   : > { %v1053_v32 = vadd.f32 %v2890_v23, %v1052_v31  ;;  %v2131_v33 = vpop.f32.mrb[5].mxu1 }
 0x339   : > { %v1056_v34 = vmax.f32 %v1053_v32, 0.0 }
 0x33b   : > { %2141 = vmatmul.mubr.msk.f32.vlgmr.msra.gmra.mrb[6].mxu1 %vm570_vm5, %v1056_v34 }
 0x33c   : > { %2155 = vmatpush3.msk.msra.mxu1 %vm489_vm2, %v2844_v6  ;;  %2156 = vmatprep.mubr.msk.f32.mxu1 %vm2582_vm3, %v2581_v8 }
 0x33d   : > { %2250 = vmatprep.subr.bf16.mxu1 %v2583_v11 }
 0x33f   : > { %2157 = vmatmul.mubr.msk.f32.vlgmr.msra.gmra.mrb[8].mxu1 %vm485_vm4, %v1998_v35 }
 0x340   : > { %2252 = vmatpush3.bf16.msra.mxu1 %v2251_v0  ;;  %2178 = vmatprep.mubr.msk.f32.mxu1 %vm2582_vm3, %v2581_v8 }
 0x341   : > { %2253 = vmatprep.subr.bf16.mxu1 %v2583_v11 }
 0x344   : > { %2255 = vmatpush3.bf16.msra.mxu1 %v2254_v7  ;;  %v2587_v7 = vmov 3  }
 0x345   : > { %2256 = vmatprep.subr.bf16.mxu1 %v2583_v11 }
 0x40e   : > { %v1126_v36 = vpop.f32.mrb[6].mxu1 }
 0x40f   : > { %v1127_v37 = vadd.f32 %v2931_v10, %v1126_v36  ;;  %v2142_v38 = vpop.f32.mrb[7].mxu1 }
 0x411   : > { %v1130_v39 = vmax.f32 %v1127_v37, 0.0 }
 0x412   : > { %v1286_v40 = vpop.f32.mrb[8].mxu1 }
 0x413   : > { %1132 = vst.msk [vmem:[#allocation2 + $0x10] sm:$0xff] %vm570_vm5, %v1130_v39  ;;  %v1133_v41 = vmax.f32 %v827_v24, %v1130_v39  ;;  %2152 = vmatmul.mubr.msk.f32.vlgmr.msra.gmra.mrb[8].mxu0 %vm570_vm5, %v1130_v39  ;;  %v1287_v43 = vadd.f32 %v2890_v23, %v1286_v40  ;;  %v2158_v44 = vpop.f32.mrb[9].mxu1 }
 0x414   : > { %2246 = vmatpush3.bf16.msra.mxu0 %v2853_v12  ;;  %2167 = vmatprep.mubr.msk.f32.mxu0 %vm2582_vm3, %v2581_v8 }
 0x415   : > { %2247 = vmatprep.subr.bf16.mxu0 %v2583_v11  ;;  %v1290_v45 = vmax.f32 %v1287_v43, 0.0 }
 0x418   : > { %2249 = vmatpush3.bf16.msra.mxu0 %v2872_v16 }
 0x419   : > { %2181 = vmatprep.subr.mxu0 %v2581_v8 }
 0x41a   : > { %v1731_v26 = vld [vmem:[#allocation2 + $0x10] sm:$0xff] }
 0x41b   : > { %2168 = vmatmul.mubr.msk.f32.vlgmr.msra.gmra.mrb[10].mxu0 %vm570_vm5, %v1290_v45 }
 0x41c   : > { %2182 = vmatpush3.msk.msra.mxu0 %vm489_vm2, %v2844_v6  ;;  %2183 = vmatprep.mubr.msk.f32.mxu0 %vm2582_vm3, %v2581_v8 }
 0x41d   : > { %2262 = vmatprep.subr.bf16.mxu0 %v2583_v11 }
 0x41f   : > { %2184 = vmatmul.mubr.msk.f32.vlgmr.msra.gmra.mrb[12].mxu0 %vm485_vm4, %v2004_v46 }
 0x420   : > { %2264 = vmatpush3.bf16.msra.mxu0 %v2263_v1  ;;  %2205 = vmatprep.mubr.msk.f32.mxu0 %vm2582_vm3, %v2581_v8 }
 0x421   : > { %2265 = vmatprep.subr.bf16.mxu0 %v2583_v11 }
 0x424   : > { %2267 = vmatpush3.bf16.msra.mxu0 %v2266_v9  ;;  %v2588_v9 = vmov 4  }
 0x4e6   : > { %v1210_v6 = vpop.f32.mrb[8].mxu0 }
 0x4e7   : > { %v1214_v48 = vadd.f32 %v1210_v6, %v978_v29  ;;  %v2153_v49 = vpop.f32.mrb[9].mxu0 }
 0x4ee   : > { %v1360_v50 = vpop.f32.mrb[10].mxu0 }
 0x4ef   : > { %v1361_v51 = vadd.f32 %v2931_v10, %v1360_v50  ;;  %v2169_v52 = vpop.f32.mrb[11].mxu0 }
 0x4f1   : > { %v1364_v53 = vmax.f32 %v1361_v51, 0.0 }
 0x4f2   : > { %v1520_v54 = vpop.f32.mrb[12].mxu0 }
 0x4f3   : > { %1366 = vst.msk [vmem:[#allocation2 + $0x18] sm:$0xff] %vm570_vm5, %v1364_v53  ;;  %v1367_v42 = vmax.f32 %v1133_v41, %v1364_v53  ;;  %2179 = vmatmul.mubr.msk.f32.vlgmr.msra.gmra.mrb[10].mxu1 %vm570_vm5, %v1364_v53  ;;  %v1521_v55 = vadd.f32 %v2890_v23, %v1520_v54  ;;  %v2185_v56 = vpop.f32.mrb[13].mxu0 }
 0x4f4   : > { %2258 = vmatpush3.bf16.msra.mxu1 %v2853_v12  ;;  %2194 = vmatprep.mubr.msk.f32.mxu1 %vm2582_vm3, %v2581_v8  ;;  %v2585_v8 = vmov 1  }
 0x4f5   : > { %2259 = vmatprep.subr.bf16.mxu1 %v2583_v11  ;;  %v1524_v47 = vmax.f32 %v1521_v55, 0.0  ;;  %2383 = vset.pattern.permute.xlu1 %v2585_v8 }
 0x4f8   : > { %2261 = vmatpush3.bf16.msra.mxu1 %v2872_v16  ;;  %v1684_v16 = vld [vmem:[%s2831_s12] sm:$0xff] }
 0x4fa   : > { %v1745_v35 = vld [vmem:[#allocation2 + $0x18] sm:$0xff] }
 0x4fb   : > { %2195 = vmatmul.mubr.msk.f32.vlgmr.msra.gmra.mrb[12].mxu1 %vm570_vm5, %v1524_v47 }
 0x5c6   : > { %v1444_v57 = vpop.f32.mrb[10].mxu1 }
 0x5c7   : > { %v1448_v58 = vadd.f32 %v1444_v57, %v1214_v48  ;;  %v2180_v59 = vpop.f32.mrb[11].mxu1 }
 0x5ce   : > { %v1594_v60 = vpop.f32.mrb[12].mxu1 }
 0x5cf   : > { %v1595_v23 = vadd.f32 %v2931_v10, %v1594_v60  ;;  %v2196_v61 = vpop.f32.mrb[13].mxu1 }
 0x5d1   : > { %v1598_v12 = vmax.f32 %v1595_v23, 0.0 }
 0x5d3   : > { %1600 = vst.msk [vmem:[#allocation2 + $0x20] sm:$0xff] %vm570_vm5, %v1598_v12  ;;  %v1601_v62 = vmax.f32 %v1367_v42, %v1598_v12  ;;  %2206 = vmatmul.mubr.msk.f32.vlgmr.msra.gmra.mrb[14].mxu0 %vm570_vm5, %v1598_v12 }
 0x5d5   : > { %1683 = vst.msk [vmem:[%s2841_s22] sm:$0xff] %vm570_vm5, %v1601_v62 }
 0x5da   : > { %v1759_v46 = vld [vmem:[#allocation2 + $0x20] sm:$0xff] }
 0x6a6   : > { %v1678_v11 = vpop.f32.mrb[14].mxu0 }
 0x6a7   : > { %v1682_v63 = vadd.f32 %v1678_v11, %v1448_v58  ;;  %v2207_v0 = vpop.f32.mrb[15].mxu0 }
 0x6a9   : > { %v1685_v1 = vadd.f32 %v1684_v16, %v1682_v63  ;;  %v1773_v63 = vld [vmem:[#allocation4] sm:$0x1] }
 0x6ab   : > { %2387 = vtanh.f32 %v1685_v1 }
 0x6b5   : > { %v2388_v2 = vpop.eup %2387 }
 0x6b6   : > { %v1687_v3 = vmul.f32 1.442695, %v2388_v2 }
 0x6b8   : > { %2389 = vpow2.f32 %v1687_v3 }
 0x6c2   : > { %v2390_v4 = vpop.eup %2389 }
 0x6c3   : > { %1719 = vperm.xlu1 %2383, %v2390_v4   ;;  %1706 = vperm.xlu0 %2381, %v2390_v4   ;;  %v1691_v10 = vsel %vm1690_vm11, %v2390_v4, 0.0 }
 0x6c7   : > { %2384 = vset.pattern.permute.xlu0 %v2586_v5 }
 0x6c8   : > { %1733 = vperm.xlu0 %2384, %v2390_v4  }
 0x6cc   : > { %2385 = vset.pattern.permute.xlu0 %v2587_v7 }
 0x6cd   : > { %1747 = vperm.xlu0 %2385, %v2390_v4  }
 0x6d1   : > { %2386 = vset.pattern.permute.xlu0 %v2588_v9 }
 0x6d2   : > { %1761 = vperm.xlu0 %2386, %v2390_v4  }
 0x6e7   : > { %1692 = vadd.xlane.f32.xlu1 %v1691_v10  ;;  %v1689_v10 = vld [vmem:[#allocation3] sm:$0x1] }
 0x742   : > { %v1720_v14 = vpop.permute.xlu1 %1719  ;;  %v1707_v17 = vpop.permute.xlu0 %1706 }
 0x743   : > { %v1722_v18 = vmul.f32 %v1720_v14, %v1717_v13  ;;  %v1709_v19 = vmul.f32 %v1707_v17, %v1703_v15  ;;  %v2589_v17 = vmov (!%p2010_p1), 0  }
 0x744   : > { %2391 = vset.pattern.permute.xlu0 (!%p2010_p1), %v2589_v17 }
 0x745   : > { %v1723_v20 = vsel %vm570_vm5, %v1722_v18, 0.0  ;;  %v1710_v21 = vsel %vm570_vm5, %v1709_v19, 0.0  ;;  %v1789_v18 = vshrl.u32 (!%p2010_p1), %v646_v22, 7 }
 0x746   : > { %v1724_v24 = vrot.slane %v1723_v20, 4  ;;  %v1711_v25 = vrot.slane %v1710_v21, 4 }
 0x747   : > { %v1734_v27 = vpop.permute.xlu0 %1733  ;;  %v1790_v19 = vsub.s32 (!%p2010_p1), 0, %v1789_v18 }
 0x748   : > { %v1725_v28 = vadd.f32 %v1724_v24, %v1723_v20  ;;  %v1712_v29 = vadd.f32 %v1711_v25, %v1710_v21  ;;  %v1736_v30 = vmul.f32 %v1734_v27, %v1731_v26 }
 0x74a   : > { %v1737_v31 = vsel %vm570_vm5, %v1736_v30, 0.0  ;;  %v1726_v32 = vrot.slane %v1725_v28, 2  ;;  %v1713_v33 = vrot.slane %v1712_v29, 2 }
 0x74b   : > { %v1738_v34 = vrot.slane %v1737_v31, 4 }
 0x74c   : > { %v1748_v36 = vpop.permute.xlu0 %1747  ;;  %v1727_v39 = vadd.f32 %v1726_v32, %v1725_v28  ;;  %v1714_v40 = vadd.f32 %v1713_v33, %v1712_v29 }
 0x74d   : > { %v1739_v37 = vadd.f32 %v1738_v34, %v1737_v31  ;;  %v1750_v38 = vmul.f32 %v1748_v36, %v1745_v35 }
 0x74e   : > { %v1728_v50 = vrot.slane %v1727_v39, 1  ;;  %v1715_v51 = vrot.slane %v1714_v40, 1 }
 0x74f   : > { %v1740_v41 = vrot.slane %v1739_v37, 2  ;;  %v1751_v43 = vsel %vm570_vm5, %v1750_v38, 0.0 }
 0x750   : > { %v1752_v44 = vrot.slane %v1751_v43, 4  ;;  %v1729_v56 = vadd.f32 %v1728_v50, %v1727_v39  ;;  %v1716_v47 = vadd.f32 %v1715_v51, %v1714_v40 }
 0x751   : > { %v1741_v45 = vadd.f32 %v1740_v41, %v1739_v37  ;;  %v1762_v6 = vpop.permute.xlu0 %1761 }
 0x752   : > { %v1753_v48 = vadd.f32 %v1752_v44, %v1751_v43  ;;  %v1764_v49 = vmul.f32 %v1762_v6, %v1759_v46  ;;  %v1730_v23 = vadd.f32 %v1729_v56, %v1716_v47 }
 0x753   : > { %v1742_v54 = vrot.slane %v1741_v45, 1 }
 0x754   : > { %v1754_v52 = vrot.slane %v1753_v48, 2  ;;  %v1765_v53 = vsel %vm570_vm5, %v1764_v49, 0.0 }
 0x755   : > { %v1766_v42 = vrot.slane %v1765_v53, 4  ;;  %v1743_v59 = vadd.f32 %v1742_v54, %v1741_v45 }
 0x756   : > { %v1755_v55 = vadd.f32 %v1754_v52, %v1753_v48 }
 0x757   : > { %v1767_v57 = vadd.f32 %v1766_v42, %v1765_v53  ;;  %v1744_v62 = vadd.f32 %v1743_v59, %v1730_v23 }
 0x758   : > { %v1756_v58 = vrot.slane %v1755_v55, 1 }
 0x759   : > { %v1768_v60 = vrot.slane %v1767_v57, 2 }
 0x75a   : > { %v1757_v61 = vadd.f32 %v1756_v58, %v1755_v55 }
 0x75b   : > { %v1769_v12 = vadd.f32 %v1768_v60, %v1767_v57 }
 0x75c   : > { %v1758_v11 = vadd.f32 %v1757_v61, %v1744_v62 }
 0x75d   : > { %v1770_v8 = vrot.slane %v1769_v12, 1 }
 0x75f   : > { %v1771_v16 = vadd.f32 %v1770_v8, %v1769_v12 }
 0x761   : > { %v1772_v0 = vadd.f32 %v1771_v16, %v1758_v11 }
 0x763   : > { %v1774_v1 = vadd.f32 %v1773_v63, %v1772_v0 }
 0x765   : > { %1776 = vst.msk [vmem:[#allocation4] sm:$0x1] %vm1775_vm12, %v1774_v1 }
 0x76c   : > { %v1781_v24 = vld [vmem:[#allocation4] sm:$0x1] (!%p2010_p1) }
 0x774   : > { %v1693_v2 = vpop.xlane.xlu1 %1692 }
 0x775   : > { %v1694_v3 = vrot.slane %v1693_v2, 4 }
 0x777   : > { %v1695_v4 = vadd.f32 %v1694_v3, %v1693_v2 }
 0x779   : > { %v1696_v5 = vrot.slane %v1695_v4, 2 }
 0x77b   : > { %v1697_v7 = vadd.f32 %v1696_v5, %v1695_v4 }
 0x77d   : > { %v1698_v9 = vrot.slane %v1697_v7, 1  ;;  %1780 = sbr.rel (%p2010_p1) target bundleno = 2075 (0x81b), region = 110 }
 0x77f   : > { %v1699_v13 = vadd.f32 %v1698_v9, %v1697_v7 }
 0x781   : > { %v1700_v14 = vadd.f32 %v1699_v13, %v1689_v10 }
 0x783   : > { %1702 = vst.msk [vmem:[#allocation3] sm:$0x1] %vm1701_vm13, %v1700_v14 }
 0x78a   : > { %v1782_v15 = vld [vmem:[#allocation3] sm:$0x1] }
 0x78b   : > { %1785 = vperm.xlu0 %2391, %v1782_v15  }
 0x80a   : > { %v1786_v20 = vpop.permute.xlu0 %1785 }
 0x80b   : > { %v1791_v21 = vrot.slane %v1786_v20, %v1790_v19 }
 0x80d   : > { %2392 = vrcp.f32 %v1791_v21 }
 0x817   : > { %v2393_v25 = vpop.eup %2392 }
 0x818   : > { %v1793_v26 = vmul.f32 %v2393_v25, %v1781_v24 }
 0x81a   : > { %1794 = vst.msk [vmem:[%s458_s1] sm:$0x1] %vm1775_vm12, %v1793_v26 }
 0x81b PF: > { %s22_s11 = sadd.s32 1, %s2572_s11   ;;  %s3081_s29 = sld [smem:[#allocation18_spill]] }
 0x81c   : > { %p19_p2 = scmp.ge.s32.totalorder %s22_s11, 12   ;;  %s3082_s20 = sld [smem:[#allocation16_spill]] }
 0x81d   : > { %s3083_s7 = sld [smem:[#allocation17_spill]]  ;;  %s3084_s27 = smov %s2552_s28 }
 0x81e   : > { %s3087_s30 = smov %s2568_s10  ;;  %21 = sbr.rel (!%p19_p2) target bundleno = 11 (0xb), region = 169 }
 0x821   : > { %s3085_s28 = smov %s3081_s29  ;;  %s3086_s29 = smov %s2564_s9 }
 0x822   : > { %s3088_s9 = smov %s3082_s20 }
 0x823   : > { %s3089_s10 = smov %s3083_s7 }
 0x825   :  { %1834 = vsyncpa [#allocation7], 1 }
 0x826   :  { %1836 = vsyncpa [#allocation7 + $0x1], 1 }
 0x827   :  { %1837 = vsyncpa [#allocation9], 1 }
 0x828   :  { %1838 = vsyncpa [#allocation12], 1 }

// kernel: palnet_2blk_forward.5
= control target key start
LH: loop header
LB: loop body
LE: loop exit
PB: predicated region body
PF: predicated region fallthrough
CT: control target
= control target key end

     0   :  { %s4174_s0 = inlined_call_operand.vmem [shape: bf16[2,768], index: 0, kind: input, shape index: {}]   ;;  %s4175_s1 = inlined_call_operand.hbm [shape: bf16[768,1024], index: 1, kind: input, shape index: {}]   ;;  %s4176_s2 = inlined_call_operand.hbm [shape: f32[1,1024], index: 2, kind: input, shape index: {}]   ;;  %s4177_s3 = inlined_call_operand.hbm [shape: f32[1024,1024], index: 3, kind: input, shape index: {}]   ;;  %s4178_s4 = inlined_call_operand.vmem [shape: f32[2,2,1024], index: 4, kind: output, shape index: {}]  }
   0x1   :  { %4187 = sst [smem:[#allocation16_spill]] %s4176_s2 }
   0x2   :  { %9 = vsyncpa [#allocation4], 0 }
   0x3   :  { %11 = vsyncpa [#allocation4 + $0x1], 0 }
   0x4   :  { %12 = vsyncpa [#allocation6], 0 }
   0x5   :  { %14 = vsyncpa [#allocation6 + $0x1], 0  ;;  %s3228_s15 = smov 0   ;;  %s3230_s16 = smov 0  }
   0x6   :  { %s3232_s17 = smov 0   ;;  %s3234_s18 = smov 0  }
   0x7   :  { %s3236_s19 = smov 0   ;;  %s3238_s20 = smov 0  }
   0x8   :  { %s3240_s21 = smov 0   ;;  %s3242_s22 = smov 0  }
   0x9   :  { %s3244_s23 = smov 0   ;;  %s3246_s24 = smov 0  }
   0xa   :  { %s3248_s25 = smov 0  }
   0xb LB: > { %4188 = sst [smem:[#allocation10_spill]] %s3158_s17  ;;  %s4179_s26 = sadd.s32 4294967295, %s3190_s25   ;;  %s3190_s25 = sphi %s3248_s25, %s20_s25   ;;  %s3186_s24 = sphi %s3246_s24, %s4223_s24   ;;  %s3182_s23 = sphi %s3244_s23, %s4222_s23   ;;  %s3178_s22 = sphi %s3242_s22, %s4221_s22   ;;  %s3174_s21 = sphi %s3240_s21, %s4220_s21   ;;  %s3170_s20 = sphi %s3238_s20, %s4213_s20   ;;  %s3166_s19 = sphi %s3236_s19, %s4219_s19   ;;  %s3162_s18 = sphi %s3234_s18, %s4218_s18   ;;  %s3158_s17 = sphi %s3232_s17, %s4211_s17   ;;  %s3154_s16 = sphi %s3230_s16, %s4217_s16   ;;  %s3150_s15 = sphi %s3228_s15, %s4216_s15  }
   0xc   : > { %4189 = sst [smem:[#allocation11_spill]] %s3170_s20  ;;  %s29_s27 = sadd.s32 1, %s3182_s23 }
   0xd   : > { %p30_p0 = scmp.ge.s32.totalorder %s29_s27, 3  ;;  %s32_s28 = sadd.s32 1, %s3186_s24 }
   0xe   : > { %s67_s29 = sadd.s32 1, %s3170_s20  ;;  %p74_p1 = scmp.ne.s32.totalorder %s3170_s20, %s3166_s19 }
   0xf   : > { %s4225_s27 = smov (%p30_p0, %s29_s27), 0  ;;  %s4227_s28 = smov (!%p30_p0, %s32_s28), %s3186_s24 }
  0x10   : > { %4190 = sst [smem:[#allocation12_spill]] %s4225_s27  ;;  %s62_s30 = ssub.s32 %s3182_s23, %s4225_s27 }
  0x11   : > { %p75_p2 = scmp.eq.s32.totalorder %s3190_s25, 0  ;;  %p34_p3 = scmp.ge.s32.totalorder %s4227_s28, 2 }
  0x12   : > { %p80_p4 = scmp.ne.s32.totalorder %s3166_s19, %s3162_s18  ;;  %p3302_p6 = scmp.eq.s32.totalorder %s4179_s26, 0 }
  0x13   : > { %p3296_p5 = por %p75_p2, %p74_p1  ;;  %s4229_s28 = smov (%p34_p3, %s4227_s28), 0 }
  0x14   : > { %4193 = sst [smem:[#allocation13_spill]] %s4229_s28  ;;  %p3310_p7 = por %p3302_p6, %p80_p4 }
  0x15   : > { %s93_s8 = sadd.s32 1, %s3158_s17  ;;  %s63_s9 = ssub.s32 %s3186_s24, %s4229_s28 }
  0x16   : > { %s4194_s7 = scalar_select %p3310_p7, 1, 0 }
  0x17   : > { %p100_p8 = scmp.ne.s32.totalorder %s3158_s17, %s3154_s16  ;;  %s64_s10 = sor.u32 %s63_s9, %s62_s30 }
  0x18   : > { %p91_p9 = scmp.eq.s32.totalorder %s63_s9, 0  ;;  %p65_p10 = scmp.eq.s32.totalorder %s64_s10, 0 }
  0x19   : > { %p3321_p11 = por %p100_p8, %p75_p2  ;;  %p106_p12 = scmp.ne.s32.totalorder %s3154_s16, %s3150_s15 }
  0x1a   : > { %s3326_s12 = scalar_select %p91_p9, %s3158_s17, %s93_s8  }
  0x1b   : > { %s3329_s13 = scalar_select %p65_p10, %s3170_s20, %s67_s29  }
  0x1c   : > { %4196 = sst [smem:[#allocation14_spill]] %s3326_s12  ;;  %p2813_p13 = scmp.lt.s32.totalorder %s3190_s25, 6 }
  0x1d   : > { %4197 = sst [smem:[#allocation15_spill]] %s3329_s13  ;;  %s214_s14 = sand.u32 1, %s3190_s25  }
  0x1e   : > { %p3337_p0 = por %p106_p12, %p3302_p6  ;;  %p3343_p1 = pnand %p2813_p13, %p3296_p5 }
  0x1f   : > { %s216_s9 = sand.u32 1, %s3158_s17   ;;  %s2273_s8 = sshll.u32 %s3186_s24, 6 }
  0x20   : > { %s4198_s18 = scalar_select %p3337_p0, 1, 0 }
  0x21   : > { %s2189_s10 = sshll.u32 %s216_s9, 2  ;;  %s4200_s2 = sld [smem:[#allocation16_spill]] }
  0x22   : > { %s218_s15 = scalar_lea.vmem [#allocation5], %s2189_s10  ;;  %p3358_p2 = pnand %p2813_p13, %p3321_p11 }
  0x23   : > { %s226_s6 = sshll.u32 %s218_s15, 4  ;;  %s3362_s27 = sshll.u32 %s216_s9, 12  ;;  %s3354_s6 = int_to_ptr.vmem [resolvable:$true] %s226_s6 }
  0x24   : > { %s3365_s26 = scalar_lea.sflag [#allocation6], %s214_s14  ;;  %p4186_p5 = pneg %p3358_p2 }
  0x27   : > { %s3352_s29 = scalar_lea.hbm %s4200_s2, %s2273_s8  ;;  %s3011_s8 = scalar_lea.hbm %s4200_s2, 128 }
  0x28   : > { %s3006_s28 = scalar_lea.hbm %s3352_s29, 64  ;;  %p3012_p9 = scmp.lt.u32.totalorder %s3352_s29, %s4200_s2 }
  0x29   : > { %p3007_p4 = scmp.ne.s32.totalorder %s3352_s29, %s3006_s28  ;;  %p3013_p10 = scmp.lt.u32.totalorder %s3011_s8, %s3006_s28 }
  0x2a   : > { %p3015_p12 = scmp.lt.u32.totalorder %s3006_s28, %s3352_s29 }
  0x2b   : > { %p3009_p6 = pnand %p4186_p5, %p3007_p4  ;;  %p3014_p11 = por %p3013_p10, %p3012_p9 }
  0x2d   : > { %p3010_p8 = pneg %p3009_p6  ;;  %p3016_p13 = por %p3015_p12, %p3014_p11 }
  0x2f   : > { %p3017_p3 = pnand %p3016_p13, %p3010_p8 }
  0x31   : > { %3020 = shalt.err (!%p3017_p3)
}
  0x32   : > { %s3021_s14 = scalar_lea.vmem %s3354_s6, 64  ;;  %s3192_s9 = smov [#allocation5]  }
  0x33   : > { %p3022_p4 = scmp.ne.s32.totalorder %s3354_s6, %s3021_s14  ;;  %s3026_s11 = sshll.u32 %s3192_s9, 4  ;;  %s3027_s11 = int_to_ptr.vmem [resolvable:$false] %s3026_s11 }
  0x34   : > { %s3028_s13 = scalar_lea.vmem %s3027_s11, 128  ;;  %p3029_p7 = scmp.lt.s32.totalorder %s3354_s6, %s3027_s11 }
  0x35   : > { %p3024_p6 = pnand %p3022_p4, %p4186_p5  ;;  %p3030_p9 = scmp.lt.s32.totalorder %s3028_s13, %s3021_s14 }
  0x37   : > { %p3025_p0 = pneg %p3024_p6  ;;  %p3031_p10 = por %p3030_p9, %p3029_p7 }
  0x39   : > { %p3032_p11 = pnand %p3031_p10, %p3025_p0 }
  0x3b   : > { %3035 = shalt.err (!%p3032_p11)
}
  0x3c   : > { %2809 = dma.hbm_to_vmem [thread:$0]  (!%p3358_p2), %s3352_s29, 64, %s3354_s6, %s3365_s26  }
  0x3d   : > { %s237_s28 = scalar_lea.vmem [#allocation7], %s3362_s27  ;;  %p253_p3 = scmp.lt.s32.totalorder %s3190_s25, 7 }
  0x3e   : > { %s245_s10 = sshll.u32 %s237_s28, 4  ;;  %p4202_p7 = scmp.ge.s32.totalorder %s3190_s25, 1  ;;  %s3395_s10 = int_to_ptr.vmem [resolvable:$true] %s245_s10 }
  0x3f   : > { %s190_s15 = sand.u32 1, %s3170_s20   ;;  %s2186_s14 = sshll.u32 %s3186_s24, 2 }
  0x40   : > { %p3399_p0 = pnand %p4202_p7, %p253_p3  ;;  %s2184_s9 = sshll.u32 %s190_s15, 9 }
  0x41   : > { %s2272_s11 = sshll.u32 %s3182_s23, 8  ;;  %s194_s2 = scalar_lea.vmem [#allocation3], %s2184_s9 }
  0x42   : > { %s4203_s8 = scalar_select %p3399_p0, 1, 0 }
  0x43   : > { %s201_s13 = sadd.s32 %s2272_s11, %s2186_s14  ;;  %s204_s12 = sshll.u32 %s194_s2, 4  ;;  %s3406_s12 = int_to_ptr.vmem [resolvable:$true] %s204_s12 }
  0x44   : > { %s2188_s29 = sshll.u32 %s201_s13, 6  ;;  %s3413_s17 = scalar_lea.sflag [#allocation4], %s190_s15 }
  0x45   : > { %s3411_s28 = scalar_lea.hbm %s4175_s1, %s2188_s29  ;;  %p3038_p12 = pneg %p3343_p1 }
  0x46   : > { %s3036_s20 = scalar_lea.hbm %s3411_s28, 8192  ;;  %s3041_s9 = scalar_lea.hbm %s4175_s1, 49152 }
  0x47   : > { %p3037_p8 = scmp.ne.s32.totalorder %s3411_s28, %s3036_s20  ;;  %p3042_p6 = scmp.lt.u32.totalorder %s3411_s28, %s4175_s1 }
  0x48   : > { %p3043_p9 = scmp.lt.u32.totalorder %s3041_s9, %s3036_s20  ;;  %p3045_p11 = scmp.lt.u32.totalorder %s3036_s20, %s3411_s28 }
  0x49   : > { %p3039_p13 = pnand %p3038_p12, %p3037_p8 }
  0x4a   : > { %p3044_p10 = por %p3043_p9, %p3042_p6 }
  0x4b   : > { %p3040_p4 = pneg %p3039_p13 }
  0x4c   : > { %p3046_p3 = por %p3045_p11, %p3044_p10 }
  0x4e   : > { %p3047_p7 = pnand %p3046_p3, %p3040_p4 }
  0x50   : > { %3050 = shalt.err (!%p3047_p7)
}
  0x51   : > { %s3051_s15 = scalar_lea.vmem %s3406_s12, 8192  ;;  %s3193_s29 = smov [#allocation3]  }
  0x52   : > { %p3052_p8 = scmp.ne.s32.totalorder %s3406_s12, %s3051_s15  ;;  %s3056_s27 = sshll.u32 %s3193_s29, 4  ;;  %s3057_s27 = int_to_ptr.vmem [resolvable:$false] %s3056_s27 }
  0x53   : > { %s3058_s6 = scalar_lea.vmem %s3057_s27, 16384  ;;  %p3059_p0 = scmp.lt.s32.totalorder %s3406_s12, %s3057_s27 }
  0x54   : > { %p3054_p13 = pnand %p3052_p8, %p3038_p12  ;;  %p3060_p6 = scmp.lt.s32.totalorder %s3058_s6, %s3051_s15 }
  0x56   : > { %p3055_p5 = pneg %p3054_p13  ;;  %p3061_p9 = por %p3060_p6, %p3059_p0 }
  0x58   : > { %p3062_p10 = pnand %p3061_p9, %p3055_p5 }
  0x5a   : > { %3065 = shalt.err (!%p3062_p10)
}
  0x5b   : > { %s3194_s20 = smov 512   ;;  %s3195_s2 = smov 256  }
  0x5c   : > { %s3196_s14 = smov 16   ;;  %s2275_s9 = sshll.u32 %s3186_s24, 16 }
  0x5d   : > { %2806 = dma.hbm_to_vmem [thread:$0]  (!%p3343_p1), %s3411_s28, 8192, %s3406_s12, %s3413_s17, %s3194_s20, %s3195_s2, %s3196_s14  }
  0x5e   : > { %s3445_s29 = scalar_lea.hbm %s4177_s3, %s2275_s9  ;;  %p4204_p0 = pneg %p3358_p2 }
  0x5f   : > { %s3066_s15 = scalar_lea.hbm %s3445_s29, 65536  ;;  %s3071_s17 = scalar_lea.hbm %s4177_s3, 131072 }
  0x60   : > { %p3067_p5 = scmp.ne.s32.totalorder %s3445_s29, %s3066_s15  ;;  %p3072_p1 = scmp.lt.u32.totalorder %s3445_s29, %s4177_s3 }
  0x61   : > { %p3073_p11 = scmp.lt.u32.totalorder %s3071_s17, %s3066_s15  ;;  %p3075_p7 = scmp.lt.u32.totalorder %s3066_s15, %s3445_s29 }
  0x62   : > { %p3069_p12 = pnand %p3067_p5, %p4204_p0 }
  0x63   : > { %p3074_p3 = por %p3073_p11, %p3072_p1 }
  0x64   : > { %p3070_p4 = pneg %p3069_p12 }
  0x65   : > { %p3076_p8 = por %p3075_p7, %p3074_p3 }
  0x67   : > { %p3077_p13 = pnand %p3076_p8, %p3070_p4 }
  0x69   : > { %3080 = shalt.err (!%p3077_p13)
}
  0x6a   : > { %s3081_s28 = scalar_lea.vmem %s3395_s10, 65536  ;;  %p4205_p9 = pmov %p4204_p0 }
  0x6b   : > { %p3082_p6 = scmp.ne.s32.totalorder %s3395_s10, %s3081_s28  ;;  %s3197_s20 = smov [#allocation7]  }
  0x6c   : > { %s3086_s2 = sshll.u32 %s3197_s20, 4  ;;  %s3087_s2 = int_to_ptr.vmem [resolvable:$false] %s3086_s2 }
  0x6d   : > { %p3084_p10 = pnand %p3082_p6, %p4205_p9  ;;  %s3088_s14 = scalar_lea.vmem %s3087_s2, 131072 }
  0x6e   : > { %p3089_p0 = scmp.lt.s32.totalorder %s3395_s10, %s3087_s2  ;;  %p3090_p12 = scmp.lt.s32.totalorder %s3088_s14, %s3081_s28 }
  0x6f   : > { %p3085_p5 = pneg %p3084_p10 }
  0x70   : > { %p3091_p1 = por %p3090_p12, %p3089_p0 }
  0x72   : > { %p3092_p11 = pnand %p3091_p1, %p3085_p5 }
  0x74   : > { %3095 = shalt.err (!%p3092_p11)
}
  0x75   : > { %s3198_s9 = smov 1024   ;;  %s3199_s11 = smov 64  }
  0x76   : > { %2812 = dma.hbm_to_vmem [thread:$0]  (!%p3358_p2), %s3445_s29, 65536, %s3395_s10, %s3365_s26, %s3198_s9, %s3198_s9, %s3199_s11  }
  0x77   : > { %p4206_p4 = scmp.ne.s32.totalorder %s4203_s8, 0 }
  0x78   : > { %s259_s13 = sand.u32 (!%p4206_p4), 1, %s3166_s19   ;;  %p4207_p3 = scmp.ne.s32.totalorder (!%p4206_p4), %s4194_s7, 0 }
  0x79   : > { %257 = sbr.rel (%p4206_p4) target bundleno = 892 (0x37c), region = 36  ;;  %s2197_s15 = sshll.u32 (!%p4206_p4), %s259_s13, 9 }
  0x7a   : > { %s260_s27 = scalar_lea.sflag (!%p4206_p4), [#allocation4], %s259_s13  ;;  %s3474_s6 = scalar_lea.vmem (!%p4206_p4), [#allocation3], %s2197_s15 }
  0x80   : > { %3141 = dma.done.wait (%p4207_p3), %s260_s27, 8192  }
  0x81   : > { %3143 = vsyncadd (%p4207_p3), %s260_s27, 4294959104  ;;  %s4208_s17 = sadd.s32 4294967295, %s3190_s25   ;;  %s270_s26 = sand.u32 1, %s3154_s16  }
  0x82   : > { %s268_s5 = sand.u32 1, %s4208_s17   ;;  %s3483_s10 = sshll.u32 %s270_s26, 2 }
  0x83   : > { %s269_s8 = scalar_lea.sflag [#allocation6], %s268_s5  ;;  %s272_s29 = scalar_lea.vmem [#allocation5], %s3483_s10 }
  0x84   : > { %p4209_p2 = scmp.ne.s32.totalorder %s4198_s18, 0 }
  0x86   : > { %3145 = dma.done.wait (%p4209_p2), %s269_s8, 65600  }
  0x87   : > { %3147 = vsyncadd (%p4209_p2), %s269_s8, 4294901696  ;;  %s2199_s7 = sshll.u32 %s270_s26, 12  ;;  %s2200_s12 = sshll.u32 %s3174_s21, 1 }
  0x88   : > { %p321_p7 = scmp.lt.s32.totalorder %s2200_s12, 5  ;;  %p329_p8 = scmp.lt.s32.totalorder %s3178_s22, 1 }
  0x89   : > { %s3504_s11 = scalar_lea.vmem [#allocation7], %s2199_s7  ;;  %p2203_p13 = scmp.ne.s32.totalorder %s3174_s21, 0 }
  0x8a   : > { %s4231_s12 = smov (!%p321_p7, %s2200_s12), 5  ;;  %s4233_s22 = smov (!%p329_p8, %s3178_s22), 1 }
  0x8b   : > { %s323_s20 = scalar_lea.vmem %s4174_s0, %s4231_s12  ;;  %s2276_s2 = sshll.u32 %s4233_s22, 4  ;;  %v3200_v0 = vmov (!%p2203_p13), 0.0  }
  0x8c   : > { %s3502_s18 = scalar_lea.vmem %s4178_s4, %s2276_s2  ;;  %337 = sbr.rel (%p2203_p13) target bundleno = 147 (0x93), region = 52  ;;  %338 = vst [vmem:[#allocation2] sm:$0xff] (!%p2203_p13), %v3200_v0 }
  0x93 PF: > { %v2910_v1 = vld [vmem:[%s3474_s6 + $0x4] ss:$16 sps:$4 sm:$0xff]   ;;  %v2912_v2 = vld [vmem:[%s3474_s6 + $0xc] ss:$16 sps:$4 sm:$0xff]   ;;  %v2914_v3 = vld [vmem:[%s3474_s6] ss:$16 sps:$4 sm:$0xff]   ;;  %v417_v41 = vlaneseq }
  0x94   : > { %750 = vmatprep.subr.bf16.mxu0 %v2910_v1  ;;  %v2915_v4 = vld [vmem:[%s3474_s6 + $0x8] ss:$16 sps:$4 sm:$0xff]   ;;  %791 = vmatprep.subr.bf16.mxu1 %v2912_v2  ;;  %v2916_v5 = vld [vmem:[%s3474_s6 + $0x24] ss:$16 sps:$4 sm:$0xff]   ;;  %v2918_v6 = vld [vmem:[%s3474_s6 + $0x2c] ss:$16 sps:$4 sm:$0xff]  }
  0x95   : > { %751 = vmatpush1.bf16.msra.mxu0 %v2914_v3  ;;  %792 = vmatpush1.bf16.msra.mxu1 %v2915_v4  ;;  %v2920_v7 = vld [vmem:[%s3474_s6 + $0x20] ss:$16 sps:$4 sm:$0xff]   ;;  %v2921_v8 = vld [vmem:[%s3474_s6 + $0x28] ss:$16 sps:$4 sm:$0xff]   ;;  %v2922_v9 = vld [vmem:[%s3474_s6 + $0x44] ss:$16 sps:$4 sm:$0xff]  }
  0x96   : > { %752 = vmatprep.subr.bf16.mxu0 %v2916_v5  ;;  %793 = vmatprep.subr.bf16.mxu1 %v2918_v6  ;;  %v2924_v10 = vld [vmem:[%s3474_s6 + $0x4c] ss:$16 sps:$4 sm:$0xff]   ;;  %v2926_v11 = vld [vmem:[%s3474_s6 + $0x40] ss:$16 sps:$4 sm:$0xff]   ;;  %v2927_v12 = vld [vmem:[%s3474_s6 + $0x48] ss:$16 sps:$4 sm:$0xff]  }
  0x97   : > { %v2928_v13 = vld [vmem:[%s3474_s6 + $0x64] ss:$16 sps:$4 sm:$0xff]   ;;  %v2930_v14 = vld [vmem:[%s3474_s6 + $0x6c] ss:$16 sps:$4 sm:$0xff]   ;;  %v2932_v15 = vld [vmem:[%s3474_s6 + $0x60] ss:$16 sps:$4 sm:$0xff]  }
  0x98   : > { %v2933_v16 = vld [vmem:[%s3474_s6 + $0x68] ss:$16 sps:$4 sm:$0xff]   ;;  %v2934_v17 = vld [vmem:[%s3474_s6 + $0x84] ss:$16 sps:$4 sm:$0xff]   ;;  %v2936_v18 = vld [vmem:[%s3474_s6 + $0x8c] ss:$16 sps:$4 sm:$0xff]  }
  0x99   : > { %753 = vmatpush1.bf16.msra.mxu0 %v2920_v7  ;;  %794 = vmatpush1.bf16.msra.mxu1 %v2921_v8  ;;  %v2938_v19 = vld [vmem:[%s3474_s6 + $0x80] ss:$16 sps:$4 sm:$0xff]   ;;  %v2939_v20 = vld [vmem:[%s3474_s6 + $0x88] ss:$16 sps:$4 sm:$0xff]   ;;  %v2940_v21 = vld [vmem:[%s3474_s6 + $0xa4] ss:$16 sps:$4 sm:$0xff]  }
  0x9a   : > { %754 = vmatprep.subr.bf16.mxu0 %v2922_v9  ;;  %795 = vmatprep.subr.bf16.mxu1 %v2924_v10  ;;  %v2942_v22 = vld [vmem:[%s3474_s6 + $0xac] ss:$16 sps:$4 sm:$0xff]   ;;  %v2944_v23 = vld [vmem:[%s3474_s6 + $0xa0] ss:$16 sps:$4 sm:$0xff]   ;;  %v2945_v24 = vld [vmem:[%s3474_s6 + $0xa8] ss:$16 sps:$4 sm:$0xff]  }
  0x9b   : > { %v2946_v25 = vld [vmem:[%s3474_s6 + $0xc4] ss:$16 sps:$4 sm:$0xff]   ;;  %v2948_v26 = vld [vmem:[%s3474_s6 + $0xcc] ss:$16 sps:$4 sm:$0xff]   ;;  %v2950_v27 = vld [vmem:[%s3474_s6 + $0xc0] ss:$16 sps:$4 sm:$0xff]  }
  0x9c   : > { %v2951_v28 = vld [vmem:[%s3474_s6 + $0xc8] ss:$16 sps:$4 sm:$0xff]   ;;  %v2952_v29 = vld [vmem:[%s3474_s6 + $0xe4] ss:$16 sps:$4 sm:$0xff]   ;;  %v2954_v30 = vld [vmem:[%s3474_s6 + $0xec] ss:$16 sps:$4 sm:$0xff]  }
  0x9d   : > { %755 = vmatpush1.bf16.msra.mxu0 %v2926_v11  ;;  %796 = vmatpush1.bf16.msra.mxu1 %v2927_v12  ;;  %v2956_v31 = vld [vmem:[%s3474_s6 + $0xe0] ss:$16 sps:$4 sm:$0xff]   ;;  %v2957_v32 = vld [vmem:[%s3474_s6 + $0xe8] ss:$16 sps:$4 sm:$0xff]   ;;  %v2958_v33 = vld [vmem:[%s3474_s6 + $0x104] ss:$16 sps:$4 sm:$0xff]  }
  0x9e   : > { %756 = vmatprep.subr.bf16.mxu0 %v2928_v13  ;;  %797 = vmatprep.subr.bf16.mxu1 %v2930_v14  ;;  %v2960_v34 = vld [vmem:[%s3474_s6 + $0x10c] ss:$16 sps:$4 sm:$0xff]   ;;  %v2962_v35 = vld [vmem:[%s3474_s6 + $0x100] ss:$16 sps:$4 sm:$0xff]   ;;  %v2963_v36 = vld [vmem:[%s3474_s6 + $0x108] ss:$16 sps:$4 sm:$0xff]  }
  0x9f   : > { %v2964_v37 = vld [vmem:[%s3474_s6 + $0x124] ss:$16 sps:$4 sm:$0xff]   ;;  %v2966_v38 = vld [vmem:[%s3474_s6 + $0x12c] ss:$16 sps:$4 sm:$0xff]   ;;  %v3201_v39 = vmov 1966171168  }
  0xa0   : > { %v415_v40 = vunpack.c.l.s4 %v3201_v39  ;;  %v2968_v42 = vld [vmem:[%s3474_s6 + $0x120] ss:$16 sps:$4 sm:$0xff]   ;;  %v2969_v43 = vld [vmem:[%s3474_s6 + $0x128] ss:$16 sps:$4 sm:$0xff]   ;;  %v2970_v44 = vld [vmem:[%s3474_s6 + $0x144] ss:$16 sps:$4 sm:$0xff]  }
  0xa1   : > { %757 = vmatpush1.bf16.msra.mxu0 %v2932_v15  ;;  %798 = vmatpush1.bf16.msra.mxu1 %v2933_v16  ;;  %v2972_v45 = vld [vmem:[%s3474_s6 + $0x14c] ss:$16 sps:$4 sm:$0xff]   ;;  %v3549_v47 = vshrl.u32 %v417_v41, 7  ;;  %v2974_v48 = vld [vmem:[%s3474_s6 + $0x140] ss:$16 sps:$4 sm:$0xff]   ;;  %p2269_p6 = scmp.ne.s32.totalorder %s3174_s21, 2 }
  0xa2   : > { %758 = vmatprep.subr.bf16.mxu0 %v2934_v17  ;;  %799 = vmatprep.subr.bf16.mxu1 %v2936_v18  ;;  %v416_v46 = vunpack.c.0.s8 %v415_v40  ;;  %v2975_v49 = vld [vmem:[%s3474_s6 + $0x148] ss:$16 sps:$4 sm:$0xff]   ;;  %v2976_v50 = vld [vmem:[%s3474_s6 + $0x164] ss:$16 sps:$4 sm:$0xff]   ;;  %v2978_v51 = vld [vmem:[%s3474_s6 + $0x16c] ss:$16 sps:$4 sm:$0xff]  }
  0xa3   : > { %v2204_v53 = vld.sshfl [vmem:[%s323_s20] sm:$0x11 pattern:$0x75316420]  ;;  %v2980_v54 = vld [vmem:[%s3474_s6 + $0x160] ss:$16 sps:$4 sm:$0xff]  }
  0xa4   : > { %v419_v52 = vsub.s32 %v416_v46, %v3549_v47  ;;  %v2981_v55 = vld [vmem:[%s3474_s6 + $0x168] ss:$16 sps:$4 sm:$0xff]   ;;  %v413_v56 = vcombine.high %v2204_v53, %v2204_v53  ;;  %v2982_v57 = vld [vmem:[%s3474_s6 + $0x184] ss:$16 sps:$4 sm:$0xff]   ;;  %v2984_v58 = vld [vmem:[%s3474_s6 + $0x18c] ss:$16 sps:$4 sm:$0xff]  }
  0xa5   : > { %759 = vmatpush1.bf16.msra.mxu0 %v2938_v19  ;;  %800 = vmatpush1.bf16.msra.mxu1 %v2939_v20  ;;  %v2986_v60 = vld [vmem:[%s3474_s6 + $0x180] ss:$16 sps:$4 sm:$0xff]   ;;  %v2987_v61 = vld [vmem:[%s3474_s6 + $0x188] ss:$16 sps:$4 sm:$0xff]   ;;  %v2988_v62 = vld [vmem:[%s3474_s6 + $0x1a4] ss:$16 sps:$4 sm:$0xff]  }
  0xa6   : > { %760 = vmatprep.subr.bf16.mxu0 %v2940_v21  ;;  %801 = vmatprep.subr.bf16.mxu1 %v2942_v22  ;;  %v427_v59 = vrot.slane %v413_v56, %v419_v52  ;;  %v2990_v63 = vld [vmem:[%s3474_s6 + $0x1ac] ss:$16 sps:$4 sm:$0xff]   ;;  %v2992_v0 = vld [vmem:[%s3474_s6 + $0x1a0] ss:$16 sps:$4 sm:$0xff]   ;;  %v2993_v1 = vld [vmem:[%s3474_s6 + $0x1a8] ss:$16 sps:$4 sm:$0xff]   ;;  %v420_v10 = vrot.slane %v2204_v53, %v419_v52 }
  0xa7   : > { %v2994_v2 = vld [vmem:[%s3474_s6 + $0x1c4] ss:$16 sps:$4 sm:$0xff]   ;;  %v2996_v3 = vld [vmem:[%s3474_s6 + $0x1cc] ss:$16 sps:$4 sm:$0xff]   ;;  %v2998_v4 = vld [vmem:[%s3474_s6 + $0x1c0] ss:$16 sps:$4 sm:$0xff]  }
  0xa8   : > { %782 = vmatprep.mubr.bf16.mxu0 %v427_v59  ;;  %823 = vmatprep.mubr.bf16.mxu1 %v427_v59  ;;  %v2999_v5 = vld [vmem:[%s3474_s6 + $0x1c8] ss:$16 sps:$4 sm:$0xff]   ;;  %v3000_v6 = vld [vmem:[%s3474_s6 + $0x1e4] ss:$16 sps:$4 sm:$0xff]   ;;  %v3002_v7 = vld [vmem:[%s3474_s6 + $0x1ec] ss:$16 sps:$4 sm:$0xff]  }
  0xa9   : > { %761 = vmatpush1.bf16.msra.mxu0 %v2944_v23  ;;  %802 = vmatpush1.bf16.msra.mxu1 %v2945_v24  ;;  %v3004_v8 = vld [vmem:[%s3474_s6 + $0x1e0] ss:$16 sps:$4 sm:$0xff]   ;;  %v3005_v9 = vld [vmem:[%s3474_s6 + $0x1e8] ss:$16 sps:$4 sm:$0xff]   ;;  %v3202_v11 = vmov 1983009808  }
  0xaa   : > { %762 = vmatprep.subr.bf16.mxu0 %v2946_v25  ;;  %803 = vmatprep.subr.bf16.mxu1 %v2948_v26  ;;  %v839_v12 = vunpack.c.l.s4 %v3202_v11  ;;  %v901_v39 = vld [vmem:[%s3504_s11 + $0x10] sm:$0xff] (!%p2269_p6)  ;;  %v916_v41 = vld [vmem:[%s3504_s11 + $0x88] sm:$0xff] (!%p2269_p6)  ;;  %v942_v59 = vld [vmem:[%s3504_s11 + $0x158] sm:$0xff] (!%p2269_p6) }
  0xab   : > { %v909_v40 = vld [vmem:[%s3504_s11 + $0x50] sm:$0xff] (!%p2269_p6) }
  0xac   : > { %v840_v13 = vunpack.c.0.s8 %v839_v12  ;;  %v925_v53 = vld [vmem:[%s3504_s11 + $0xd0] sm:$0xff] (!%p2269_p6) }
  0xad   : > { %763 = vmatpush1.bf16.msra.mxu0 %v2950_v27  ;;  %804 = vmatpush1.bf16.msra.mxu1 %v2951_v28  ;;  %v339_v27 = vld [vmem:[#allocation2] sm:$0xff] }
  0xae   : > { %764 = vmatprep.subr.bf16.mxu0 %v2952_v29  ;;  %805 = vmatprep.subr.bf16.mxu1 %v2954_v30  ;;  %v3580_v16 = vsub.s32 %v840_v13, %v3549_v47  ;;  %v900_v30 = vld [vmem:[%s3504_s11 + $0x8] sm:$0xff] (!%p2269_p6)  ;;  %v949_v11 = vld [vmem:[%s3504_s11 + $0x190] sm:$0xff] (!%p2269_p6) }
  0xaf   : > { %v957_v12 = vld [vmem:[%s3504_s11 + $0x1d0] sm:$0xff] (!%p2269_p6)  ;;  %v964_v13 = vld [vmem:[%s3504_s11 + $0x208] sm:$0xff] (!%p2269_p6) }
  0xb1   : > { %765 = vmatpush1.bf16.msra.mxu0 %v2956_v31  ;;  %806 = vmatpush1.bf16.msra.mxu1 %v2957_v32  ;;  %v908_v31 = vld [vmem:[%s3504_s11 + $0x48] sm:$0xff] (!%p2269_p6)  ;;  %v902_v32 = vld [vmem:[%s3504_s11 + $0x18] sm:$0xff] (!%p2269_p6) }
  0xb2   : > { %766 = vmatprep.subr.bf16.mxu0 %v2958_v33  ;;  %807 = vmatprep.subr.bf16.mxu1 %v2960_v34  ;;  %v2277_v33 = vpack.c.bf16 (!%p2269_p6), %v908_v31, %v900_v30  ;;  %v910_v34 = vld [vmem:[%s3504_s11 + $0x58] sm:$0xff] (!%p2269_p6) }
  0xb5   : > { %767 = vmatpush1.bf16.msra.mxu0 %v2962_v35  ;;  %808 = vmatpush1.bf16.msra.mxu1 %v2963_v36  ;;  %v899_v35 = vld [vmem:[%s3504_s11] sm:$0xff] (!%p2269_p6) }
  0xb6   : > { %768 = vmatprep.subr.bf16.mxu0 %v2964_v37  ;;  %809 = vmatprep.subr.bf16.mxu1 %v2966_v38  ;;  %v907_v36 = vld [vmem:[%s3504_s11 + $0x40] sm:$0xff] (!%p2269_p6)  ;;  %v2405_v37 = vpack.c.bf16 (!%p2269_p6), %v910_v34, %v902_v32 }
  0xb7   : > { %v2279_v38 = vpack.c.bf16 (!%p2269_p6), %v907_v36, %v899_v35  ;;  %v987_v34 = vld [vmem:[%s3504_s11 + $0x2c0] sm:$0xff] (!%p2269_p6)  ;;  %v981_v35 = vld [vmem:[%s3504_s11 + $0x290] sm:$0xff] (!%p2269_p6) }
  0xb9   : > { %769 = vmatpush1.bf16.msra.mxu0 %v2968_v42  ;;  %810 = vmatpush1.bf16.msra.mxu1 %v2969_v43  ;;  %v2407_v42 = vpack.c.bf16 (!%p2269_p6), %v909_v40, %v901_v39  ;;  %v924_v43 = vld [vmem:[%s3504_s11 + $0xc8] sm:$0xff] (!%p2269_p6)  ;;  %v998_v40 = vld [vmem:[%s3504_s11 + $0x318] sm:$0xff] (!%p2269_p6) }
  0xba   : > { %770 = vmatprep.subr.bf16.mxu0 %v2970_v44  ;;  %811 = vmatprep.subr.bf16.mxu1 %v2972_v45  ;;  %v918_v44 = vld [vmem:[%s3504_s11 + $0x98] sm:$0xff] (!%p2269_p6)  ;;  %v2281_v46 = vpack.c.bf16 (!%p2269_p6), %v924_v43, %v916_v41  ;;  %v1004_v39 = vld [vmem:[%s3504_s11 + $0x348] sm:$0xff] (!%p2269_p6) }
  0xbb   : > { %v926_v45 = vld [vmem:[%s3504_s11 + $0xd8] sm:$0xff] (!%p2269_p6) }
  0xbc   : > { %v1006_v41 = vld [vmem:[%s3504_s11 + $0x358] sm:$0xff] (!%p2269_p6) }
  0xbd   : > { %771 = vmatpush1.bf16.msra.mxu0 %v2974_v48  ;;  %812 = vmatpush1.bf16.msra.mxu1 %v2975_v49  ;;  %v2409_v48 = vpack.c.bf16 (!%p2269_p6), %v926_v45, %v918_v44  ;;  %v915_v49 = vld [vmem:[%s3504_s11 + $0x80] sm:$0xff] (!%p2269_p6) }
  0xbe   : > { %772 = vmatprep.subr.bf16.mxu0 %v2976_v50  ;;  %813 = vmatprep.subr.bf16.mxu1 %v2978_v51  ;;  %v923_v50 = vld [vmem:[%s3504_s11 + $0xc0] sm:$0xff] (!%p2269_p6)  ;;  %v917_v51 = vld [vmem:[%s3504_s11 + $0x90] sm:$0xff] (!%p2269_p6) }
  0xbf   : > { %v2283_v52 = vpack.c.bf16 (!%p2269_p6), %v923_v50, %v915_v49  ;;  %v2411_v56 = vpack.c.bf16 (!%p2269_p6), %v925_v53, %v917_v51  ;;  %v995_v45 = vld [vmem:[%s3504_s11 + $0x300] sm:$0xff] (!%p2269_p6)  ;;  %v2429_v49 = vpack.c.bf16 (!%p2269_p6), %v1006_v41, %v998_v40  ;;  %v1005_v50 = vld [vmem:[%s3504_s11 + $0x350] sm:$0xff] (!%p2269_p6)  ;;  %v1012_v51 = vld [vmem:[%s3504_s11 + $0x388] sm:$0xff] (!%p2269_p6)  ;;  %v865_v40 = vsub.s32 (!%p2269_p6), 0, %v3549_v47 }
  0xc0   : > { %v1014_v53 = vld [vmem:[%s3504_s11 + $0x398] sm:$0xff] (!%p2269_p6) }
  0xc1   : > { %773 = vmatpush1.bf16.msra.mxu0 %v2980_v54  ;;  %814 = vmatpush1.bf16.msra.mxu1 %v2981_v55  ;;  %v932_v54 = vld [vmem:[%s3504_s11 + $0x108] sm:$0xff] (!%p2269_p6) }
  0xc2   : > { %774 = vmatprep.subr.bf16.mxu0 %v2982_v57  ;;  %815 = vmatprep.subr.bf16.mxu1 %v2984_v58  ;;  %v940_v55 = vld [vmem:[%s3504_s11 + $0x148] sm:$0xff] (!%p2269_p6)  ;;  %v934_v58 = vld [vmem:[%s3504_s11 + $0x118] sm:$0xff] (!%p2269_p6) }
  0xc3   : > { %v2285_v57 = vpack.c.bf16 (!%p2269_p6), %v940_v55, %v932_v54  ;;  %v1022_v54 = vld [vmem:[%s3504_s11 + $0x3d8] sm:$0xff] (!%p2269_p6) }
  0xc5   : > { %775 = vmatpush1.bf16.msra.mxu0 %v2986_v60  ;;  %816 = vmatpush1.bf16.msra.mxu1 %v2987_v61  ;;  %v931_v60 = vld [vmem:[%s3504_s11 + $0x100] sm:$0xff] (!%p2269_p6)  ;;  %v2413_v61 = vpack.c.bf16 (!%p2269_p6), %v942_v59, %v934_v58 }
  0xc6   : > { %776 = vmatprep.subr.bf16.mxu0 %v2988_v62  ;;  %817 = vmatprep.subr.bf16.mxu1 %v2990_v63  ;;  %v939_v62 = vld [vmem:[%s3504_s11 + $0x140] sm:$0xff] (!%p2269_p6)  ;;  %v933_v63 = vld [vmem:[%s3504_s11 + $0x110] sm:$0xff] (!%p2269_p6) }
  0xc7   : > { %v1011_v58 = vld [vmem:[%s3504_s11 + $0x380] sm:$0xff] (!%p2269_p6) }
  0xc8   : > { %v1019_v59 = vld [vmem:[%s3504_s11 + $0x3c0] sm:$0xff] (!%p2269_p6) }
  0xc9   : > { %777 = vmatpush1.bf16.msra.mxu0 %v2992_v0  ;;  %818 = vmatpush1.bf16.msra.mxu1 %v2993_v1  ;;  %v941_v0 = vld [vmem:[%s3504_s11 + $0x150] sm:$0xff] (!%p2269_p6)  ;;  %v2287_v1 = vpack.c.bf16 (!%p2269_p6), %v939_v62, %v931_v60 }
  0xca   : > { %778 = vmatprep.subr.bf16.mxu0 %v2994_v2  ;;  %819 = vmatprep.subr.bf16.mxu1 %v2996_v3  ;;  %v948_v2 = vld [vmem:[%s3504_s11 + $0x188] sm:$0xff] (!%p2269_p6)  ;;  %v1013_v60 = vld [vmem:[%s3504_s11 + $0x390] sm:$0xff] (!%p2269_p6) }
  0xcb   : > { %v956_v3 = vld [vmem:[%s3504_s11 + $0x1c8] sm:$0xff] (!%p2269_p6)  ;;  %v1021_v62 = vld [vmem:[%s3504_s11 + $0x3d0] sm:$0xff] (!%p2269_p6) }
  0xcd   : > { %779 = vmatpush1.bf16.msra.mxu0 %v2998_v4  ;;  %820 = vmatpush1.bf16.msra.mxu1 %v2999_v5  ;;  %v950_v4 = vld [vmem:[%s3504_s11 + $0x198] sm:$0xff] (!%p2269_p6)  ;;  %v2415_v5 = vpack.c.bf16 (!%p2269_p6), %v941_v0, %v933_v63  ;;  %v1028_v63 = vld [vmem:[%s3504_s11 + $0x408] sm:$0xff] (!%p2269_p6) }
  0xce   : > { %780 = vmatprep.subr.bf16.mxu0 %v3000_v6  ;;  %821 = vmatprep.subr.bf16.mxu1 %v3002_v7  ;;  %v2289_v6 = vpack.c.bf16 (!%p2269_p6), %v956_v3, %v948_v2  ;;  %v958_v7 = vld [vmem:[%s3504_s11 + $0x1d8] sm:$0xff] (!%p2269_p6)  ;;  %v1036_v0 = vld [vmem:[%s3504_s11 + $0x448] sm:$0xff] (!%p2269_p6)  ;;  %v2307_v3 = vpack.c.bf16 (!%p2269_p6), %v1019_v59, %v1011_v58 }
  0xcf   : > { %v1038_v2 = vld [vmem:[%s3504_s11 + $0x458] sm:$0xff] (!%p2269_p6) }
  0xd0   : > { %v861_v58 = vld [vmem:[%s272_s29] sm:$0xf] (!%p2269_p6) }
  0xd1   : > { %781 = vmatpush1.bf16.msra.mxu0 %v3004_v8  ;;  %822 = vmatpush1.bf16.msra.mxu1 %v3005_v9  ;;  %v947_v8 = vld [vmem:[%s3504_s11 + $0x180] sm:$0xff] (!%p2269_p6) }
  0xd2   : > { %2278 = vmatprep.subr.bf16.mxu0 (!%p2269_p6), %v2277_v33  ;;  %2406 = vmatprep.subr.bf16.mxu1 (!%p2269_p6), %v2405_v37  ;;  %v955_v9 = vld [vmem:[%s3504_s11 + $0x1c0] sm:$0xff] (!%p2269_p6)  ;;  %v989_v37 = vld [vmem:[%s3504_s11 + $0x2d0] sm:$0xff] (!%p2269_p6) }
  0xd3   : > { %v979_v33 = vld [vmem:[%s3504_s11 + $0x280] sm:$0xff] (!%p2269_p6)  ;;  %v2427_v43 = vpack.c.bf16 (!%p2269_p6), %v989_v37, %v981_v35  ;;  %v1069_v35 = vld [vmem:[%s3504_s11 + $0x550] sm:$0xff] (!%p2269_p6)  ;;  %v1084_v37 = vld [vmem:[%s3504_s11 + $0x5c8] sm:$0xff] (!%p2269_p6) }
  0xd4   : > { %783 = vmatmul.mubr.bf16.vlgmr.msra.gmra.mrb[0].mxu0 %v420_v10  ;;  %824 = vmatmul.mubr.bf16.vlgmr.msra.gmra.mrb[0].mxu1 %v420_v10  ;;  %v2417_v10 = vpack.c.bf16 (!%p2269_p6), %v958_v7, %v950_v4  ;;  %v2435_v4 = vpack.c.bf16 (!%p2269_p6), %v1021_v62, %v1013_v60  ;;  %v1035_v7 = vld [vmem:[%s3504_s11 + $0x440] sm:$0xff] (!%p2269_p6) }
  0xd5   : > { %2280 = vmatpush1.bf16.msra.mxu0 (!%p2269_p6), %v2279_v38  ;;  %2408 = vmatpush1.bf16.msra.mxu1 (!%p2269_p6), %v2407_v42  ;;  %v996_v38 = vld [vmem:[%s3504_s11 + $0x308] sm:$0xff] (!%p2269_p6)  ;;  %v2299_v42 = vpack.c.bf16 (!%p2269_p6), %v987_v34, %v979_v33  ;;  %v1061_v33 = vld [vmem:[%s3504_s11 + $0x510] sm:$0xff] (!%p2269_p6) }
  0xd6   : > { %2282 = vmatprep.subr.bf16.mxu0 (!%p2269_p6), %v2281_v46  ;;  %2410 = vmatprep.subr.bf16.mxu1 (!%p2269_p6), %v2409_v48  ;;  %v2301_v44 = vpack.c.bf16 (!%p2269_p6), %v1004_v39, %v996_v38  ;;  %v1003_v46 = vld [vmem:[%s3504_s11 + $0x340] sm:$0xff] (!%p2269_p6)  ;;  %v997_v48 = vld [vmem:[%s3504_s11 + $0x310] sm:$0xff] (!%p2269_p6)  ;;  %v1078_v38 = vld [vmem:[%s3504_s11 + $0x598] sm:$0xff] (!%p2269_p6) }
  0xd7   : > { %v2303_v55 = vpack.c.bf16 (!%p2269_p6), %v1003_v46, %v995_v45  ;;  %v1086_v39 = vld [vmem:[%s3504_s11 + $0x5d8] sm:$0xff] (!%p2269_p6)  ;;  %v873_v45 = vsub.s32 (!%p2269_p6), 2, %v3549_v47  ;;  %v877_v46 = vsub.s32 (!%p2269_p6), 3, %v3549_v47 }
  0xd9   : > { %2284 = vmatpush1.bf16.msra.mxu0 (!%p2269_p6), %v2283_v52  ;;  %2412 = vmatpush1.bf16.msra.mxu1 (!%p2269_p6), %v2411_v56  ;;  %v1020_v52 = vld [vmem:[%s3504_s11 + $0x3c8] sm:$0xff] (!%p2269_p6)  ;;  %v2431_v56 = vpack.c.bf16 (!%p2269_p6), %v1005_v50, %v997_v48  ;;  %v2447_v48 = vpack.c.bf16 (!%p2269_p6), %v1069_v35, %v1061_v33  ;;  %v1077_v50 = vld [vmem:[%s3504_s11 + $0x590] sm:$0xff] (!%p2269_p6)  ;;  %v874_v60 = vrot.slane (!%p2269_p6), %v861_v58, %v873_v45  ;;  %v1131_v33 = vld [vmem:[%s3504_s11 + $0x740] sm:$0xff] (!%p2269_p6) }
  0xda   : > { %2286 = vmatprep.subr.bf16.mxu0 (!%p2269_p6), %v2285_v57  ;;  %2414 = vmatprep.subr.bf16.mxu1 (!%p2269_p6), %v2413_v61  ;;  %v2305_v57 = vpack.c.bf16 (!%p2269_p6), %v1020_v52, %v1012_v51  ;;  %v2433_v61 = vpack.c.bf16 (!%p2269_p6), %v1022_v54, %v1014_v53  ;;  %v2449_v51 = vpack.c.bf16 (!%p2269_p6), %v1086_v39, %v1078_v38  ;;  %v1085_v52 = vld [vmem:[%s3504_s11 + $0x5d0] sm:$0xff] (!%p2269_p6)  ;;  %v1092_v53 = vld [vmem:[%s3504_s11 + $0x608] sm:$0xff] (!%p2269_p6) }
  0xdb   : > { %v1100_v54 = vld [vmem:[%s3504_s11 + $0x648] sm:$0xff] (!%p2269_p6)  ;;  %v2451_v62 = vpack.c.bf16 (!%p2269_p6), %v1085_v52, %v1077_v50 }
  0xdc   : > { %v1148_v38 = vld [vmem:[%s3504_s11 + $0x7c8] sm:$0xff] (!%p2269_p6) }
  0xdd   : > { %2288 = vmatpush1.bf16.msra.mxu0 (!%p2269_p6), %v2287_v1  ;;  %2416 = vmatpush1.bf16.msra.mxu1 (!%p2269_p6), %v2415_v5  ;;  %v1030_v1 = vld [vmem:[%s3504_s11 + $0x418] sm:$0xff] (!%p2269_p6)  ;;  %v2309_v5 = vpack.c.bf16 (!%p2269_p6), %v1036_v0, %v1028_v63  ;;  %v2325_v63 = vpack.c.bf16 (!%p2269_p6), %v1100_v54, %v1092_v53  ;;  %v1091_v0 = vld [vmem:[%s3504_s11 + $0x600] sm:$0xff] (!%p2269_p6)  ;;  %v1156_v53 = vld [vmem:[%s3504_s11 + $0x808] sm:$0xff] (!%p2269_p6) }
  0xde   : > { %2290 = vmatprep.subr.bf16.mxu0 (!%p2269_p6), %v2289_v6  ;;  %2418 = vmatprep.subr.bf16.mxu1 (!%p2269_p6), %v2417_v10  ;;  %v1027_v6 = vld [vmem:[%s3504_s11 + $0x400] sm:$0xff] (!%p2269_p6)  ;;  %v1037_v10 = vld [vmem:[%s3504_s11 + $0x450] sm:$0xff] (!%p2269_p6)  ;;  %v1164_v54 = vld [vmem:[%s3504_s11 + $0x848] sm:$0xff] (!%p2269_p6) }
 0x1a7   : > { %v784_v14 = vpop.f32.mrb[0].mxu0  ;;  %v825_v15 = vpop.f32.mrb[0].mxu1 }
 0x1a8   : > { %v786_v17 = vpop.f32.mrb[1].mxu0  ;;  %v827_v18 = vpop.f32.mrb[1].mxu1 }
 0x1a9   : > { %v836_v19 = vcombine.low %v784_v14, %v786_v17  ;;  %v837_v20 = vcombine.low %v825_v15, %v827_v18  ;;  %v788_v21 = vpop.f32.mrb[2].mxu0  ;;  %v829_v22 = vpop.f32.mrb[2].mxu1  ;;  %v972_v14 = vld [vmem:[%s3504_s11 + $0x248] sm:$0xff] (!%p2269_p6)  ;;  %v966_v15 = vld [vmem:[%s3504_s11 + $0x218] sm:$0xff] (!%p2269_p6)  ;;  %v2291_v18 = vpack.c.bf16 (!%p2269_p6), %v955_v9, %v947_v8  ;;  %v1029_v8 = vld [vmem:[%s3504_s11 + $0x410] sm:$0xff] (!%p2269_p6)  ;;  %v2437_v9 = vpack.c.bf16 (!%p2269_p6), %v1038_v2, %v1030_v1 }
 0x1aa   : > { %v789_v23 = vpop.f32.mrb[3].mxu0  ;;  %v830_v24 = vpop.f32.mrb[3].mxu1  ;;  %v974_v17 = vld [vmem:[%s3504_s11 + $0x258] sm:$0xff] (!%p2269_p6)  ;;  %v963_v21 = vld [vmem:[%s3504_s11 + $0x200] sm:$0xff] (!%p2269_p6)  ;;  %v1093_v2 = vld [vmem:[%s3504_s11 + $0x610] sm:$0xff] (!%p2269_p6) }
 0x1ab   : > { %v844_v25 = vrot.slane %v836_v19, %v3580_v16  ;;  %v851_v26 = vrot.slane %v837_v20, %v3580_v16  ;;  %859 = sbr.rel (%p2269_p6) target bundleno = 892 (0x37c), region = 56  ;;  %v2419_v19 = vpack.c.bf16 (!%p2269_p6), %v957_v12, %v949_v11  ;;  %v2293_v20 = vpack.c.bf16 (!%p2269_p6), %v972_v14, %v964_v13  ;;  %v971_v22 = vld [vmem:[%s3504_s11 + $0x240] sm:$0xff] (!%p2269_p6)  ;;  %v965_v23 = vld [vmem:[%s3504_s11 + $0x210] sm:$0xff] (!%p2269_p6)  ;;  %2292 = vmatpush1.bf16.msra.mxu0 (!%p2269_p6), %v2291_v18  ;;  %v1044_v11 = vld [vmem:[%s3504_s11 + $0x488] sm:$0xff] (!%p2269_p6) }
 0x1ac   : > { %v2421_v24 = vpack.c.bf16 (!%p2269_p6), %v974_v17, %v966_v15  ;;  %v2295_v30 = vpack.c.bf16 (!%p2269_p6), %v971_v22, %v963_v21  ;;  %v1052_v12 = vld [vmem:[%s3504_s11 + $0x4c8] sm:$0xff] (!%p2269_p6)  ;;  %v1046_v13 = vld [vmem:[%s3504_s11 + $0x498] sm:$0xff] (!%p2269_p6)  ;;  %v2311_v15 = vpack.c.bf16 (!%p2269_p6), %v1035_v7, %v1027_v6  ;;  %v2439_v17 = vpack.c.bf16 (!%p2269_p6), %v1037_v10, %v1029_v8  ;;  %v1045_v21 = vld [vmem:[%s3504_s11 + $0x490] sm:$0xff] (!%p2269_p6) }
 0x1ad   : > { %v852_v28 = vcombine.low %v844_v25, %v851_v26  ;;  %v973_v25 = vld [vmem:[%s3504_s11 + $0x250] sm:$0xff] (!%p2269_p6)  ;;  %v980_v26 = vld [vmem:[%s3504_s11 + $0x288] sm:$0xff] (!%p2269_p6)  ;;  %2420 = vmatpush1.bf16.msra.mxu1 (!%p2269_p6), %v2419_v19  ;;  %2294 = vmatprep.subr.bf16.mxu0 (!%p2269_p6), %v2293_v20  ;;  %v1054_v14 = vld [vmem:[%s3504_s11 + $0x4d8] sm:$0xff] (!%p2269_p6)  ;;  %v2313_v18 = vpack.c.bf16 (!%p2269_p6), %v1052_v12, %v1044_v11 }
 0x1ae   : > { %v2423_v31 = vpack.c.bf16 (!%p2269_p6), %v973_v25, %v965_v23  ;;  %2422 = vmatprep.subr.bf16.mxu1 (!%p2269_p6), %v2421_v24  ;;  %v1043_v19 = vld [vmem:[%s3504_s11 + $0x480] sm:$0xff] (!%p2269_p6)  ;;  %v2441_v22 = vpack.c.bf16 (!%p2269_p6), %v1054_v14, %v1046_v13  ;;  %v1053_v23 = vld [vmem:[%s3504_s11 + $0x4d0] sm:$0xff] (!%p2269_p6)  ;;  %v1060_v24 = vld [vmem:[%s3504_s11 + $0x508] sm:$0xff] (!%p2269_p6) }
 0x1af   : > { %v854_v29 = vadd.f32 %v852_v28, %v339_v27  ;;  %v988_v27 = vld [vmem:[%s3504_s11 + $0x2c8] sm:$0xff] (!%p2269_p6)  ;;  %v982_v28 = vld [vmem:[%s3504_s11 + $0x298] sm:$0xff] (!%p2269_p6)  ;;  %2296 = vmatpush1.bf16.msra.mxu0 (!%p2269_p6), %v2295_v30  ;;  %v1051_v20 = vld [vmem:[%s3504_s11 + $0x4c0] sm:$0xff] (!%p2269_p6) }
 0x1b0   : > { %v2297_v32 = vpack.c.bf16 (!%p2269_p6), %v988_v27, %v980_v26  ;;  %v1068_v25 = vld [vmem:[%s3504_s11 + $0x548] sm:$0xff] (!%p2269_p6)  ;;  %v1062_v26 = vld [vmem:[%s3504_s11 + $0x518] sm:$0xff] (!%p2269_p6)  ;;  %v1099_v1 = vld [vmem:[%s3504_s11 + $0x640] sm:$0xff] (!%p2269_p6) }
 0x1b1   : > { %855 = vst [vmem:[#allocation2] sm:$0xff] %v854_v29  ;;  %v990_v29 = vld [vmem:[%s3504_s11 + $0x2d8] sm:$0xff] (!%p2269_p6)  ;;  %2424 = vmatpush1.bf16.msra.mxu1 (!%p2269_p6), %v2423_v31  ;;  %v2317_v30 = vpack.c.bf16 (!%p2269_p6), %v1068_v25, %v1060_v24  ;;  %v1059_v31 = vld [vmem:[%s3504_s11 + $0x500] sm:$0xff] (!%p2269_p6)  ;;  %v1116_v6 = vld [vmem:[%s3504_s11 + $0x6c8] sm:$0xff] (!%p2269_p6)  ;;  %v2327_v11 = vpack.c.bf16 (!%p2269_p6), %v1099_v1, %v1091_v0 }
 0x1b2   : > { %v2425_v36 = vpack.c.bf16 %v990_v29, %v982_v28  ;;  %2298 = vmatprep.subr.bf16.mxu0 %v2297_v32  ;;  %v1070_v27 = vld [vmem:[%s3504_s11 + $0x558] sm:$0xff]  ;;  %v2315_v28 = vpack.c.bf16 %v1051_v20, %v1043_v19  ;;  %v2443_v29 = vpack.c.bf16 %v1053_v23, %v1045_v21  ;;  %v1067_v32 = vld [vmem:[%s3504_s11 + $0x540] sm:$0xff]  ;;  %v1109_v19 = vld [vmem:[%s3504_s11 + $0x690] sm:$0xff] }
 0x1b3   : > { %2300 = vmatpush1.bf16.msra.mxu0 %v2299_v42  ;;  %v2445_v34 = vpack.c.bf16 %v1070_v27, %v1062_v26  ;;  %v2319_v41 = vpack.c.bf16 %v1067_v32, %v1059_v31  ;;  %v1075_v42 = vld [vmem:[%s3504_s11 + $0x580] sm:$0xff]  ;;  %v1118_v10 = vld [vmem:[%s3504_s11 + $0x6d8] sm:$0xff]  ;;  %v1124_v23 = vld [vmem:[%s3504_s11 + $0x708] sm:$0xff] }
 0x1b4   : > { %2426 = vmatprep.subr.bf16.mxu1 %v2425_v36  ;;  %2302 = vmatprep.subr.bf16.mxu0 %v2301_v44  ;;  %v1076_v36 = vld [vmem:[%s3504_s11 + $0x588] sm:$0xff]  ;;  %v869_v44 = vsub.s32 1, %v3549_v47  ;;  %v866_v47 = vrot.slane %v861_v58, %v865_v40  ;;  %v1107_v12 = vld [vmem:[%s3504_s11 + $0x680] sm:$0xff]  ;;  %v1126_v26 = vld [vmem:[%s3504_s11 + $0x718] sm:$0xff] }
 0x1b5   : > { %2428 = vmatpush1.bf16.msra.mxu1 %v2427_v43  ;;  %v1083_v43 = vld [vmem:[%s3504_s11 + $0x5c0] sm:$0xff]  ;;  %v1132_v24 = vld [vmem:[%s3504_s11 + $0x748] sm:$0xff]  ;;  %v1134_v27 = vld [vmem:[%s3504_s11 + $0x758] sm:$0xff] }
 0x1b6   : > { %2430 = vmatprep.subr.bf16.mxu1 %v2429_v49  ;;  %v2321_v49 = vpack.c.bf16 %v1084_v37, %v1076_v36  ;;  %v870_v59 = vrot.slane %v861_v58, %v869_v44  ;;  %v2333_v31 = vpack.c.bf16 %v1132_v24, %v1124_v23  ;;  %v1123_v32 = vld [vmem:[%s3504_s11 + $0x700] sm:$0xff]  ;;  %v2461_v35 = vpack.c.bf16 %v1134_v27, %v1126_v26  ;;  %v1133_v36 = vld [vmem:[%s3504_s11 + $0x750] sm:$0xff]  ;;  %v1140_v37 = vld [vmem:[%s3504_s11 + $0x788] sm:$0xff] }
 0x1b7   : > { %2304 = vmatpush1.bf16.msra.mxu0 %v2303_v55  ;;  %v2323_v55 = vpack.c.bf16 %v1083_v43, %v1075_v42  ;;  %v1142_v40 = vld [vmem:[%s3504_s11 + $0x798] sm:$0xff]  ;;  %v2335_v42 = vpack.c.bf16 %v1131_v33, %v1123_v32  ;;  %v2337_v45 = vpack.c.bf16 %v1148_v38, %v1140_v37  ;;  %v1165_v0 = vld [vmem:[%s3504_s11 + $0x850] sm:$0xff]  ;;  %v1172_v1 = vld [vmem:[%s3504_s11 + $0x888] sm:$0xff] }
 0x1b8   : > { %2306 = vmatprep.subr.bf16.mxu0 %v2305_v57  ;;  %v1102_v57 = vld [vmem:[%s3504_s11 + $0x658] sm:$0xff]  ;;  %v879_v7 = vcombine.low %v866_v47, %v870_v59  ;;  %v860_v20 = vld [vmem:[#allocation2] sm:$0xff]  ;;  %v2341_v59 = vpack.c.bf16 %v1164_v54, %v1156_v53  ;;  %v1187_v23 = vld [vmem:[%s3504_s11 + $0x900] sm:$0xff] }
 0x1b9   : > { %2432 = vmatpush1.bf16.msra.mxu1 %v2431_v56  ;;  %v1094_v56 = vld [vmem:[%s3504_s11 + $0x618] sm:$0xff]  ;;  %v1195_v24 = vld [vmem:[%s3504_s11 + $0x940] sm:$0xff]  ;;  %v1197_v27 = vld [vmem:[%s3504_s11 + $0x950] sm:$0xff] }
 0x1ba   : > { %2434 = vmatprep.subr.bf16.mxu1 %v2433_v61  ;;  %v878_v61 = vrot.slane %v861_v58, %v877_v46  ;;  %v887_v13 = vrot.slane %v879_v7, %v3580_v16  ;;  %v1139_v46 = vld [vmem:[%s3504_s11 + $0x780] sm:$0xff]  ;;  %v2351_v32 = vpack.c.bf16 %v1195_v24, %v1187_v23  ;;  %v1205_v37 = vld [vmem:[%s3504_s11 + $0x990] sm:$0xff] }
 0x1bb   : > { %2308 = vmatpush1.bf16.msra.mxu0 %v2307_v3  ;;  %v2453_v3 = vpack.c.bf16 %v1102_v57, %v1094_v56  ;;  %v1158_v56 = vld [vmem:[%s3504_s11 + $0x818] sm:$0xff]  ;;  %v1229_v54 = vld [vmem:[%s3504_s11 + $0xa50] sm:$0xff]  ;;  %v1267_v24 = vld [vmem:[%s3504_s11 + $0xb80] sm:$0xff] }
 0x1bc   : > { %2310 = vmatprep.subr.bf16.mxu0 %v2309_v5  ;;  %v1108_v5 = vld [vmem:[%s3504_s11 + $0x688] sm:$0xff]  ;;  %v880_v8 = vcombine.low %v874_v60, %v878_v61  ;;  %v1166_v57 = vld [vmem:[%s3504_s11 + $0x858] sm:$0xff]  ;;  %v1155_v60 = vld [vmem:[%s3504_s11 + $0x800] sm:$0xff] }
 0x1bd   : > { %2436 = vmatpush1.bf16.msra.mxu1 %v2435_v4  ;;  %v1101_v4 = vld [vmem:[%s3504_s11 + $0x650] sm:$0xff]  ;;  %v1163_v61 = vld [vmem:[%s3504_s11 + $0x840] sm:$0xff] }
 0x1be   : > { %2438 = vmatprep.subr.bf16.mxu1 %v2437_v9  ;;  %v1110_v9 = vld [vmem:[%s3504_s11 + $0x698] sm:$0xff]  ;;  %v894_v14 = vrot.slane %v880_v8, %v3580_v16 }
 0x1bf   : > { %2312 = vmatpush1.bf16.msra.mxu0 %v2311_v15  ;;  %v2455_v15 = vpack.c.bf16 %v1101_v4, %v1093_v2  ;;  %v2457_v21 = vpack.c.bf16 %v1118_v10, %v1110_v9  ;;  %v1180_v2 = vld [vmem:[%s3504_s11 + $0x8c8] sm:$0xff]  ;;  %v1174_v4 = vld [vmem:[%s3504_s11 + $0x898] sm:$0xff]  ;;  %v1171_v9 = vld [vmem:[%s3504_s11 + $0x880] sm:$0xff] }
 0x1c0   : > { %2314 = vmatprep.subr.bf16.mxu0 %v2313_v18  ;;  %v1115_v18 = vld [vmem:[%s3504_s11 + $0x6c0] sm:$0xff]  ;;  %v895_v25 = vcombine.low %v887_v13, %v894_v14  ;;  %v2345_v8 = vpack.c.bf16 %v1180_v2, %v1172_v1  ;;  %v1181_v13 = vld [vmem:[%s3504_s11 + $0x8d0] sm:$0xff]  ;;  %v1188_v14 = vld [vmem:[%s3504_s11 + $0x908] sm:$0xff] }
 0x1c1   : > { %2440 = vmatpush1.bf16.msra.mxu1 %v2439_v17  ;;  %v2329_v17 = vpack.c.bf16 %v1116_v6, %v1108_v5  ;;  %v1182_v5 = vld [vmem:[%s3504_s11 + $0x8d8] sm:$0xff]  ;;  %v2343_v6 = vpack.c.bf16 %v1163_v61, %v1155_v60  ;;  %v1179_v10 = vld [vmem:[%s3504_s11 + $0x8c0] sm:$0xff]  ;;  %v1245_v1 = vld [vmem:[%s3504_s11 + $0xad0] sm:$0xff] }
 0x1c2   : > { %2442 = vmatprep.subr.bf16.mxu1 %v2441_v22  ;;  %v1117_v22 = vld [vmem:[%s3504_s11 + $0x6d0] sm:$0xff]  ;;  %v1235_v61 = vld [vmem:[%s3504_s11 + $0xa80] sm:$0xff]  ;;  %v1252_v2 = vld [vmem:[%s3504_s11 + $0xb08] sm:$0xff] }
 0x1c3   : > { %2316 = vmatpush1.bf16.msra.mxu0 %v2315_v28  ;;  %v2331_v28 = vpack.c.bf16 %v1115_v18, %v1107_v12  ;;  %v2473_v12 = vpack.c.bf16 %v1182_v5, %v1174_v4  ;;  %v1190_v18 = vld [vmem:[%s3504_s11 + $0x918] sm:$0xff]  ;;  %v1260_v4 = vld [vmem:[%s3504_s11 + $0xb48] sm:$0xff] }
 0x1c4   : > { %2318 = vmatprep.subr.bf16.mxu0 %v2317_v30  ;;  %v2459_v30 = vpack.c.bf16 %v1117_v22, %v1109_v19  ;;  %v1198_v19 = vld [vmem:[%s3504_s11 + $0x958] sm:$0xff] }
 0x1c5   : > { %2444 = vmatpush1.bf16.msra.mxu1 %v2443_v29  ;;  %v897_v29 = vadd.f32 %v895_v25, %v860_v20  ;;  %v2347_v20 = vpack.c.bf16 %v1179_v10, %v1171_v9  ;;  %v1189_v25 = vld [vmem:[%s3504_s11 + $0x910] sm:$0xff]  ;;  %v2477_v26 = vpack.c.bf16 %v1198_v19, %v1190_v18  ;;  %v1254_v5 = vld [vmem:[%s3504_s11 + $0xb18] sm:$0xff]  ;;  %v2365_v9 = vpack.c.bf16 %v1260_v4, %v1252_v2  ;;  %v1251_v10 = vld [vmem:[%s3504_s11 + $0xb00] sm:$0xff] }
 0x1c6   : > { %2446 = vmatprep.subr.bf16.mxu1 %v2445_v34  ;;  %v1125_v34 = vld [vmem:[%s3504_s11 + $0x710] sm:$0xff]  ;;  %v2479_v33 = vpack.c.bf16 %v1197_v27, %v1189_v25  ;;  %v1276_v18 = vld [vmem:[%s3504_s11 + $0xbc8] sm:$0xff]  ;;  %v1270_v19 = vld [vmem:[%s3504_s11 + $0xb98] sm:$0xff] }
 0x1c7   : > { %2320 = vmatpush1.bf16.msra.mxu0 %v2319_v41  ;;  %v898_v39 = vmax.f32 %v897_v29, 0.0  ;;  %v1150_v41 = vld [vmem:[%s3504_s11 + $0x7d8] sm:$0xff]  ;;  %v2463_v44 = vpack.c.bf16 %v1133_v36, %v1125_v34  ;;  %v1212_v29 = vld [vmem:[%s3504_s11 + $0x9c8] sm:$0xff]  ;;  %v1211_v36 = vld [vmem:[%s3504_s11 + $0x9c0] sm:$0xff] }
 0x1c8   : > { %2322 = vmatprep.subr.bf16.mxu0 %v2321_v49  ;;  %v1141_v49 = vld [vmem:[%s3504_s11 + $0x790] sm:$0xff]  ;;  %v2465_v50 = vpack.c.bf16 %v1150_v41, %v1142_v40  ;;  %v1220_v40 = vld [vmem:[%s3504_s11 + $0xa08] sm:$0xff]  ;;  %v1275_v25 = vld [vmem:[%s3504_s11 + $0xbc0] sm:$0xff] }
 0x1c9   : > { %2448 = vmatpush1.bf16.msra.mxu1 %v2447_v48  ;;  %v3718_v43 = vrot.slane %v898_v39, %v3580_v16  ;;  %v1147_v48 = vld [vmem:[%s3504_s11 + $0x7c0] sm:$0xff]  ;;  %v1228_v41 = vld [vmem:[%s3504_s11 + $0xa48] sm:$0xff]  ;;  %v1325_v2 = vld [vmem:[%s3504_s11 + $0xd50] sm:$0xff] }
 0x1ca   : > { %2450 = vmatprep.subr.bf16.mxu1 %v2449_v51  ;;  %v1149_v51 = vld [vmem:[%s3504_s11 + $0x7d0] sm:$0xff]  ;;  %v2339_v58 = vpack.c.bf16 %v1147_v48, %v1139_v46  ;;  %v2357_v48 = vpack.c.bf16 %v1228_v41, %v1220_v40  ;;  %v1300_v41 = vld [vmem:[%s3504_s11 + $0xc88] sm:$0xff] }
 0x1cb   : > { %2324 = vmatpush1.bf16.msra.mxu0 %v2323_v55  ;;  %v3726_v52 = vcombine.high %v3718_v43, %v3718_v43  ;;  %v1412_v55 = vcombine.high %v898_v39, %v898_v39  ;;  %v2467_v47 = vpack.c.bf16 %v1149_v51, %v1141_v49  ;;  %v1213_v39 = vld [vmem:[%s3504_s11 + $0x9d0] sm:$0xff]  ;;  %v1219_v49 = vld [vmem:[%s3504_s11 + $0xa00] sm:$0xff]  ;;  %v1332_v4 = vld [vmem:[%s3504_s11 + $0xd88] sm:$0xff] }
 0x1cc   : > { %2326 = vmatprep.subr.bf16.mxu0 %v2325_v63  ;;  %v2469_v63 = vpack.c.bf16 %v1166_v57, %v1158_v56  ;;  %v2483_v46 = vpack.c.bf16 %v1213_v39, %v1205_v37  ;;  %v1221_v51 = vld [vmem:[%s3504_s11 + $0xa10] sm:$0xff]  ;;  %v1244_v56 = vld [vmem:[%s3504_s11 + $0xac8] sm:$0xff]  ;;  %v1238_v57 = vld [vmem:[%s3504_s11 + $0xa98] sm:$0xff] }
 0x1cd   : > { %2452 = vmatpush1.bf16.msra.mxu1 %v2451_v62  ;;  %1497 = vmatprep.mubr.f32.mxu0 %v3726_v52  ;;  %v1157_v62 = vld [vmem:[%s3504_s11 + $0x810] sm:$0xff]  ;;  %v1291_v37 = vld [vmem:[%s3504_s11 + $0xc40] sm:$0xff] }
 0x1ce   : > { %2454 = vmatprep.subr.bf16.mxu1 %v2453_v3  ;;  %1639 = vmatprep.mubr.f32.mxu1 %v3726_v52  ;;  %v3741_v3 = vrot.slane %v1412_v55, %v3580_v16  ;;  %v2471_v7 = vpack.c.bf16 %v1165_v0, %v1157_v62  ;;  %v1236_v55 = vld [vmem:[%s3504_s11 + $0xa88] sm:$0xff]  ;;  %v1243_v62 = vld [vmem:[%s3504_s11 + $0xac0] sm:$0xff]  ;;  %v1293_v40 = vld [vmem:[%s3504_s11 + $0xc50] sm:$0xff] }
 0x1cf   : > { %2328 = vmatpush1.bf16.msra.mxu0 %v2327_v11  ;;  %v1173_v11 = vld [vmem:[%s3504_s11 + $0x890] sm:$0xff]  ;;  %v2361_v60 = vpack.c.bf16 %v1244_v56, %v1236_v55  ;;  %v1316_v56 = vld [vmem:[%s3504_s11 + $0xd08] sm:$0xff] }
 0x1d0   : > { %2330 = vmatprep.subr.bf16.mxu0 %v2329_v17  ;;  %v3753_v17 = vcombine.high %v3741_v3, %v3741_v3  ;;  %v1309_v55 = vld [vmem:[%s3504_s11 + $0xcd0] sm:$0xff] }
 0x1d1   : > { %2456 = vmatpush1.bf16.msra.mxu1 %v2455_v15  ;;  %v1196_v15 = vld [vmem:[%s3504_s11 + $0x948] sm:$0xff] }
 0x1d2   : > { %2458 = vmatprep.subr.bf16.mxu1 %v2457_v21  ;;  %v2475_v21 = vpack.c.bf16 %v1181_v13, %v1173_v11  ;;  %v2349_v22 = vpack.c.bf16 %v1196_v15, %v1188_v14  ;;  %v1259_v11 = vld [vmem:[%s3504_s11 + $0xb40] sm:$0xff]  ;;  %v1261_v14 = vld [vmem:[%s3504_s11 + $0xb50] sm:$0xff]  ;;  %v1268_v15 = vld [vmem:[%s3504_s11 + $0xb88] sm:$0xff] }
 0x1d3   : > { %2332 = vmatpush1.bf16.msra.mxu0 %v2331_v28  ;;  %v1204_v28 = vld [vmem:[%s3504_s11 + $0x988] sm:$0xff]  ;;  %v2369_v23 = vpack.c.bf16 %v1276_v18, %v1268_v15  ;;  %v1341_v15 = vld [vmem:[%s3504_s11 + $0xdd0] sm:$0xff] }
 0x1d4   : > { %2334 = vmatprep.subr.bf16.mxu0 %v2333_v31  ;;  %v1214_v31 = vld [vmem:[%s3504_s11 + $0x9d8] sm:$0xff]  ;;  %v2353_v34 = vpack.c.bf16 %v1212_v29, %v1204_v28  ;;  %v1277_v28 = vld [vmem:[%s3504_s11 + $0xbd0] sm:$0xff]  ;;  %v1284_v29 = vld [vmem:[%s3504_s11 + $0xc08] sm:$0xff] }
 0x1d5   : > { %2460 = vmatpush1.bf16.msra.mxu1 %v2459_v30  ;;  %v1206_v30 = vld [vmem:[%s3504_s11 + $0x998] sm:$0xff]  ;;  %v1348_v18 = vld [vmem:[%s3504_s11 + $0xe08] sm:$0xff] }
 0x1d6   : > { %2462 = vmatprep.subr.bf16.mxu1 %v2461_v35  ;;  %v1203_v35 = vld [vmem:[%s3504_s11 + $0x980] sm:$0xff]  ;;  %v2481_v38 = vpack.c.bf16 %v1214_v31, %v1206_v30  ;;  %v1292_v30 = vld [vmem:[%s3504_s11 + $0xc48] sm:$0xff]  ;;  %v1286_v31 = vld [vmem:[%s3504_s11 + $0xc18] sm:$0xff] }
 0x1d7   : > { %2336 = vmatpush1.bf16.msra.mxu0 %v2335_v42  ;;  %v1222_v42 = vld [vmem:[%s3504_s11 + $0xa18] sm:$0xff] }
 0x1d8   : > { %2338 = vmatprep.subr.bf16.mxu0 %v2337_v45  ;;  %v2355_v45 = vpack.c.bf16 %v1211_v36, %v1203_v35  ;;  %v2373_v35 = vpack.c.bf16 %v1292_v30, %v1284_v29  ;;  %v1283_v36 = vld [vmem:[%s3504_s11 + $0xc00] sm:$0xff]  ;;  %v1357_v29 = vld [vmem:[%s3504_s11 + $0xe50] sm:$0xff]  ;;  %v1364_v30 = vld [vmem:[%s3504_s11 + $0xe88] sm:$0xff] }
 0x1d9   : > { %2464 = vmatpush1.bf16.msra.mxu1 %v2463_v44  ;;  %v1230_v44 = vld [vmem:[%s3504_s11 + $0xa58] sm:$0xff] }
 0x1da   : > { %2466 = vmatprep.subr.bf16.mxu1 %v2465_v50  ;;  %v1227_v50 = vld [vmem:[%s3504_s11 + $0xa40] sm:$0xff]  ;;  %v2485_v53 = vpack.c.bf16 %v1230_v44, %v1222_v42  ;;  %v1308_v42 = vld [vmem:[%s3504_s11 + $0xcc8] sm:$0xff]  ;;  %v1302_v44 = vld [vmem:[%s3504_s11 + $0xc98] sm:$0xff] }
 0x1db   : > { %2340 = vmatpush1.bf16.msra.mxu0 %v2339_v58  ;;  %v1246_v58 = vld [vmem:[%s3504_s11 + $0xad8] sm:$0xff] }
 0x1dc   : > { %2342 = vmatprep.subr.bf16.mxu0 %v2341_v59  ;;  %v2487_v59 = vpack.c.bf16 %v1229_v54, %v1221_v51  ;;  %v2489_v0 = vpack.c.bf16 %v1246_v58, %v1238_v57  ;;  %v1307_v51 = vld [vmem:[%s3504_s11 + $0xcc0] sm:$0xff]  ;;  %v1324_v57 = vld [vmem:[%s3504_s11 + $0xd48] sm:$0xff]  ;;  %v1318_v58 = vld [vmem:[%s3504_s11 + $0xd18] sm:$0xff] }
 0x1dd   : > { %2468 = vmatpush1.bf16.msra.mxu1 %v2467_v47  ;;  %v2359_v47 = vpack.c.bf16 %v1227_v50, %v1219_v49  ;;  %v2377_v49 = vpack.c.bf16 %v1308_v42, %v1300_v41  ;;  %v1299_v50 = vld [vmem:[%s3504_s11 + $0xc80] sm:$0xff]  ;;  %v1373_v41 = vld [vmem:[%s3504_s11 + $0xed0] sm:$0xff]  ;;  %v1380_v42 = vld [vmem:[%s3504_s11 + $0xf08] sm:$0xff] }
 0x1de   : > { %2470 = vmatprep.subr.bf16.mxu1 %v2469_v63  ;;  %1498 = vmatmul.mubr.f32.vlgmr.msra.gmra.mrb[0].mxu0 %v3718_v43  ;;  %v1237_v63 = vld [vmem:[%s3504_s11 + $0xa90] sm:$0xff] }
 0x1df   : > { %2344 = vmatpush1.bf16.msra.mxu0 %v2343_v6  ;;  %1568 = vmatprep.mubr.f32.mxu0 %v3753_v17  ;;  %v1262_v6 = vld [vmem:[%s3504_s11 + $0xb58] sm:$0xff] }
 0x1e0   : > { %1640 = vmatmul.mubr.f32.vlgmr.msra.gmra.mrb[0].mxu1 %v3718_v43  ;;  %2346 = vmatprep.subr.bf16.mxu0 %v2345_v8  ;;  %v2491_v8 = vpack.c.bf16 %v1245_v1, %v1237_v63  ;;  %v2493_v13 = vpack.c.bf16 %v1262_v6, %v1254_v5  ;;  %v1323_v63 = vld [vmem:[%s3504_s11 + $0xd40] sm:$0xff]  ;;  %v1340_v5 = vld [vmem:[%s3504_s11 + $0xdc8] sm:$0xff]  ;;  %v1334_v6 = vld [vmem:[%s3504_s11 + $0xd98] sm:$0xff] }
 0x1e1   : > { %2472 = vmatpush1.bf16.msra.mxu1 %v2471_v7  ;;  %1710 = vmatprep.mubr.f32.mxu1 %v3753_v17  ;;  %v2363_v7 = vpack.c.bf16 %v1243_v62, %v1235_v61  ;;  %v2381_v61 = vpack.c.bf16 %v1324_v57, %v1316_v56  ;;  %v1315_v62 = vld [vmem:[%s3504_s11 + $0xd00] sm:$0xff]  ;;  %v1389_v56 = vld [vmem:[%s3504_s11 + $0xf50] sm:$0xff]  ;;  %v1396_v57 = vld [vmem:[%s3504_s11 + $0xf88] sm:$0xff] }
 0x1e2   : > { %2474 = vmatprep.subr.bf16.mxu1 %v2473_v12  ;;  %v1253_v12 = vld [vmem:[%s3504_s11 + $0xb10] sm:$0xff] }
 0x1e3   : > { %2348 = vmatpush1.bf16.msra.mxu0 %v2347_v20  ;;  %v1278_v20 = vld [vmem:[%s3504_s11 + $0xbd8] sm:$0xff] }
 0x1e4   : > { %2350 = vmatprep.subr.bf16.mxu0 %v2349_v22  ;;  %v2495_v22 = vpack.c.bf16 %v1261_v14, %v1253_v12  ;;  %v2497_v27 = vpack.c.bf16 %v1278_v20, %v1270_v19  ;;  %v1339_v12 = vld [vmem:[%s3504_s11 + $0xdc0] sm:$0xff]  ;;  %v1356_v19 = vld [vmem:[%s3504_s11 + $0xe48] sm:$0xff]  ;;  %v1350_v20 = vld [vmem:[%s3504_s11 + $0xe18] sm:$0xff] }
 0x1e5   : > { %2476 = vmatpush1.bf16.msra.mxu1 %v2475_v21  ;;  %v2367_v21 = vpack.c.bf16 %v1259_v11, %v1251_v10  ;;  %v2385_v10 = vpack.c.bf16 %v1340_v5, %v1332_v4  ;;  %v1331_v11 = vld [vmem:[%s3504_s11 + $0xd80] sm:$0xff]  ;;  %v1405_v4 = vld [vmem:[%s3504_s11 + $0xfd0] sm:$0xff]  ;;  %v904_v5 = vld [vmem:[%s3504_s11 + $0x28] sm:$0xff] }
 0x1e6   : > { %2478 = vmatprep.subr.bf16.mxu1 %v2477_v26  ;;  %v1269_v26 = vld [vmem:[%s3504_s11 + $0xb90] sm:$0xff] }
 0x1e7   : > { %2352 = vmatpush1.bf16.msra.mxu0 %v2351_v32  ;;  %v1294_v32 = vld [vmem:[%s3504_s11 + $0xc58] sm:$0xff] }
 0x1e8   : > { %2354 = vmatprep.subr.bf16.mxu0 %v2353_v34  ;;  %v2499_v34 = vpack.c.bf16 %v1277_v28, %v1269_v26  ;;  %v2501_v39 = vpack.c.bf16 %v1294_v32, %v1286_v31  ;;  %v1355_v26 = vld [vmem:[%s3504_s11 + $0xe40] sm:$0xff]  ;;  %v1372_v31 = vld [vmem:[%s3504_s11 + $0xec8] sm:$0xff]  ;;  %v1366_v32 = vld [vmem:[%s3504_s11 + $0xe98] sm:$0xff] }
 0x1e9   : > { %2480 = vmatpush1.bf16.msra.mxu1 %v2479_v33  ;;  %v2371_v33 = vpack.c.bf16 %v1275_v25, %v1267_v24  ;;  %v2389_v24 = vpack.c.bf16 %v1356_v19, %v1348_v18  ;;  %v1347_v25 = vld [vmem:[%s3504_s11 + $0xe00] sm:$0xff]  ;;  %v913_v18 = vld [vmem:[%s3504_s11 + $0x70] sm:$0xff]  ;;  %v920_v19 = vld [vmem:[%s3504_s11 + $0xa8] sm:$0xff] }
 0x1ea   : > { %2482 = vmatprep.subr.bf16.mxu1 %v2481_v38  ;;  %v1285_v38 = vld [vmem:[%s3504_s11 + $0xc10] sm:$0xff] }
 0x1eb   : > { %2356 = vmatpush1.bf16.msra.mxu0 %v2355_v45  ;;  %v1310_v45 = vld [vmem:[%s3504_s11 + $0xcd8] sm:$0xff] }
 0x1ec   : > { %2358 = vmatprep.subr.bf16.mxu0 %v2357_v48  ;;  %v2503_v48 = vpack.c.bf16 %v1293_v40, %v1285_v38  ;;  %v2505_v54 = vpack.c.bf16 %v1310_v45, %v1302_v44  ;;  %v1371_v38 = vld [vmem:[%s3504_s11 + $0xec0] sm:$0xff]  ;;  %v1388_v44 = vld [vmem:[%s3504_s11 + $0xf48] sm:$0xff]  ;;  %v1382_v45 = vld [vmem:[%s3504_s11 + $0xf18] sm:$0xff] }
 0x1ed   : > { %2484 = vmatpush1.bf16.msra.mxu1 %v2483_v46  ;;  %v2375_v46 = vpack.c.bf16 %v1291_v37, %v1283_v36  ;;  %v2393_v36 = vpack.c.bf16 %v1372_v31, %v1364_v30  ;;  %v1363_v37 = vld [vmem:[%s3504_s11 + $0xe80] sm:$0xff]  ;;  %v929_v30 = vld [vmem:[%s3504_s11 + $0xf0] sm:$0xff]  ;;  %v936_v31 = vld [vmem:[%s3504_s11 + $0x128] sm:$0xff] }
 0x1ee   : > { %2486 = vmatprep.subr.bf16.mxu1 %v2485_v53  ;;  %v1301_v53 = vld [vmem:[%s3504_s11 + $0xc90] sm:$0xff] }
 0x1ef   : > { %2360 = vmatpush1.bf16.msra.mxu0 %v2359_v47  ;;  %v1326_v47 = vld [vmem:[%s3504_s11 + $0xd58] sm:$0xff] }
 0x1f0   : > { %2362 = vmatprep.subr.bf16.mxu0 %v2361_v60  ;;  %v2507_v60 = vpack.c.bf16 %v1309_v55, %v1301_v53  ;;  %v2509_v1 = vpack.c.bf16 %v1326_v47, %v1318_v58  ;;  %v1387_v53 = vld [vmem:[%s3504_s11 + $0xf40] sm:$0xff]  ;;  %v1404_v58 = vld [vmem:[%s3504_s11 + $0xfc8] sm:$0xff]  ;;  %v1398_v47 = vld [vmem:[%s3504_s11 + $0xf98] sm:$0xff] }
 0x1f1   : > { %2488 = vmatpush1.bf16.msra.mxu1 %v2487_v59  ;;  %v2379_v59 = vpack.c.bf16 %v1307_v51, %v1299_v50  ;;  %v2397_v50 = vpack.c.bf16 %v1388_v44, %v1380_v42  ;;  %v1379_v51 = vld [vmem:[%s3504_s11 + $0xf00] sm:$0xff]  ;;  %v945_v42 = vld [vmem:[%s3504_s11 + $0x170] sm:$0xff]  ;;  %v952_v44 = vld [vmem:[%s3504_s11 + $0x1a8] sm:$0xff] }
 0x1f2   : > { %2490 = vmatprep.subr.bf16.mxu1 %v2489_v0  ;;  %v1317_v0 = vld [vmem:[%s3504_s11 + $0xd10] sm:$0xff] }
 0x1f3   : > { %2364 = vmatpush1.bf16.msra.mxu0 %v2363_v7  ;;  %v1342_v7 = vld [vmem:[%s3504_s11 + $0xdd8] sm:$0xff] }
 0x1f4   : > { %2366 = vmatprep.subr.bf16.mxu0 %v2365_v9  ;;  %v2511_v9 = vpack.c.bf16 %v1325_v2, %v1317_v0  ;;  %v2513_v14 = vpack.c.bf16 %v1342_v7, %v1334_v6  ;;  %v1403_v0 = vld [vmem:[%s3504_s11 + $0xfc0] sm:$0xff]  ;;  %v912_v6 = vld [vmem:[%s3504_s11 + $0x68] sm:$0xff]  ;;  %v906_v7 = vld [vmem:[%s3504_s11 + $0x38] sm:$0xff] }
 0x1f5   : > { %2492 = vmatpush1.bf16.msra.mxu1 %v2491_v8  ;;  %v2383_v8 = vpack.c.bf16 %v1323_v63, %v1315_v62  ;;  %v2401_v62 = vpack.c.bf16 %v1404_v58, %v1396_v57  ;;  %v1395_v63 = vld [vmem:[%s3504_s11 + $0xf80] sm:$0xff]  ;;  %v961_v57 = vld [vmem:[%s3504_s11 + $0x1f0] sm:$0xff]  ;;  %v968_v58 = vld [vmem:[%s3504_s11 + $0x228] sm:$0xff] }
 0x1f6   : > { %2494 = vmatprep.subr.bf16.mxu1 %v2493_v13  ;;  %v1333_v13 = vld [vmem:[%s3504_s11 + $0xd90] sm:$0xff] }
 0x1f7   : > { %2368 = vmatpush1.bf16.msra.mxu0 %v2367_v21  ;;  %v1358_v21 = vld [vmem:[%s3504_s11 + $0xe58] sm:$0xff] }
 0x1f8   : > { %2370 = vmatprep.subr.bf16.mxu0 %v2369_v23  ;;  %v2515_v23 = vpack.c.bf16 %v1341_v15, %v1333_v13  ;;  %v2517_v28 = vpack.c.bf16 %v1358_v21, %v1350_v20  ;;  %v911_v13 = vld [vmem:[%s3504_s11 + $0x60] sm:$0xff]  ;;  %v928_v20 = vld [vmem:[%s3504_s11 + $0xe8] sm:$0xff]  ;;  %v922_v21 = vld [vmem:[%s3504_s11 + $0xb8] sm:$0xff] }
 0x1f9   : > { %2496 = vmatpush1.bf16.msra.mxu1 %v2495_v22  ;;  %v2387_v22 = vpack.c.bf16 %v1339_v12, %v1331_v11  ;;  %v2533_v11 = vpack.c.bf16 %v912_v6, %v904_v5  ;;  %v903_v12 = vld [vmem:[%s3504_s11 + $0x20] sm:$0xff]  ;;  %v984_v5 = vld [vmem:[%s3504_s11 + $0x2a8] sm:$0xff] }
 0x1fa   : > { %2498 = vmatprep.subr.bf16.mxu1 %v2497_v27  ;;  %v1349_v27 = vld [vmem:[%s3504_s11 + $0xe10] sm:$0xff]  ;;  %v992_v6 = vld [vmem:[%s3504_s11 + $0x2e8] sm:$0xff] }
 0x1fb   : > { %2372 = vmatpush1.bf16.msra.mxu0 %v2371_v33  ;;  %v1374_v33 = vld [vmem:[%s3504_s11 + $0xed8] sm:$0xff] }
 0x1fc   : > { %2374 = vmatprep.subr.bf16.mxu0 %v2373_v35  ;;  %v2519_v35 = vpack.c.bf16 %v1357_v29, %v1349_v27  ;;  %v2521_v40 = vpack.c.bf16 %v1374_v33, %v1366_v32  ;;  %v927_v27 = vld [vmem:[%s3504_s11 + $0xe0] sm:$0xff]  ;;  %v944_v32 = vld [vmem:[%s3504_s11 + $0x168] sm:$0xff]  ;;  %v938_v33 = vld [vmem:[%s3504_s11 + $0x138] sm:$0xff] }
 0x1fd   : > { %2500 = vmatpush1.bf16.msra.mxu1 %v2499_v34  ;;  %v2391_v34 = vpack.c.bf16 %v1355_v26, %v1347_v25  ;;  %v2537_v25 = vpack.c.bf16 %v928_v20, %v920_v19  ;;  %v919_v26 = vld [vmem:[%s3504_s11 + $0xa0] sm:$0xff]  ;;  %v1000_v19 = vld [vmem:[%s3504_s11 + $0x328] sm:$0xff] }
 0x1fe   : > { %2502 = vmatprep.subr.bf16.mxu1 %v2501_v39  ;;  %v1365_v39 = vld [vmem:[%s3504_s11 + $0xe90] sm:$0xff]  ;;  %v1008_v20 = vld [vmem:[%s3504_s11 + $0x368] sm:$0xff] }
 0x1ff   : > { %2376 = vmatpush1.bf16.msra.mxu0 %v2375_v46  ;;  %v1390_v46 = vld [vmem:[%s3504_s11 + $0xf58] sm:$0xff] }
 0x200   : > { %2378 = vmatprep.subr.bf16.mxu0 %v2377_v49  ;;  %v2523_v49 = vpack.c.bf16 %v1373_v41, %v1365_v39  ;;  %v2525_v55 = vpack.c.bf16 %v1390_v46, %v1382_v45  ;;  %v943_v39 = vld [vmem:[%s3504_s11 + $0x160] sm:$0xff]  ;;  %v960_v45 = vld [vmem:[%s3504_s11 + $0x1e8] sm:$0xff]  ;;  %v954_v46 = vld [vmem:[%s3504_s11 + $0x1b8] sm:$0xff] }
 0x201   : > { %2504 = vmatpush1.bf16.msra.mxu1 %v2503_v48  ;;  %v2395_v48 = vpack.c.bf16 %v1371_v38, %v1363_v37  ;;  %v2541_v37 = vpack.c.bf16 %v944_v32, %v936_v31  ;;  %v935_v38 = vld [vmem:[%s3504_s11 + $0x120] sm:$0xff]  ;;  %v1016_v31 = vld [vmem:[%s3504_s11 + $0x3a8] sm:$0xff] }
 0x202   : > { %2506 = vmatprep.subr.bf16.mxu1 %v2505_v54  ;;  %v1381_v54 = vld [vmem:[%s3504_s11 + $0xf10] sm:$0xff]  ;;  %v1024_v32 = vld [vmem:[%s3504_s11 + $0x3e8] sm:$0xff] }
 0x203   : > { %2380 = vmatpush1.bf16.msra.mxu0 %v2379_v59  ;;  %v1406_v59 = vld [vmem:[%s3504_s11 + $0xfd8] sm:$0xff] }
 0x204   : > { %2382 = vmatprep.subr.bf16.mxu0 %v2381_v61  ;;  %v2527_v61 = vpack.c.bf16 %v1389_v56, %v1381_v54  ;;  %v2529_v2 = vpack.c.bf16 %v1406_v59, %v1398_v47  ;;  %v959_v54 = vld [vmem:[%s3504_s11 + $0x1e0] sm:$0xff]  ;;  %v970_v47 = vld [vmem:[%s3504_s11 + $0x238] sm:$0xff] }
 0x205   : > { %2508 = vmatpush1.bf16.msra.mxu1 %v2507_v60  ;;  %v2399_v60 = vpack.c.bf16 %v1387_v53, %v1379_v51  ;;  %v2545_v51 = vpack.c.bf16 %v960_v45, %v952_v44  ;;  %v951_v53 = vld [vmem:[%s3504_s11 + $0x1a0] sm:$0xff]  ;;  %v978_v59 = vld [vmem:[%s3504_s11 + $0x278] sm:$0xff]  ;;  %v1032_v44 = vld [vmem:[%s3504_s11 + $0x428] sm:$0xff] }
 0x206   : > { %2510 = vmatprep.subr.bf16.mxu1 %v2509_v1  ;;  %v1397_v1 = vld [vmem:[%s3504_s11 + $0xf90] sm:$0xff]  ;;  %v1040_v45 = vld [vmem:[%s3504_s11 + $0x468] sm:$0xff] }
 0x207   : > { %2384 = vmatpush1.bf16.msra.mxu0 %v2383_v8  ;;  %v914_v8 = vld [vmem:[%s3504_s11 + $0x78] sm:$0xff] }
 0x208   : > { %2386 = vmatprep.subr.bf16.mxu0 %v2385_v10  ;;  %v2531_v10 = vpack.c.bf16 %v1405_v4, %v1397_v1  ;;  %v2661_v15 = vpack.c.bf16 %v914_v8, %v906_v7  ;;  %v969_v1 = vld [vmem:[%s3504_s11 + $0x230] sm:$0xff]  ;;  %v986_v7 = vld [vmem:[%s3504_s11 + $0x2b8] sm:$0xff] }
 0x209   : > { %2512 = vmatpush1.bf16.msra.mxu1 %v2511_v9  ;;  %v2403_v9 = vpack.c.bf16 %v1403_v0, %v1395_v63  ;;  %v967_v63 = vld [vmem:[%s3504_s11 + $0x220] sm:$0xff]  ;;  %v977_v4 = vld [vmem:[%s3504_s11 + $0x270] sm:$0xff]  ;;  %v994_v8 = vld [vmem:[%s3504_s11 + $0x2f8] sm:$0xff] }
 0x20a   : > { %2514 = vmatprep.subr.bf16.mxu1 %v2513_v14  ;;  %v905_v14 = vld [vmem:[%s3504_s11 + $0x30] sm:$0xff]  ;;  %v975_v0 = vld [vmem:[%s3504_s11 + $0x260] sm:$0xff] }
 0x20b   : > { %2388 = vmatpush1.bf16.msra.mxu0 %v2387_v22  ;;  %v930_v22 = vld [vmem:[%s3504_s11 + $0xf8] sm:$0xff] }
 0x20c   : > { %2390 = vmatprep.subr.bf16.mxu0 %v2389_v24  ;;  %v2663_v24 = vpack.c.bf16 %v913_v18, %v905_v14  ;;  %v2665_v29 = vpack.c.bf16 %v930_v22, %v922_v21  ;;  %v985_v14 = vld [vmem:[%s3504_s11 + $0x2b0] sm:$0xff]  ;;  %v1002_v21 = vld [vmem:[%s3504_s11 + $0x338] sm:$0xff] }
 0x20d   : > { %2516 = vmatpush1.bf16.msra.mxu1 %v2515_v23  ;;  %v2535_v23 = vpack.c.bf16 %v911_v13, %v903_v12  ;;  %v983_v12 = vld [vmem:[%s3504_s11 + $0x2a0] sm:$0xff]  ;;  %v993_v18 = vld [vmem:[%s3504_s11 + $0x2f0] sm:$0xff]  ;;  %v1010_v22 = vld [vmem:[%s3504_s11 + $0x378] sm:$0xff] }
 0x20e   : > { %2518 = vmatprep.subr.bf16.mxu1 %v2517_v28  ;;  %v921_v28 = vld [vmem:[%s3504_s11 + $0xb0] sm:$0xff]  ;;  %v991_v13 = vld [vmem:[%s3504_s11 + $0x2e0] sm:$0xff] }
 0x20f   : > { %2392 = vmatpush1.bf16.msra.mxu0 %v2391_v34  ;;  %v946_v34 = vld [vmem:[%s3504_s11 + $0x178] sm:$0xff] }
 0x210   : > { %2394 = vmatprep.subr.bf16.mxu0 %v2393_v36  ;;  %v2667_v36 = vpack.c.bf16 %v929_v30, %v921_v28  ;;  %v2669_v41 = vpack.c.bf16 %v946_v34, %v938_v33  ;;  %v1001_v28 = vld [vmem:[%s3504_s11 + $0x330] sm:$0xff]  ;;  %v1018_v33 = vld [vmem:[%s3504_s11 + $0x3b8] sm:$0xff] }
 0x211   : > { %2520 = vmatpush1.bf16.msra.mxu1 %v2519_v35  ;;  %v2539_v35 = vpack.c.bf16 %v927_v27, %v919_v26  ;;  %v999_v26 = vld [vmem:[%s3504_s11 + $0x320] sm:$0xff]  ;;  %v1009_v30 = vld [vmem:[%s3504_s11 + $0x370] sm:$0xff]  ;;  %v1026_v34 = vld [vmem:[%s3504_s11 + $0x3f8] sm:$0xff] }
 0x212   : > { %2522 = vmatprep.subr.bf16.mxu1 %v2521_v40  ;;  %v937_v40 = vld [vmem:[%s3504_s11 + $0x130] sm:$0xff]  ;;  %v1007_v27 = vld [vmem:[%s3504_s11 + $0x360] sm:$0xff] }
 0x213   : > { %2396 = vmatpush1.bf16.msra.mxu0 %v2395_v48  ;;  %v962_v48 = vld [vmem:[%s3504_s11 + $0x1f8] sm:$0xff] }
 0x214   : > { %2398 = vmatprep.subr.bf16.mxu0 %v2397_v50  ;;  %v2671_v50 = vpack.c.bf16 %v945_v42, %v937_v40  ;;  %v2673_v56 = vpack.c.bf16 %v962_v48, %v954_v46  ;;  %v1017_v40 = vld [vmem:[%s3504_s11 + $0x3b0] sm:$0xff]  ;;  %v1034_v46 = vld [vmem:[%s3504_s11 + $0x438] sm:$0xff] }
 0x215   : > { %2524 = vmatpush1.bf16.msra.mxu1 %v2523_v49  ;;  %v2543_v49 = vpack.c.bf16 %v943_v39, %v935_v38  ;;  %v1015_v38 = vld [vmem:[%s3504_s11 + $0x3a0] sm:$0xff]  ;;  %v1025_v42 = vld [vmem:[%s3504_s11 + $0x3f0] sm:$0xff]  ;;  %v1042_v48 = vld [vmem:[%s3504_s11 + $0x478] sm:$0xff] }
 0x216   : > { %2526 = vmatprep.subr.bf16.mxu1 %v2525_v55  ;;  %v953_v55 = vld [vmem:[%s3504_s11 + $0x1b0] sm:$0xff]  ;;  %v1023_v39 = vld [vmem:[%s3504_s11 + $0x3e0] sm:$0xff] }
 0x217   : > { %2400 = vmatpush1.bf16.msra.mxu0 %v2399_v60  ;;  %v2547_v60 = vpack.c.bf16 %v959_v54, %v951_v53  ;;  %v1031_v53 = vld [vmem:[%s3504_s11 + $0x420] sm:$0xff] }
 0x218   : > { %2402 = vmatprep.subr.bf16.mxu0 %v2401_v62  ;;  %v1039_v54 = vld [vmem:[%s3504_s11 + $0x460] sm:$0xff] }
 0x219   : > { %2528 = vmatpush1.bf16.msra.mxu1 %v2527_v61  ;;  %v2675_v61 = vpack.c.bf16 %v961_v57, %v953_v55  ;;  %v1033_v55 = vld [vmem:[%s3504_s11 + $0x430] sm:$0xff] }
 0x21a   : > { %2530 = vmatprep.subr.bf16.mxu1 %v2529_v2  ;;  %v2677_v2 = vpack.c.bf16 %v978_v59, %v970_v47  ;;  %v1041_v57 = vld [vmem:[%s3504_s11 + $0x470] sm:$0xff]  ;;  %v1050_v47 = vld [vmem:[%s3504_s11 + $0x4b8] sm:$0xff] }
 0x21b   : > { %2404 = vmatpush1.bf16.msra.mxu0 %v2403_v9  ;;  %v2551_v9 = vpack.c.bf16 %v975_v0, %v967_v63  ;;  %v1058_v59 = vld [vmem:[%s3504_s11 + $0x4f8] sm:$0xff]  ;;  %v1047_v63 = vld [vmem:[%s3504_s11 + $0x4a0] sm:$0xff] }
 0x21c   : > { %2534 = vmatprep.subr.bf16.mxu0 %v2533_v11  ;;  %v2553_v11 = vpack.c.bf16 %v992_v6, %v984_v5  ;;  %v1055_v0 = vld [vmem:[%s3504_s11 + $0x4e0] sm:$0xff]  ;;  %v1064_v5 = vld [vmem:[%s3504_s11 + $0x528] sm:$0xff] }
 0x21d   : > { %2532 = vmatpush1.bf16.msra.mxu1 %v2531_v10  ;;  %v2679_v10 = vpack.c.bf16 %v977_v4, %v969_v1  ;;  %v1049_v1 = vld [vmem:[%s3504_s11 + $0x4b0] sm:$0xff]  ;;  %v1072_v6 = vld [vmem:[%s3504_s11 + $0x568] sm:$0xff] }
 0x21e   : > { %2662 = vmatprep.subr.bf16.mxu1 %v2661_v15  ;;  %1569 = vmatmul.mubr.f32.vlgmr.msra.gmra.mrb[0].mxu0 %v3741_v3  ;;  %v2681_v15 = vpack.c.bf16 %v994_v8, %v986_v7  ;;  %v1057_v4 = vld [vmem:[%s3504_s11 + $0x4f0] sm:$0xff]  ;;  %v1066_v7 = vld [vmem:[%s3504_s11 + $0x538] sm:$0xff] }
 0x21f   : > { %2536 = vmatpush1.bf16.msra.mxu0 %v2535_v23  ;;  %1781 = vmatprep.mubr.f32.mxu0 %v3726_v52  ;;  %v2555_v23 = vpack.c.bf16 %v991_v13, %v983_v12  ;;  %v1074_v8 = vld [vmem:[%s3504_s11 + $0x578] sm:$0xff]  ;;  %v1063_v12 = vld [vmem:[%s3504_s11 + $0x520] sm:$0xff] }
 0x220   : > { %1711 = vmatmul.mubr.f32.vlgmr.msra.gmra.mrb[0].mxu1 %v3741_v3  ;;  %2538 = vmatprep.subr.bf16.mxu0 %v2537_v25  ;;  %v2557_v25 = vpack.c.bf16 %v1008_v20, %v1000_v19  ;;  %v1071_v13 = vld [vmem:[%s3504_s11 + $0x560] sm:$0xff]  ;;  %v1080_v19 = vld [vmem:[%s3504_s11 + $0x5a8] sm:$0xff] }
 0x221   : > { %2664 = vmatpush1.bf16.msra.mxu1 %v2663_v24  ;;  %1923 = vmatprep.mubr.f32.mxu1 %v3726_v52  ;;  %v976_v52 = vld [vmem:[%s3504_s11 + $0x268] sm:$0xff]  ;;  %v2683_v24 = vpack.c.bf16 %v993_v18, %v985_v14  ;;  %v1065_v14 = vld [vmem:[%s3504_s11 + $0x530] sm:$0xff] }
 0x222   : > { %2666 = vmatprep.subr.bf16.mxu1 %v2665_v29  ;;  %v2549_v62 = vpack.c.bf16 %v976_v52, %v968_v58  ;;  %v2685_v29 = vpack.c.bf16 %v1010_v22, %v1002_v21  ;;  %v1048_v58 = vld [vmem:[%s3504_s11 + $0x4a8] sm:$0xff]  ;;  %v1073_v18 = vld [vmem:[%s3504_s11 + $0x570] sm:$0xff]  ;;  %v1082_v21 = vld [vmem:[%s3504_s11 + $0x5b8] sm:$0xff] }
 0x223   : > { %2540 = vmatpush1.bf16.msra.mxu0 %v2539_v35  ;;  %v2559_v35 = vpack.c.bf16 %v1007_v27, %v999_v26  ;;  %v1056_v52 = vld [vmem:[%s3504_s11 + $0x4e8] sm:$0xff]  ;;  %v1090_v22 = vld [vmem:[%s3504_s11 + $0x5f8] sm:$0xff]  ;;  %v1079_v26 = vld [vmem:[%s3504_s11 + $0x5a0] sm:$0xff] }
 0x224   : > { %2542 = vmatprep.subr.bf16.mxu0 %v2541_v37  ;;  %v2561_v37 = vpack.c.bf16 %v1024_v32, %v1016_v31  ;;  %v1088_v20 = vld [vmem:[%s3504_s11 + $0x5e8] sm:$0xff]  ;;  %v1087_v27 = vld [vmem:[%s3504_s11 + $0x5e0] sm:$0xff] }
 0x225   : > { %2668 = vmatpush1.bf16.msra.mxu1 %v2667_v36  ;;  %v2687_v36 = vpack.c.bf16 %v1009_v30, %v1001_v28  ;;  %v1081_v28 = vld [vmem:[%s3504_s11 + $0x5b0] sm:$0xff]  ;;  %v1096_v31 = vld [vmem:[%s3504_s11 + $0x628] sm:$0xff] }
 0x226   : > { %2670 = vmatprep.subr.bf16.mxu1 %v2669_v41  ;;  %v2689_v41 = vpack.c.bf16 %v1026_v34, %v1018_v33  ;;  %v1089_v30 = vld [vmem:[%s3504_s11 + $0x5f0] sm:$0xff]  ;;  %v1104_v32 = vld [vmem:[%s3504_s11 + $0x668] sm:$0xff]  ;;  %v1098_v33 = vld [vmem:[%s3504_s11 + $0x638] sm:$0xff] }
 0x227   : > { %2544 = vmatpush1.bf16.msra.mxu0 %v2543_v49  ;;  %v2563_v49 = vpack.c.bf16 %v1023_v39, %v1015_v38  ;;  %v1106_v34 = vld [vmem:[%s3504_s11 + $0x678] sm:$0xff]  ;;  %v1095_v38 = vld [vmem:[%s3504_s11 + $0x620] sm:$0xff] }
 0x228   : > { %2546 = vmatprep.subr.bf16.mxu0 %v2545_v51  ;;  %v2565_v51 = vpack.c.bf16 %v1040_v45, %v1032_v44  ;;  %v1103_v39 = vld [vmem:[%s3504_s11 + $0x660] sm:$0xff]  ;;  %v1112_v44 = vld [vmem:[%s3504_s11 + $0x6a8] sm:$0xff] }
 0x229   : > { %2672 = vmatpush1.bf16.msra.mxu1 %v2671_v50  ;;  %v2691_v50 = vpack.c.bf16 %v1025_v42, %v1017_v40  ;;  %v1097_v40 = vld [vmem:[%s3504_s11 + $0x630] sm:$0xff]  ;;  %v1120_v45 = vld [vmem:[%s3504_s11 + $0x6e8] sm:$0xff] }
 0x22a   : > { %2674 = vmatprep.subr.bf16.mxu1 %v2673_v56  ;;  %v2693_v56 = vpack.c.bf16 %v1042_v48, %v1034_v46  ;;  %v1105_v42 = vld [vmem:[%s3504_s11 + $0x670] sm:$0xff]  ;;  %v1114_v46 = vld [vmem:[%s3504_s11 + $0x6b8] sm:$0xff] }
 0x22b   : > { %2548 = vmatpush1.bf16.msra.mxu0 %v2547_v60  ;;  %v2567_v60 = vpack.c.bf16 %v1039_v54, %v1031_v53  ;;  %v1122_v48 = vld [vmem:[%s3504_s11 + $0x6f8] sm:$0xff]  ;;  %v1111_v53 = vld [vmem:[%s3504_s11 + $0x6a0] sm:$0xff] }
 0x22c   : > { %2550 = vmatprep.subr.bf16.mxu0 %v2549_v62  ;;  %v2569_v62 = vpack.c.bf16 %v1056_v52, %v1048_v58  ;;  %v1119_v54 = vld [vmem:[%s3504_s11 + $0x6e0] sm:$0xff]  ;;  %v1128_v58 = vld [vmem:[%s3504_s11 + $0x728] sm:$0xff] }
 0x22d   : > { %2676 = vmatpush1.bf16.msra.mxu1 %v2675_v61  ;;  %v2695_v61 = vpack.c.bf16 %v1041_v57, %v1033_v55  ;;  %v1113_v55 = vld [vmem:[%s3504_s11 + $0x6b0] sm:$0xff]  ;;  %v1136_v52 = vld [vmem:[%s3504_s11 + $0x768] sm:$0xff] }
 0x22e   : > { %2678 = vmatprep.subr.bf16.mxu1 %v2677_v2  ;;  %v2697_v2 = vpack.c.bf16 %v1058_v59, %v1050_v47  ;;  %v1121_v57 = vld [vmem:[%s3504_s11 + $0x6f0] sm:$0xff]  ;;  %v1130_v47 = vld [vmem:[%s3504_s11 + $0x738] sm:$0xff] }
 0x22f   : > { %2552 = vmatpush1.bf16.msra.mxu0 %v2551_v9  ;;  %v2571_v9 = vpack.c.bf16 %v1055_v0, %v1047_v63  ;;  %v1138_v59 = vld [vmem:[%s3504_s11 + $0x778] sm:$0xff]  ;;  %v1127_v63 = vld [vmem:[%s3504_s11 + $0x720] sm:$0xff] }
 0x230   : > { %2554 = vmatprep.subr.bf16.mxu0 %v2553_v11  ;;  %v2573_v11 = vpack.c.bf16 %v1072_v6, %v1064_v5  ;;  %v1135_v0 = vld [vmem:[%s3504_s11 + $0x760] sm:$0xff]  ;;  %v1144_v5 = vld [vmem:[%s3504_s11 + $0x7a8] sm:$0xff] }
 0x231   : > { %2680 = vmatpush1.bf16.msra.mxu1 %v2679_v10  ;;  %v2699_v10 = vpack.c.bf16 %v1057_v4, %v1049_v1  ;;  %v1129_v1 = vld [vmem:[%s3504_s11 + $0x730] sm:$0xff]  ;;  %v1152_v6 = vld [vmem:[%s3504_s11 + $0x7e8] sm:$0xff] }
 0x232   : > { %2682 = vmatprep.subr.bf16.mxu1 %v2681_v15  ;;  %v2701_v15 = vpack.c.bf16 %v1074_v8, %v1066_v7  ;;  %v1137_v4 = vld [vmem:[%s3504_s11 + $0x770] sm:$0xff]  ;;  %v1146_v7 = vld [vmem:[%s3504_s11 + $0x7b8] sm:$0xff] }
 0x233   : > { %2556 = vmatpush1.bf16.msra.mxu0 %v2555_v23  ;;  %v2575_v23 = vpack.c.bf16 %v1071_v13, %v1063_v12  ;;  %v1154_v8 = vld [vmem:[%s3504_s11 + $0x7f8] sm:$0xff]  ;;  %v1143_v12 = vld [vmem:[%s3504_s11 + $0x7a0] sm:$0xff] }
 0x234   : > { %2558 = vmatprep.subr.bf16.mxu0 %v2557_v25  ;;  %v2577_v25 = vpack.c.bf16 %v1088_v20, %v1080_v19  ;;  %v1151_v13 = vld [vmem:[%s3504_s11 + $0x7e0] sm:$0xff]  ;;  %v1160_v19 = vld [vmem:[%s3504_s11 + $0x828] sm:$0xff] }
 0x235   : > { %2684 = vmatpush1.bf16.msra.mxu1 %v2683_v24  ;;  %v2703_v24 = vpack.c.bf16 %v1073_v18, %v1065_v14  ;;  %v1145_v14 = vld [vmem:[%s3504_s11 + $0x7b0] sm:$0xff]  ;;  %v1168_v20 = vld [vmem:[%s3504_s11 + $0x868] sm:$0xff] }
 0x236   : > { %2686 = vmatprep.subr.bf16.mxu1 %v2685_v29  ;;  %v2705_v29 = vpack.c.bf16 %v1090_v22, %v1082_v21  ;;  %v1153_v18 = vld [vmem:[%s3504_s11 + $0x7f0] sm:$0xff]  ;;  %v1162_v21 = vld [vmem:[%s3504_s11 + $0x838] sm:$0xff] }
 0x237   : > { %2560 = vmatpush1.bf16.msra.mxu0 %v2559_v35  ;;  %v2579_v35 = vpack.c.bf16 %v1087_v27, %v1079_v26  ;;  %v1170_v22 = vld [vmem:[%s3504_s11 + $0x878] sm:$0xff]  ;;  %v1159_v26 = vld [vmem:[%s3504_s11 + $0x820] sm:$0xff] }
 0x238   : > { %2562 = vmatprep.subr.bf16.mxu0 %v2561_v37  ;;  %v2581_v37 = vpack.c.bf16 %v1104_v32, %v1096_v31  ;;  %v1167_v27 = vld [vmem:[%s3504_s11 + $0x860] sm:$0xff]  ;;  %v1176_v31 = vld [vmem:[%s3504_s11 + $0x8a8] sm:$0xff] }
 0x239   : > { %2688 = vmatpush1.bf16.msra.mxu1 %v2687_v36  ;;  %v2707_v36 = vpack.c.bf16 %v1089_v30, %v1081_v28  ;;  %v1161_v28 = vld [vmem:[%s3504_s11 + $0x830] sm:$0xff]  ;;  %v1184_v32 = vld [vmem:[%s3504_s11 + $0x8e8] sm:$0xff] }
 0x23a   : > { %2690 = vmatprep.subr.bf16.mxu1 %v2689_v41  ;;  %v2709_v41 = vpack.c.bf16 %v1106_v34, %v1098_v33  ;;  %v1169_v30 = vld [vmem:[%s3504_s11 + $0x870] sm:$0xff]  ;;  %v1178_v33 = vld [vmem:[%s3504_s11 + $0x8b8] sm:$0xff] }
 0x23b   : > { %2564 = vmatpush1.bf16.msra.mxu0 %v2563_v49  ;;  %v2583_v49 = vpack.c.bf16 %v1103_v39, %v1095_v38  ;;  %v1186_v34 = vld [vmem:[%s3504_s11 + $0x8f8] sm:$0xff]  ;;  %v1175_v38 = vld [vmem:[%s3504_s11 + $0x8a0] sm:$0xff] }
 0x23c   : > { %2566 = vmatprep.subr.bf16.mxu0 %v2565_v51  ;;  %v2585_v51 = vpack.c.bf16 %v1120_v45, %v1112_v44  ;;  %v1183_v39 = vld [vmem:[%s3504_s11 + $0x8e0] sm:$0xff]  ;;  %v1192_v44 = vld [vmem:[%s3504_s11 + $0x928] sm:$0xff] }
 0x23d   : > { %2692 = vmatpush1.bf16.msra.mxu1 %v2691_v50  ;;  %v2711_v50 = vpack.c.bf16 %v1105_v42, %v1097_v40  ;;  %v1177_v40 = vld [vmem:[%s3504_s11 + $0x8b0] sm:$0xff]  ;;  %v1200_v45 = vld [vmem:[%s3504_s11 + $0x968] sm:$0xff] }
 0x23e   : > { %2694 = vmatprep.subr.bf16.mxu1 %v2693_v56  ;;  %v2713_v56 = vpack.c.bf16 %v1122_v48, %v1114_v46  ;;  %v1185_v42 = vld [vmem:[%s3504_s11 + $0x8f0] sm:$0xff]  ;;  %v1194_v46 = vld [vmem:[%s3504_s11 + $0x938] sm:$0xff] }
 0x23f   : > { %2568 = vmatpush1.bf16.msra.mxu0 %v2567_v60  ;;  %v2587_v60 = vpack.c.bf16 %v1119_v54, %v1111_v53  ;;  %v1202_v48 = vld [vmem:[%s3504_s11 + $0x978] sm:$0xff]  ;;  %v1191_v53 = vld [vmem:[%s3504_s11 + $0x920] sm:$0xff] }
 0x240   : > { %2570 = vmatprep.subr.bf16.mxu0 %v2569_v62  ;;  %v2589_v62 = vpack.c.bf16 %v1136_v52, %v1128_v58  ;;  %v1199_v54 = vld [vmem:[%s3504_s11 + $0x960] sm:$0xff]  ;;  %v1208_v58 = vld [vmem:[%s3504_s11 + $0x9a8] sm:$0xff] }
 0x241   : > { %2696 = vmatpush1.bf16.msra.mxu1 %v2695_v61  ;;  %v2715_v61 = vpack.c.bf16 %v1121_v57, %v1113_v55  ;;  %v1193_v55 = vld [vmem:[%s3504_s11 + $0x930] sm:$0xff]  ;;  %v1216_v52 = vld [vmem:[%s3504_s11 + $0x9e8] sm:$0xff] }
 0x242   : > { %2698 = vmatprep.subr.bf16.mxu1 %v2697_v2  ;;  %v2717_v2 = vpack.c.bf16 %v1138_v59, %v1130_v47  ;;  %v1201_v57 = vld [vmem:[%s3504_s11 + $0x970] sm:$0xff]  ;;  %v1218_v47 = vld [vmem:[%s3504_s11 + $0x9f8] sm:$0xff]  ;;  %v2607_v59 = vpack.c.bf16 %v1199_v54, %v1191_v53 }
 0x243   : > { %2572 = vmatpush1.bf16.msra.mxu0 %v2571_v9  ;;  %v2591_v9 = vpack.c.bf16 %v1135_v0, %v1127_v63  ;;  %v1215_v63 = vld [vmem:[%s3504_s11 + $0x9e0] sm:$0xff]  ;;  %v1209_v0 = vld [vmem:[%s3504_s11 + $0x9b0] sm:$0xff] }
 0x244   : > { %2574 = vmatprep.subr.bf16.mxu0 %v2573_v11  ;;  %v2593_v11 = vpack.c.bf16 %v1152_v6, %v1144_v5  ;;  %v1226_v5 = vld [vmem:[%s3504_s11 + $0xa38] sm:$0xff]  ;;  %v1273_v53 = vld [vmem:[%s3504_s11 + $0xbb0] sm:$0xff] }
 0x245   : > { %2700 = vmatpush1.bf16.msra.mxu1 %v2699_v10  ;;  %v2719_v10 = vpack.c.bf16 %v1137_v4, %v1129_v1  ;;  %v1224_v4 = vld [vmem:[%s3504_s11 + $0xa28] sm:$0xff]  ;;  %v1234_v6 = vld [vmem:[%s3504_s11 + $0xa78] sm:$0xff] }
 0x246   : > { %2702 = vmatprep.subr.bf16.mxu1 %v2701_v15  ;;  %v2721_v15 = vpack.c.bf16 %v1154_v8, %v1146_v7 }
 0x247   : > { %2576 = vmatpush1.bf16.msra.mxu0 %v2575_v23  ;;  %v2595_v23 = vpack.c.bf16 %v1151_v13, %v1143_v12  ;;  %v1225_v12 = vld [vmem:[%s3504_s11 + $0xa30] sm:$0xff]  ;;  %v2741_v13 = vpack.c.bf16 %v1234_v6, %v1226_v5 }
 0x248   : > { %2578 = vmatprep.subr.bf16.mxu0 %v2577_v25  ;;  %v2597_v25 = vpack.c.bf16 %v1168_v20, %v1160_v19  ;;  %v1242_v19 = vld [vmem:[%s3504_s11 + $0xab8] sm:$0xff] }
 0x249   : > { %2704 = vmatpush1.bf16.msra.mxu1 %v2703_v24  ;;  %v2723_v24 = vpack.c.bf16 %v1153_v18, %v1145_v14  ;;  %v1233_v14 = vld [vmem:[%s3504_s11 + $0xa70] sm:$0xff]  ;;  %v1248_v18 = vld [vmem:[%s3504_s11 + $0xae8] sm:$0xff]  ;;  %v1250_v20 = vld [vmem:[%s3504_s11 + $0xaf8] sm:$0xff] }
 0x24a   : > { %2706 = vmatprep.subr.bf16.mxu1 %v2705_v29  ;;  %v2725_v29 = vpack.c.bf16 %v1170_v22, %v1162_v21  ;;  %v2743_v22 = vpack.c.bf16 %v1233_v14, %v1225_v12  ;;  %v1313_v12 = vld [vmem:[%s3504_s11 + $0xcf0] sm:$0xff]  ;;  %v1328_v14 = vld [vmem:[%s3504_s11 + $0xd68] sm:$0xff] }
 0x24b   : > { %2580 = vmatpush1.bf16.msra.mxu0 %v2579_v35  ;;  %v2599_v35 = vpack.c.bf16 %v1167_v27, %v1159_v26  ;;  %v1241_v26 = vld [vmem:[%s3504_s11 + $0xab0] sm:$0xff]  ;;  %v2745_v27 = vpack.c.bf16 %v1250_v20, %v1242_v19 }
 0x24c   : > { %2582 = vmatprep.subr.bf16.mxu0 %v2581_v37  ;;  %v2601_v37 = vpack.c.bf16 %v1184_v32, %v1176_v31  ;;  %v1258_v31 = vld [vmem:[%s3504_s11 + $0xb38] sm:$0xff] }
 0x24d   : > { %2708 = vmatpush1.bf16.msra.mxu1 %v2707_v36  ;;  %v2727_v36 = vpack.c.bf16 %v1169_v30, %v1161_v28  ;;  %v1249_v28 = vld [vmem:[%s3504_s11 + $0xaf0] sm:$0xff]  ;;  %v1264_v30 = vld [vmem:[%s3504_s11 + $0xb68] sm:$0xff]  ;;  %v1266_v32 = vld [vmem:[%s3504_s11 + $0xb78] sm:$0xff] }
 0x24e   : > { %2710 = vmatprep.subr.bf16.mxu1 %v2709_v41  ;;  %v2729_v41 = vpack.c.bf16 %v1186_v34, %v1178_v33  ;;  %v2747_v34 = vpack.c.bf16 %v1249_v28, %v1241_v26  ;;  %v1329_v26 = vld [vmem:[%s3504_s11 + $0xd70] sm:$0xff]  ;;  %v1344_v28 = vld [vmem:[%s3504_s11 + $0xde8] sm:$0xff] }
 0x24f   : > { %2584 = vmatpush1.bf16.msra.mxu0 %v2583_v49  ;;  %v2603_v49 = vpack.c.bf16 %v1183_v39, %v1175_v38  ;;  %v1257_v38 = vld [vmem:[%s3504_s11 + $0xb30] sm:$0xff]  ;;  %v2749_v39 = vpack.c.bf16 %v1266_v32, %v1258_v31 }
 0x250   : > { %2586 = vmatprep.subr.bf16.mxu0 %v2585_v51  ;;  %v2605_v51 = vpack.c.bf16 %v1200_v45, %v1192_v44  ;;  %v1274_v44 = vld [vmem:[%s3504_s11 + $0xbb8] sm:$0xff] }
 0x251   : > { %2712 = vmatpush1.bf16.msra.mxu1 %v2711_v50  ;;  %v2731_v50 = vpack.c.bf16 %v1185_v42, %v1177_v40  ;;  %v1265_v40 = vld [vmem:[%s3504_s11 + $0xb70] sm:$0xff]  ;;  %v1280_v42 = vld [vmem:[%s3504_s11 + $0xbe8] sm:$0xff]  ;;  %v1282_v45 = vld [vmem:[%s3504_s11 + $0xbf8] sm:$0xff] }
 0x252   : > { %2714 = vmatprep.subr.bf16.mxu1 %v2713_v56  ;;  %v2733_v56 = vpack.c.bf16 %v1202_v48, %v1194_v46  ;;  %v2751_v48 = vpack.c.bf16 %v1265_v40, %v1257_v38  ;;  %v2753_v54 = vpack.c.bf16 %v1282_v45, %v1274_v44  ;;  %v1345_v38 = vld [vmem:[%s3504_s11 + $0xdf0] sm:$0xff]  ;;  %v1360_v40 = vld [vmem:[%s3504_s11 + $0xe68] sm:$0xff] }
 0x253   : > { %2588 = vmatpush1.bf16.msra.mxu0 %v2587_v60  ;;  %v2735_v60 = vpack.c.bf16 %v1201_v57, %v1193_v55  ;;  %v1281_v55 = vld [vmem:[%s3504_s11 + $0xbf0] sm:$0xff]  ;;  %v1296_v57 = vld [vmem:[%s3504_s11 + $0xc68] sm:$0xff] }
 0x254   : > { %2590 = vmatprep.subr.bf16.mxu0 %v2589_v62  ;;  %v1207_v62 = vld [vmem:[%s3504_s11 + $0x9a0] sm:$0xff] }
 0x255   : > { %2716 = vmatpush1.bf16.msra.mxu1 %v2715_v61  ;;  %v2609_v61 = vpack.c.bf16 %v1216_v52, %v1208_v58  ;;  %v2611_v7 = vpack.c.bf16 %v1215_v63, %v1207_v62  ;;  %v1290_v58 = vld [vmem:[%s3504_s11 + $0xc38] sm:$0xff]  ;;  %v1289_v62 = vld [vmem:[%s3504_s11 + $0xc30] sm:$0xff] }
 0x256   : > { %2718 = vmatprep.subr.bf16.mxu1 %v2717_v2  ;;  %v1217_v2 = vld [vmem:[%s3504_s11 + $0x9f0] sm:$0xff]  ;;  %v1298_v52 = vld [vmem:[%s3504_s11 + $0xc78] sm:$0xff] }
 0x257   : > { %2592 = vmatpush1.bf16.msra.mxu0 %v2591_v9  ;;  %v2739_v8 = vpack.c.bf16 %v1217_v2, %v1209_v0  ;;  %v2757_v63 = vpack.c.bf16 %v1298_v52, %v1290_v58  ;;  %v1297_v0 = vld [vmem:[%s3504_s11 + $0xc70] sm:$0xff]  ;;  %v1312_v2 = vld [vmem:[%s3504_s11 + $0xce8] sm:$0xff] }
 0x258   : > { %2594 = vmatprep.subr.bf16.mxu0 %v2593_v11  ;;  %v1231_v11 = vld [vmem:[%s3504_s11 + $0xa60] sm:$0xff]  ;;  %v2759_v6 = vpack.c.bf16 %v1297_v0, %v1289_v62  ;;  %v1377_v62 = vld [vmem:[%s3504_s11 + $0xef0] sm:$0xff]  ;;  %v1392_v0 = vld [vmem:[%s3504_s11 + $0xf68] sm:$0xff] }
 0x259   : > { %2720 = vmatpush1.bf16.msra.mxu1 %v2719_v10  ;;  %v1223_v10 = vld [vmem:[%s3504_s11 + $0xa20] sm:$0xff] }
 0x25a   : > { %2722 = vmatprep.subr.bf16.mxu1 %v2721_v15  ;;  %v1240_v15 = vld [vmem:[%s3504_s11 + $0xaa8] sm:$0xff]  ;;  %v2615_v21 = vpack.c.bf16 %v1231_v11, %v1223_v10  ;;  %v1305_v10 = vld [vmem:[%s3504_s11 + $0xcb0] sm:$0xff] }
 0x25b   : > { %2596 = vmatpush1.bf16.msra.mxu0 %v2595_v23  ;;  %v2617_v23 = vpack.c.bf16 %v1248_v18, %v1240_v15  ;;  %v1322_v15 = vld [vmem:[%s3504_s11 + $0xd38] sm:$0xff]  ;;  %v2763_v20 = vpack.c.bf16 %v1313_v12, %v1305_v10  ;;  %v1393_v10 = vld [vmem:[%s3504_s11 + $0xf70] sm:$0xff]  ;;  %v1408_v12 = vld [vmem:[%s3504_s11 + $0xfe8] sm:$0xff] }
 0x25c   : > { %2598 = vmatprep.subr.bf16.mxu0 %v2597_v25  ;;  %v1247_v25 = vld [vmem:[%s3504_s11 + $0xae0] sm:$0xff]  ;;  %v1330_v18 = vld [vmem:[%s3504_s11 + $0xd78] sm:$0xff] }
 0x25d   : > { %2724 = vmatpush1.bf16.msra.mxu1 %v2723_v24  ;;  %v1239_v24 = vld [vmem:[%s3504_s11 + $0xaa0] sm:$0xff] }
 0x25e   : > { %2726 = vmatprep.subr.bf16.mxu1 %v2725_v29  ;;  %1782 = vmatmul.mubr.f32.vlgmr.msra.gmra.mrb[2].mxu0 %v3718_v43  ;;  %v1256_v29 = vld [vmem:[%s3504_s11 + $0xb28] sm:$0xff]  ;;  %v2619_v33 = vpack.c.bf16 %v1247_v25, %v1239_v24  ;;  %v1321_v24 = vld [vmem:[%s3504_s11 + $0xd30] sm:$0xff]  ;;  %v2765_v25 = vpack.c.bf16 %v1330_v18, %v1322_v15 }
 0x25f   : > { %2600 = vmatpush1.bf16.msra.mxu0 %v2599_v35  ;;  %1852 = vmatprep.mubr.f32.mxu0 %v3753_v17  ;;  %v2621_v35 = vpack.c.bf16 %v1264_v30, %v1256_v29  ;;  %v1338_v29 = vld [vmem:[%s3504_s11 + $0xdb8] sm:$0xff]  ;;  %v2767_v32 = vpack.c.bf16 %v1329_v26, %v1321_v24  ;;  %v1409_v24 = vld [vmem:[%s3504_s11 + $0xff0] sm:$0xff] }
 0x260   : > { %1924 = vmatmul.mubr.f32.vlgmr.msra.gmra.mrb[2].mxu1 %v3718_v43  ;;  %2602 = vmatprep.subr.bf16.mxu0 %v2601_v37  ;;  %v1210_v43 = vld [vmem:[%s3504_s11 + $0x9b8] sm:$0xff]  ;;  %v1263_v37 = vld [vmem:[%s3504_s11 + $0xb60] sm:$0xff] }
 0x261   : > { %2728 = vmatpush1.bf16.msra.mxu1 %v2727_v36  ;;  %1994 = vmatprep.mubr.f32.mxu1 %v3753_v17  ;;  %v2737_v1 = vpack.c.bf16 %v1218_v47, %v1210_v43  ;;  %v1232_v17 = vld [vmem:[%s3504_s11 + $0xa68] sm:$0xff]  ;;  %v1255_v36 = vld [vmem:[%s3504_s11 + $0xb20] sm:$0xff]  ;;  %v2755_v47 = vpack.c.bf16 %v1281_v55, %v1273_v53  ;;  %v1346_v30 = vld [vmem:[%s3504_s11 + $0xdf8] sm:$0xff] }
 0x262   : > { %2730 = vmatprep.subr.bf16.mxu1 %v2729_v41  ;;  %v2613_v9 = vpack.c.bf16 %v1232_v17, %v1224_v4  ;;  %v1272_v41 = vld [vmem:[%s3504_s11 + $0xba8] sm:$0xff]  ;;  %v2623_v46 = vpack.c.bf16 %v1263_v37, %v1255_v36  ;;  %v1306_v4 = vld [vmem:[%s3504_s11 + $0xcb8] sm:$0xff]  ;;  %v1337_v36 = vld [vmem:[%s3504_s11 + $0xdb0] sm:$0xff]  ;;  %v2769_v37 = vpack.c.bf16 %v1346_v30, %v1338_v29 }
 0x263   : > { %2604 = vmatpush1.bf16.msra.mxu0 %v2603_v49  ;;  %v2625_v49 = vpack.c.bf16 %v1280_v42, %v1272_v41  ;;  %v1314_v17 = vld [vmem:[%s3504_s11 + $0xcf8] sm:$0xff]  ;;  %v2771_v45 = vpack.c.bf16 %v1345_v38, %v1337_v36  ;;  %v1361_v53 = vld [vmem:[%s3504_s11 + $0xe70] sm:$0xff]  ;;  %v1376_v55 = vld [vmem:[%s3504_s11 + $0xee8] sm:$0xff] }
 0x264   : > { %2606 = vmatprep.subr.bf16.mxu0 %v2605_v51  ;;  %v1279_v51 = vld [vmem:[%s3504_s11 + $0xbe0] sm:$0xff]  ;;  %v2761_v11 = vpack.c.bf16 %v1314_v17, %v1306_v4  ;;  %v1354_v41 = vld [vmem:[%s3504_s11 + $0xe38] sm:$0xff] }
 0x265   : > { %2732 = vmatpush1.bf16.msra.mxu1 %v2731_v50  ;;  %v1271_v50 = vld [vmem:[%s3504_s11 + $0xba0] sm:$0xff]  ;;  %v1362_v42 = vld [vmem:[%s3504_s11 + $0xe78] sm:$0xff] }
 0x266   : > { %2734 = vmatprep.subr.bf16.mxu1 %v2733_v56  ;;  %v1288_v56 = vld [vmem:[%s3504_s11 + $0xc28] sm:$0xff]  ;;  %v2627_v43 = vpack.c.bf16 %v1279_v51, %v1271_v50  ;;  %v1353_v50 = vld [vmem:[%s3504_s11 + $0xe30] sm:$0xff]  ;;  %v2773_v51 = vpack.c.bf16 %v1362_v42, %v1354_v41 }
 0x267   : > { %2608 = vmatpush1.bf16.msra.mxu0 %v2607_v59  ;;  %v2629_v59 = vpack.c.bf16 %v1296_v57, %v1288_v56  ;;  %v1370_v56 = vld [vmem:[%s3504_s11 + $0xeb8] sm:$0xff]  ;;  %v2775_v52 = vpack.c.bf16 %v1361_v53, %v1353_v50 }
 0x268   : > { %2610 = vmatprep.subr.bf16.mxu0 %v2609_v61  ;;  %v1295_v61 = vld [vmem:[%s3504_s11 + $0xc60] sm:$0xff]  ;;  %v1378_v57 = vld [vmem:[%s3504_s11 + $0xef8] sm:$0xff] }
 0x269   : > { %2736 = vmatpush1.bf16.msra.mxu1 %v2735_v60  ;;  %v1287_v60 = vld [vmem:[%s3504_s11 + $0xc20] sm:$0xff] }
 0x26a   : > { %2738 = vmatprep.subr.bf16.mxu1 %v2737_v1  ;;  %v1304_v1 = vld [vmem:[%s3504_s11 + $0xca8] sm:$0xff]  ;;  %v2631_v5 = vpack.c.bf16 %v1295_v61, %v1287_v60  ;;  %v1369_v60 = vld [vmem:[%s3504_s11 + $0xeb0] sm:$0xff]  ;;  %v2777_v61 = vpack.c.bf16 %v1378_v57, %v1370_v56 }
 0x26b   : > { %2612 = vmatpush1.bf16.msra.mxu0 %v2611_v7  ;;  %v2633_v7 = vpack.c.bf16 %v1312_v2, %v1304_v1  ;;  %v1386_v1 = vld [vmem:[%s3504_s11 + $0xf38] sm:$0xff]  ;;  %v2779_v17 = vpack.c.bf16 %v1377_v62, %v1369_v60 }
 0x26c   : > { %2614 = vmatprep.subr.bf16.mxu0 %v2613_v9  ;;  %v1311_v9 = vld [vmem:[%s3504_s11 + $0xce0] sm:$0xff]  ;;  %v1394_v2 = vld [vmem:[%s3504_s11 + $0xf78] sm:$0xff] }
 0x26d   : > { %2740 = vmatpush1.bf16.msra.mxu1 %v2739_v8  ;;  %v1303_v8 = vld [vmem:[%s3504_s11 + $0xca0] sm:$0xff] }
 0x26e   : > { %2742 = vmatprep.subr.bf16.mxu1 %v2741_v13  ;;  %v1320_v13 = vld [vmem:[%s3504_s11 + $0xd28] sm:$0xff]  ;;  %v2635_v19 = vpack.c.bf16 %v1311_v9, %v1303_v8  ;;  %v1385_v8 = vld [vmem:[%s3504_s11 + $0xf30] sm:$0xff]  ;;  %v2781_v9 = vpack.c.bf16 %v1394_v2, %v1386_v1 }
 0x26f   : > { %2616 = vmatpush1.bf16.msra.mxu0 %v2615_v21  ;;  %v2637_v21 = vpack.c.bf16 %v1328_v14, %v1320_v13  ;;  %v1402_v13 = vld [vmem:[%s3504_s11 + $0xfb8] sm:$0xff]  ;;  %v2783_v18 = vpack.c.bf16 %v1393_v10, %v1385_v8 }
 0x270   : > { %2618 = vmatprep.subr.bf16.mxu0 %v2617_v23  ;;  %v1327_v23 = vld [vmem:[%s3504_s11 + $0xd60] sm:$0xff]  ;;  %v1410_v14 = vld [vmem:[%s3504_s11 + $0xff8] sm:$0xff] }
 0x271   : > { %2744 = vmatpush1.bf16.msra.mxu1 %v2743_v22  ;;  %v1319_v22 = vld [vmem:[%s3504_s11 + $0xd20] sm:$0xff] }
 0x272   : > { %2746 = vmatprep.subr.bf16.mxu1 %v2745_v27  ;;  %v1336_v27 = vld [vmem:[%s3504_s11 + $0xda8] sm:$0xff]  ;;  %v2639_v31 = vpack.c.bf16 %v1327_v23, %v1319_v22  ;;  %v2785_v22 = vpack.c.bf16 %v1410_v14, %v1402_v13  ;;  %v1401_v23 = vld [vmem:[%s3504_s11 + $0xfb0] sm:$0xff] }
 0x273   : > { %2620 = vmatpush1.bf16.msra.mxu0 %v2619_v33  ;;  %v2641_v33 = vpack.c.bf16 %v1344_v28, %v1336_v27  ;;  %v2787_v26 = vpack.c.bf16 %v1409_v24, %v1401_v23 }
 0x274   : > { %2622 = vmatprep.subr.bf16.mxu0 %v2621_v35  ;;  %v1343_v35 = vld [vmem:[%s3504_s11 + $0xde0] sm:$0xff] }
 0x275   : > { %2748 = vmatpush1.bf16.msra.mxu1 %v2747_v34  ;;  %v1335_v34 = vld [vmem:[%s3504_s11 + $0xda0] sm:$0xff] }
 0x276   : > { %2750 = vmatprep.subr.bf16.mxu1 %v2749_v39  ;;  %v1352_v39 = vld [vmem:[%s3504_s11 + $0xe28] sm:$0xff]  ;;  %v2643_v44 = vpack.c.bf16 %v1343_v35, %v1335_v34 }
 0x277   : > { %2624 = vmatpush1.bf16.msra.mxu0 %v2623_v46  ;;  %v2645_v46 = vpack.c.bf16 %v1360_v40, %v1352_v39 }
 0x278   : > { %2626 = vmatprep.subr.bf16.mxu0 %v2625_v49  ;;  %v1359_v49 = vld [vmem:[%s3504_s11 + $0xe60] sm:$0xff] }
 0x279   : > { %2752 = vmatpush1.bf16.msra.mxu1 %v2751_v48  ;;  %v1351_v48 = vld [vmem:[%s3504_s11 + $0xe20] sm:$0xff] }
 0x27a   : > { %2754 = vmatprep.subr.bf16.mxu1 %v2753_v54  ;;  %v1368_v54 = vld [vmem:[%s3504_s11 + $0xea8] sm:$0xff]  ;;  %v2647_v58 = vpack.c.bf16 %v1359_v49, %v1351_v48 }
 0x27b   : > { %2628 = vmatpush1.bf16.msra.mxu0 %v2627_v43  ;;  %v2649_v43 = vpack.c.bf16 %v1376_v55, %v1368_v54 }
 0x27c   : > { %2630 = vmatprep.subr.bf16.mxu0 %v2629_v59  ;;  %v1375_v59 = vld [vmem:[%s3504_s11 + $0xee0] sm:$0xff] }
 0x27d   : > { %2756 = vmatpush1.bf16.msra.mxu1 %v2755_v47  ;;  %v1367_v47 = vld [vmem:[%s3504_s11 + $0xea0] sm:$0xff] }
 0x27e   : > { %2758 = vmatprep.subr.bf16.mxu1 %v2757_v63  ;;  %v1384_v63 = vld [vmem:[%s3504_s11 + $0xf28] sm:$0xff]  ;;  %v2651_v4 = vpack.c.bf16 %v1375_v59, %v1367_v47 }
 0x27f   : > { %2632 = vmatpush1.bf16.msra.mxu0 %v2631_v5  ;;  %v2653_v5 = vpack.c.bf16 %v1392_v0, %v1384_v63 }
 0x280   : > { %2634 = vmatprep.subr.bf16.mxu0 %v2633_v7  ;;  %v1391_v7 = vld [vmem:[%s3504_s11 + $0xf60] sm:$0xff] }
 0x281   : > { %2760 = vmatpush1.bf16.msra.mxu1 %v2759_v6  ;;  %v1383_v6 = vld [vmem:[%s3504_s11 + $0xf20] sm:$0xff] }
 0x282   : > { %2762 = vmatprep.subr.bf16.mxu1 %v2761_v11  ;;  %v1400_v11 = vld [vmem:[%s3504_s11 + $0xfa8] sm:$0xff]  ;;  %v2655_v15 = vpack.c.bf16 %v1391_v7, %v1383_v6 }
 0x283   : > { %2636 = vmatpush1.bf16.msra.mxu0 %v2635_v19  ;;  %v2657_v19 = vpack.c.bf16 %v1408_v12, %v1400_v11 }
 0x284   : > { %2638 = vmatprep.subr.bf16.mxu0 %v2637_v21  ;;  %v1407_v21 = vld [vmem:[%s3504_s11 + $0xfe0] sm:$0xff] }
 0x285   : > { %2764 = vmatpush1.bf16.msra.mxu1 %v2763_v20  ;;  %v1399_v20 = vld [vmem:[%s3504_s11 + $0xfa0] sm:$0xff] }
 0x286   : > { %2766 = vmatprep.subr.bf16.mxu1 %v2765_v25  ;;  %v2659_v25 = vpack.c.bf16 %v1407_v21, %v1399_v20 }
 0x287   : > { %2640 = vmatpush1.bf16.msra.mxu0 %v2639_v31 }
 0x288   : > { %2642 = vmatprep.subr.bf16.mxu0 %v2641_v33 }
 0x289   : > { %2768 = vmatpush1.bf16.msra.mxu1 %v2767_v32 }
 0x28a   : > { %2770 = vmatprep.subr.bf16.mxu1 %v2769_v37 }
 0x28b   : > { %2644 = vmatpush1.bf16.msra.mxu0 %v2643_v44 }
 0x28c   : > { %2646 = vmatprep.subr.bf16.mxu0 %v2645_v46 }
 0x28d   : > { %2772 = vmatpush1.bf16.msra.mxu1 %v2771_v45 }
 0x28e   : > { %2774 = vmatprep.subr.bf16.mxu1 %v2773_v51 }
 0x28f   : > { %2648 = vmatpush1.bf16.msra.mxu0 %v2647_v58 }
 0x290   : > { %2650 = vmatprep.subr.bf16.mxu0 %v2649_v43 }
 0x291   : > { %2776 = vmatpush1.bf16.msra.mxu1 %v2775_v52 }
 0x292   : > { %2778 = vmatprep.subr.bf16.mxu1 %v2777_v61 }
 0x293   : > { %2652 = vmatpush1.bf16.msra.mxu0 %v2651_v4 }
 0x294   : > { %2654 = vmatprep.subr.bf16.mxu0 %v2653_v5 }
 0x295   : > { %2780 = vmatpush1.bf16.msra.mxu1 %v2779_v17 }
 0x296   : > { %2782 = vmatprep.subr.bf16.mxu1 %v2781_v9 }
 0x297   : > { %2656 = vmatpush1.bf16.msra.mxu0 %v2655_v15 }
 0x298   : > { %2658 = vmatprep.subr.bf16.mxu0 %v2657_v19 }
 0x299   : > { %2784 = vmatpush1.bf16.msra.mxu1 %v2783_v18 }
 0x29a   : > { %2786 = vmatprep.subr.bf16.mxu1 %v2785_v22 }
 0x29b   : > { %2660 = vmatpush1.bf16.msra.mxu0 %v2659_v25 }
 0x29d   : > { %2788 = vmatpush1.bf16.msra.mxu1 %v2787_v26 }
 0x29e   : > { %1853 = vmatmul.mubr.f32.vlgmr.msra.gmra.mrb[2].mxu0 %v3741_v3 }
 0x2a0   : > { %1995 = vmatmul.mubr.f32.vlgmr.msra.gmra.mrb[2].mxu1 %v3741_v3 }
 0x2f1   : > { %v1570_v27 = vpop.f32.mrb[0].mxu0 }
 0x2f2   : > { %v1572_v29 = vpop.f32.mrb[1].mxu0 }
 0x2f3   : > { %v1712_v28 = vpop.f32.mrb[0].mxu1  ;;  %v2009_v30 = vcombine.low %v1570_v27, %v1572_v29 }
 0x2f4   : > { %v1714_v31 = vpop.f32.mrb[1].mxu1 }
 0x2f5   : > { %v2010_v32 = vcombine.low %v1712_v28, %v1714_v31  ;;  %v2017_v33 = vrot.slane %v2009_v30, %v3580_v16 }
 0x2f7   : > { %v2024_v34 = vrot.slane %v2010_v32, %v3580_v16 }
 0x2f9   : > { %v2025_v35 = vcombine.low %v2017_v33, %v2024_v34 }
 0x2fb   : > { %2045 = vst [vmem:[%s3502_s18] sm:$0xff] %v2025_v35 }
 0x371   : > { %v1854_v36 = vpop.f32.mrb[2].mxu0 }
 0x372   : > { %v1856_v38 = vpop.f32.mrb[3].mxu0 }
 0x373   : > { %v1996_v37 = vpop.f32.mrb[2].mxu1  ;;  %v2026_v39 = vcombine.low %v1854_v36, %v1856_v38 }
 0x374   : > { %v1998_v40 = vpop.f32.mrb[3].mxu1 }
 0x375   : > { %v2027_v41 = vcombine.low %v1996_v37, %v1998_v40  ;;  %v2034_v3 = vrot.slane %v2026_v39, %v3580_v16 }
 0x377   : > { %v2041_v42 = vrot.slane %v2027_v41, %v3580_v16 }
 0x379   : > { %v2042_v44 = vcombine.low %v2034_v3, %v2041_v42 }
 0x37b   : > { %2046 = vst [vmem:[%s3502_s18 + $0x8] sm:$0xff] %v2042_v44 }
 0x37c PF: > { %s20_s25 = sadd.s32 1, %s3190_s25   ;;  %s4210_s21 = sld [smem:[#allocation10_spill]] }
 0x37d   : > { %p17_p9 = scmp.ge.s32.totalorder %s20_s25, 8   ;;  %s4211_s17 = sld [smem:[#allocation14_spill]] }
 0x37e   : > { %s4212_s27 = sld [smem:[#allocation11_spill]]  ;;  %s4213_s20 = sld [smem:[#allocation15_spill]] }
 0x37f   : > { %s4214_s6 = sld [smem:[#allocation12_spill]]  ;;  %s4215_s5 = sld [smem:[#allocation13_spill]] }
 0x380   : > { %s4216_s15 = smov %s3154_s16  ;;  %s4218_s18 = smov %s3166_s19 }
 0x381   : > { %s4221_s22 = smov %s3186_s24  ;;  %19 = sbr.rel (!%p17_p9) target bundleno = 11 (0xb), region = 111 }
 0x382   : > { %s4217_s16 = smov %s4210_s21  ;;  %s4220_s21 = smov %s3182_s23 }
 0x384   : > { %s4219_s19 = smov %s4212_s27 }
 0x385   : > { %s4222_s23 = smov %s4214_s6  ;;  %s4223_s24 = smov %s4215_s5 }
 0x388   :  { %2068 = vsyncpa [#allocation4], 1 }
 0x389   :  { %2070 = vsyncpa [#allocation4 + $0x1], 1 }
 0x38a   :  { %2071 = vsyncpa [#allocation6], 1 }
 0x38b   :  { %2073 = vsyncpa [#allocation6 + $0x1], 1 }

</bundles_post_ra>
